<compile_context>
chip_gen: v5e
topology: v5e:2x2
jax: 0.10.0
libtpu: 0.0.40
codegen_flags: <defaults>
</compile_context>

<pallas_src>
import jax
import jax.numpy as jnp
from jax.experimental import pallas as pl
from jax.experimental.pallas import tpu as pltpu

# ---------------- problem sizes (channels fixed by the module) ----------------
N, C_IN, C_OUT = 2, 192, 128
H, W = 8, 16
KH, KW = 3, 3
PAD = 1
TAPS = KH * KW                 # 9

HP = H + 2 * PAD               # 10  zero-padded height
WP = 24                        # zero-padded width (16 + 2 = 18, rounded up to a multiple of 8)
ROWS = HP * WP                 # 240 flattened padded-input rows per batch element
VROWS = H * WP                 # 192 flattened output rows per batch element (cols >= W discarded)
ROWS_P = ROWS + 8              # scratch rows, so every tap window [s, s+VROWS) is in bounds


def conv_transpose_tanh_kernel(x_ref, w_ref, b_ref, o_ref, y_ref):
    """One grid step = one batch element.

    x_ref : (1, ROWS, C_IN)        flattened zero-padded NHWC input slab
    w_ref : (C_IN, TAPS * C_OUT)   flipped conv-transpose weights, one 128-col block per tap
    b_ref : (1, C_OUT)             bias
    o_ref : (1, VROWS, C_OUT)      flattened output rows (lane-dense, C_OUT = 128)
    y_ref : (ROWS_P, TAPS*C_OUT)   f32 VMEM scratch holding the single wide matmul result
    """
    # One wide MXU matmul computes all 9 taps at every padded spatial position:
    #   (240, 192) @ (192, 1152), f32 accumulation.
    y_ref[0:ROWS, :] = jnp.dot(x_ref[0], w_ref[...],
                               preferred_element_type=jnp.float32)
    # Zero the 8 tail rows so the largest tap windows read zeros (those rows can
    # only land in output columns that the wrapper discards anyway).
    y_ref[ROWS:ROWS_P, :] = jnp.zeros((ROWS_P - ROWS, TAPS * C_OUT), jnp.float32)

    # Combine the taps: output row r needs y[r + kh*WP + kw, tap-block].
    # The row offset is a cheap (possibly sublane-misaligned) VMEM read of the
    # scratch; kw = 0 taps and all lane slices are tile-aligned.
    acc = None
    for kh in range(KH):
        for kw in range(KW):
            tap = kh * KW + kw
            s = kh * WP + kw
            term = y_ref[s:s + VROWS, tap * C_OUT:(tap + 1) * C_OUT]   # (192, 128)
            acc = term if acc is None else acc + term

    o_ref[0] = jnp.tanh(acc + b_ref[...]).astype(o_ref.dtype)


def prepare_weights(weight):
    """PyTorch ConvTranspose2d weight (C_IN, C_OUT, KH, KW) ->
       (C_IN, TAPS*C_OUT) slab: column block `tap = kh*KW + kw` holds the
       equivalent-convolution (spatially flipped) tap weights."""
    w_flip = weight[:, :, ::-1, ::-1]                  # deconv == conv with flipped taps
    w_all = jnp.transpose(w_flip, (0, 2, 3, 1))        # (C_IN, KH, KW, C_OUT)
    return w_all.reshape(C_IN, TAPS * C_OUT).astype(jnp.float32)


@jax.jit
def conv_transpose_tanh(x_nchw, w_all, bias2d):
    """x_nchw: (N, C_IN, H, W) f32 -> (N, C_OUT, H, W) f32 (PyTorch semantics)."""
    # NHWC + zero pad (pad=1 each side; width rounded up to WP so rows stay
    # 8-aligned), then flatten the spatial slab so the kernel sees a plain 2-D
    # matmul operand (no in-kernel reshapes at all).
    x = jnp.transpose(x_nchw, (0, 2, 3, 1))
    x = jnp.pad(x, ((0, 0), (PAD, PAD), (PAD, WP - W - PAD), (0, 0)))
    x = x.reshape(N, ROWS, C_IN)

    out_flat = pl.pallas_call(
        conv_transpose_tanh_kernel,
        out_shape=jax.ShapeDtypeStruct((N, VROWS, C_OUT), jnp.float32),
        grid_spec=pltpu.PrefetchScalarGridSpec(
            num_scalar_prefetch=0,
            grid=(N,),   # one batch element per step: both TCs on v7x,
                         # ~0.35us extra per step on single-TC v5e/v6e.
            in_specs=[
                pl.BlockSpec((1, ROWS, C_IN), lambda n: (n, 0, 0)),
                pl.BlockSpec((C_IN, TAPS * C_OUT), lambda n: (0, 0)),
                pl.BlockSpec((1, C_OUT), lambda n: (0, 0)),
            ],
            out_specs=pl.BlockSpec((1, VROWS, C_OUT), lambda n: (n, 0, 0)),
            scratch_shapes=[pltpu.VMEM((ROWS_P, TAPS * C_OUT), jnp.float32)],
        ),
        compiler_params=pltpu.CompilerParams(
            dimension_semantics=("parallel",)),
    )(x, w_all, bias2d)

    # (N, VROWS, C_OUT) -> (N, H, WP, C_OUT) -> drop padded columns -> NCHW.
    out = out_flat.reshape(N, H, WP, C_OUT)[:, :, :W, :]
    return jnp.transpose(out, (0, 3, 1, 2))


def _reference(x_nchw, weight, bias):
    """Direct ConvTranspose2d (stride=1, padding=1) scatter definition + tanh, NCHW."""
    full = jnp.zeros((N, C_OUT, H + KH - 1, W + KW - 1), jnp.float32)
    for kh in range(KH):
        for kw in range(KW):
            contrib = jnp.einsum("ncij,cd->ndij", x_nchw, weight[:, :, kh, kw],
                                 precision=jax.lax.Precision.HIGHEST)
            full = full.at[:, :, kh:kh + H, kw:kw + W].add(contrib)
    y = full[:, :, PAD:PAD + H, PAD:PAD + W] + bias[None, :, None, None]
    return jnp.tanh(y)


if __name__ == "__main__":
    key = jax.random.PRNGKey(0)
    kx, kw_key, kb = jax.random.split(key, 3)

    # deterministic inputs / parameters (PyTorch-style uniform fan-in init)
    x = jax.random.normal(kx, (N, C_IN, H, W), dtype=jnp.float32)
    fan_in = C_IN * KH * KW
    bound = 1.0 / (fan_in ** 0.5)
    weight = jax.random.uniform(kw_key, (C_IN, C_OUT, KH, KW),
                                minval=-bound, maxval=bound, dtype=jnp.float32)
    bias = jax.random.uniform(kb, (C_OUT,),
                              minval=-bound, maxval=bound, dtype=jnp.float32)

    # weight/bias prep happens ONCE, outside the jitted per-call hot path.
    w_all = prepare_weights(weight)            # (192, 1152)
    bias2d = bias.reshape(1, C_OUT)            # (1, 128)

    out = conv_transpose_tanh(x, w_all, bias2d)
    jax.block_until_ready(out)

    ref = _reference(x, weight, bias)
    assert out.shape == (N, C_OUT, H, W)
    assert jnp.allclose(out, ref, atol=2e-5, rtol=2e-5), float(jnp.max(jnp.abs(out - ref)))

    print("KERNEL_OK")
</pallas_src>

<mosaic_0001>
module attributes {stable_mosaic.version = 11 : i64} {
  func.func @conv_transpose_tanh_kernel(%arg0: i32, %arg1: memref<1x240x192xf32, #tpu.memory_space<vmem>>, %arg2: memref<192x1152xf32, #tpu.memory_space<vmem>>, %arg3: memref<1x128xf32, #tpu.memory_space<vmem>>, %arg4: memref<1x192x128xf32, #tpu.memory_space<vmem>>, %arg5: memref<248x1152xf32, #tpu.memory_space<vmem>>) attributes {dimension_semantics = [#tpu.dimension_semantics<parallel>], iteration_bounds = array<i64: 2>, scalar_prefetch = 0 : i64, scratch_operands = 1 : i64, tpu.core_type = #tpu.core_type<tc>, window_params = [{transform_indices = @transform_0, window_bounds = array<i64: 1, 240, 192>}, {pipeline_mode = #tpu.pipeline_mode<synchronous>, transform_indices = @transform_1, window_bounds = array<i64: 192, 1152>}, {pipeline_mode = #tpu.pipeline_mode<synchronous>, transform_indices = @transform_2, window_bounds = array<i64: 1, 128>}, {transform_indices = @transform_3, window_bounds = array<i64: 1, 192, 128>}]} {
    %c0 = arith.constant 0 : index
    %c0_0 = arith.constant 0 : index
    %c0_1 = arith.constant 0 : index
    %0 = vector.load %arg1[%c0, %c0_0, %c0_1] : memref<1x240x192xf32, #tpu.memory_space<vmem>>, vector<1x240x192xf32>
    %1 = vector.shape_cast %0 : vector<1x240x192xf32> to vector<240x192xf32>
    %c0_2 = arith.constant 0 : index
    %c0_3 = arith.constant 0 : index
    %2 = vector.load %arg2[%c0_2, %c0_3] : memref<192x1152xf32, #tpu.memory_space<vmem>>, vector<192x1152xf32>
    %cst = arith.constant dense<0.000000e+00> : vector<240x1152xf32>
    %3 = tpu.matmul %1, %2, %cst {dimension_numbers = #tpu.dot_dimension_numbers<[1], [0], [0], [1], [0, 0, 1, 1], [], []>} : vector<240x192xf32>, vector<192x1152xf32>, vector<240x1152xf32> -> vector<240x1152xf32>
    %c0_4 = arith.constant 0 : index
    %c0_5 = arith.constant 0 : index
    %4 = vector.load %arg5[%c0_4, %c0_5] : memref<248x1152xf32, #tpu.memory_space<vmem>>, vector<240x1152xf32>
    tpu.vector_store %arg5[%c0_4, %c0_5], %3 {strides = array<i32>} : memref<248x1152xf32, #tpu.memory_space<vmem>>, vector<240x1152xf32>,
    %cst_6 = arith.constant 0.000000e+00 : f32
    %5 = vector.broadcast %cst_6 : f32 to vector<8x1152xf32>
    %c240 = arith.constant 240 : index
    %c0_7 = arith.constant 0 : index
    %6 = vector.load %arg5[%c240, %c0_7] : memref<248x1152xf32, #tpu.memory_space<vmem>>, vector<8x1152xf32>
    tpu.vector_store %arg5[%c240, %c0_7], %5 {strides = array<i32>} : memref<248x1152xf32, #tpu.memory_space<vmem>>, vector<8x1152xf32>,
    %c0_8 = arith.constant 0 : index
    %c0_9 = arith.constant 0 : index
    %7 = vector.load %arg5[%c0_8, %c0_9] : memref<248x1152xf32, #tpu.memory_space<vmem>>, vector<192x128xf32>
    %c1 = arith.constant 1 : index
    %c128 = arith.constant 128 : index
    %8 = vector.load %arg5[%c1, %c128] : memref<248x1152xf32, #tpu.memory_space<vmem>>, vector<192x128xf32>
    %9 = arith.addf %7, %8 : vector<192x128xf32>
    %c2 = arith.constant 2 : index
    %c256 = arith.constant 256 : index
    %10 = vector.load %arg5[%c2, %c256] : memref<248x1152xf32, #tpu.memory_space<vmem>>, vector<192x128xf32>
    %11 = arith.addf %9, %10 : vector<192x128xf32>
    %c24 = arith.constant 24 : index
    %c384 = arith.constant 384 : index
    %12 = vector.load %arg5[%c24, %c384] : memref<248x1152xf32, #tpu.memory_space<vmem>>, vector<192x128xf32>
    %13 = arith.addf %11, %12 : vector<192x128xf32>
    %c25 = arith.constant 25 : index
    %c512 = arith.constant 512 : index
    %14 = vector.load %arg5[%c25, %c512] : memref<248x1152xf32, #tpu.memory_space<vmem>>, vector<192x128xf32>
    %15 = arith.addf %13, %14 : vector<192x128xf32>
    %c26 = arith.constant 26 : index
    %c640 = arith.constant 640 : index
    %16 = vector.load %arg5[%c26, %c640] : memref<248x1152xf32, #tpu.memory_space<vmem>>, vector<192x128xf32>
    %17 = arith.addf %15, %16 : vector<192x128xf32>
    %c48 = arith.constant 48 : index
    %c768 = arith.constant 768 : index
    %18 = vector.load %arg5[%c48, %c768] : memref<248x1152xf32, #tpu.memory_space<vmem>>, vector<192x128xf32>
    %19 = arith.addf %17, %18 : vector<192x128xf32>
    %c49 = arith.constant 49 : index
    %c896 = arith.constant 896 : index
    %20 = vector.load %arg5[%c49, %c896] : memref<248x1152xf32, #tpu.memory_space<vmem>>, vector<192x128xf32>
    %21 = arith.addf %19, %20 : vector<192x128xf32>
    %c50 = arith.constant 50 : index
    %c1024 = arith.constant 1024 : index
    %22 = vector.load %arg5[%c50, %c1024] : memref<248x1152xf32, #tpu.memory_space<vmem>>, vector<192x128xf32>
    %23 = arith.addf %21, %22 : vector<192x128xf32>
    %c0_10 = arith.constant 0 : index
    %c0_11 = arith.constant 0 : index
    %24 = vector.load %arg3[%c0_10, %c0_11] : memref<1x128xf32, #tpu.memory_space<vmem>>, vector<1x128xf32>
    %25 = vector.broadcast %24 : vector<1x128xf32> to vector<192x128xf32>
    %26 = arith.addf %23, %25 : vector<192x128xf32>
    %27 = math.tanh %26 : vector<192x128xf32>
    %c0_12 = arith.constant 0 : index
    %c0_13 = arith.constant 0 : index
    %c0_14 = arith.constant 0 : index
    %28 = vector.load %arg4[%c0_12, %c0_13, %c0_14] : memref<1x192x128xf32, #tpu.memory_space<vmem>>, vector<1x192x128xf32>
    %29 = vector.shape_cast %28 : vector<1x192x128xf32> to vector<192x128xf32>
    %30 = vector.shape_cast %27 : vector<192x128xf32> to vector<1x192x128xf32>
    tpu.vector_store %arg4[%c0_12, %c0_13, %c0_14], %30 {strides = array<i32>} : memref<1x192x128xf32, #tpu.memory_space<vmem>>, vector<1x192x128xf32>,
    return
  }
  func.func @transform_0(%arg0: i32) -> (i32, i32, i32) {
    %c0_i32 = arith.constant 0 : i32
    %c0_i32_0 = arith.constant 0 : i32
    %c0_i32_1 = arith.constant 0 : i32
    return %arg0, %c0_i32, %c0_i32_0 : i32, i32, i32
  }
  func.func @transform_1(%arg0: i32) -> (i32, i32) {
    %c0_i32 = arith.constant 0 : i32
    %c0_i32_0 = arith.constant 0 : i32
    %c0_i32_1 = arith.constant 0 : i32
    return %c0_i32, %c0_i32_0 : i32, i32
  }
  func.func @transform_2(%arg0: i32) -> (i32, i32) {
    %c0_i32 = arith.constant 0 : i32
    %c0_i32_0 = arith.constant 0 : i32
    %c0_i32_1 = arith.constant 0 : i32
    return %c0_i32, %c0_i32_0 : i32, i32
  }
  func.func @transform_3(%arg0: i32) -> (i32, i32, i32) {
    %c0_i32 = arith.constant 0 : i32
    %c0_i32_0 = arith.constant 0 : i32
    %c0_i32_1 = arith.constant 0 : i32
    return %arg0, %c0_i32, %c0_i32_0 : i32, i32, i32
  }
}

</mosaic_0001>

<bundles_post_ra>
// kernel: conv_transpose_tanh.1
= control target key start
LH: loop header
LB: loop body
LE: loop exit
PB: predicated region body
PF: predicated region fallthrough
CT: control target
= control target key end

     0   :  { %8 = vsyncpa [#allocation4], 0  ;;  %s4484_s12 = smov 0   ;;  %s6264_s0 = inlined_call_operand.vmem [shape: f32[2,240,192], index: 0, kind: input, shape index: {}]   ;;  %s6265_s1 = inlined_call_operand.hbm [shape: f32[192,1152], index: 1, kind: input, shape index: {}]   ;;  %s6266_s2 = inlined_call_operand.vmem [shape: f32[1,128], index: 2, kind: input, shape index: {}]   ;;  %s6267_s3 = inlined_call_operand.vmem [shape: f32[2,192,128], index: 3, kind: output, shape index: {}]  }
   0x1 LB: > { %s124_s15 = sshll.u32 %s6265_s1, 4  ;;  %s4493_s16 = sadd.s32 4294967295, %s4458_s12   ;;  %s4458_s12 = sphi %s4484_s12, %s14_s12   ;;  %s125_s15 = int_to_ptr.hbm [resolvable:$true] %s124_s15 }
   0x2   : > { %p3909_p0 = scmp.ge.s32.totalorder %s4458_s12, 1  ;;  %p113_p1 = scmp.lt.s32.totalorder %s4458_s12, 3 }
   0x3   : > { %p4214_p2 = scmp.eq.s32.totalorder %s4493_s16, 0  ;;  %s4460_s17 = smov [#allocation3]  }
   0x4   : > { %p114_p3 = pnand %p3909_p0, %p113_p1  ;;  %s126_s18 = sshll.u32 %s4460_s17, 4  ;;  %s127_s18 = int_to_ptr.vmem [resolvable:$true] %s126_s18 }
   0x5   : > { %s4461_s19 = smov 1152   ;;  %s4462_s20 = smov 72  }
   0x6   : > { %p4210_p4 = pneg %p114_p3  ;;  %153 = sbr.rel (%p114_p3) target bundleno = 1261 (0x4ed), region = 32 }
   0x8   : > { %p4211_p5 = pnand %p4214_p2, %p4210_p4 }
   0xa   : > { %4213 = dma.hbm_to_vmem [thread:$0]  (!%p4211_p5), %s125_s15, 27648, %s127_s18, [#allocation4], %s4461_s19, %s4461_s19, %s4462_s20  }
   0xb   : > { %4453 = dma.done.wait (%p4214_p2), [#allocation4], 27648  }
   0xc   : > { %4455 = vsyncadd (%p4214_p2), [#allocation4], 4294939648  ;;  %p178_p6 = scmp.lt.s32.totalorder %s4493_s16, 1  ;;  %v383_v0 = vld [vmem:[#allocation3 + $0x438] sm:$0xff]  ;;  %v384_v1 = vld [vmem:[#allocation3 + $0x440] sm:$0xff]  ;;  %vm464_vm0 = vcmask 523264  }
   0xd   : > { %v4499_v2 = vld [vmem:[#allocation3 + $0x680] sm:$0xff]  ;;  %555 = vmatpush.msra.mxu0 %v383_v0  ;;  %769 = vmatpush.msra.mxu2 %v384_v1  ;;  %v374_v3 = vld [vmem:[#allocation3 + $0x3f0] sm:$0xff]  ;;  %v375_v4 = vld [vmem:[#allocation3 + $0x3f8] sm:$0xff]  ;;  %vm2834_vm1 = vcmask 1046528   ;;  %vm2982_vm2 = vcmask 1045504  }
   0xe   : > { %v4501_v5 = vld [vmem:[#allocation3 + $0x638] sm:$0xff]  ;;  %4196 = vmatpush.msra.mxu3 %v4499_v2  ;;  %v365_v6 = vld [vmem:[#allocation3 + $0x3a8] sm:$0xff]  ;;  %v366_v7 = vld [vmem:[#allocation3 + $0x3b0] sm:$0xff]  ;;  %s6414_s16 = smov (!%p178_p6, %s4493_s16), 1 }
   0xf   : > { %556 = vmatpush.msra.mxu0 %v374_v3  ;;  %770 = vmatpush.msra.mxu2 %v375_v4  ;;  %v4504_v8 = vld [vmem:[#allocation3 + $0x5f0] sm:$0xff]  ;;  %v4506_v9 = vld [vmem:[#allocation3 + $0x678] sm:$0xff]  ;;  %v356_v10 = vld [vmem:[#allocation3 + $0x360] sm:$0xff]  ;;  %s4204_s21 = smul.u32 480, %s6414_s16 }
  0x10   : > { %4197 = vmatpush.msra.mxu3 %v4501_v5  ;;  %4188 = vmatpush.msra.mxu1 %v4506_v9  ;;  %v357_v11 = vld [vmem:[#allocation3 + $0x368] sm:$0xff]  ;;  %v4515_v12 = vld [vmem:[#allocation3 + $0x630] sm:$0xff]  ;;  %v347_v14 = vld [vmem:[#allocation3 + $0x318] sm:$0xff]  ;;  %s4205_s27 = smul.u32 192, %s6414_s16 }
  0x11   : > { %557 = vmatpush.msra.mxu0 %v365_v6  ;;  %771 = vmatpush.msra.mxu2 %v366_v7  ;;  %v4517_v13 = vld [vmem:[#allocation3 + $0x5a8] sm:$0xff]  ;;  %v348_v15 = vld [vmem:[#allocation3 + $0x320] sm:$0xff]  ;;  %v338_v19 = vld [vmem:[#allocation3 + $0x2d0] sm:$0xff]  ;;  %s4541_s24 = scalar_lea.vmem %s6264_s0, %s4204_s21 }
  0x12   : > { %4198 = vmatpush.msra.mxu3 %v4504_v8  ;;  %4189 = vmatpush.msra.mxu1 %v4515_v12  ;;  %v4521_v16 = vld [vmem:[#allocation3 + $0x5e8] sm:$0xff]  ;;  %v4523_v17 = vld [vmem:[#allocation3 + $0x560] sm:$0xff]  ;;  %v339_v20 = vld [vmem:[#allocation3 + $0x2d8] sm:$0xff]  ;;  %s6121_s30 = scalar_lea.vmem %s6267_s3, %s4205_s27 }
  0x13   : > { %558 = vmatpush.msra.mxu0 %v356_v10  ;;  %772 = vmatpush.msra.mxu2 %v357_v11  ;;  %v4525_v18 = vld [vmem:[#allocation3 + $0x5a0] sm:$0xff]  ;;  %v4530_v21 = vld [vmem:[#allocation3 + $0x518] sm:$0xff]  ;;  %v329_v23 = vld [vmem:[#allocation3 + $0x288] sm:$0xff] }
  0x14   : > { %4199 = vmatpush.msra.mxu3 %v4517_v13  ;;  %4190 = vmatpush.msra.mxu1 %v4521_v16  ;;  %v4532_v22 = vld [vmem:[#allocation3 + $0x558] sm:$0xff]  ;;  %v330_v24 = vld [vmem:[#allocation3 + $0x290] sm:$0xff]  ;;  %v320_v27 = vld [vmem:[#allocation3 + $0x240] sm:$0xff] }
  0x15   : > { %559 = vmatpush.msra.mxu0 %v347_v14  ;;  %773 = vmatpush.msra.mxu2 %v348_v15  ;;  %v4536_v25 = vld [vmem:[#allocation3 + $0x4d0] sm:$0xff]  ;;  %v321_v28 = vld [vmem:[#allocation3 + $0x248] sm:$0xff]  ;;  %v311_v32 = vld [vmem:[#allocation3 + $0x1f8] sm:$0xff] }
  0x16   : > { %4200 = vmatpush.msra.mxu3 %v4523_v17  ;;  %4191 = vmatpush.msra.mxu1 %v4525_v18  ;;  %v4543_v26 = vld [vmem:[#allocation3 + $0x510] sm:$0xff]  ;;  %v4547_v29 = vld [vmem:[#allocation3 + $0x488] sm:$0xff]  ;;  %v312_v33 = vld [vmem:[#allocation3 + $0x200] sm:$0xff] }
  0x17   : > { %560 = vmatpush.msra.mxu0 %v338_v19  ;;  %774 = vmatpush.msra.mxu2 %v339_v20  ;;  %v4549_v30 = vld [vmem:[#allocation3 + $0x4c8] sm:$0xff]  ;;  %v4553_v31 = vld [vmem:[%s4541_s24 + $0xe8] sm:$0xff]  ;;  %v4558_v36 = vld [vmem:[#allocation3 + $0x480] sm:$0xff] }
  0x18   : > { %4201 = vmatpush.msra.mxu3 %v4530_v21  ;;  %4192 = vmatpush.msra.mxu1 %v4532_v22  ;;  %v457_v34 = vld [vmem:[#allocation3 + $0x688] sm:$0xff]  ;;  %v302_v35 = vld [vmem:[#allocation3 + $0x1b0] sm:$0xff]  ;;  %v303_v37 = vld [vmem:[#allocation3 + $0x1b8] sm:$0xff] }
  0x19   : > { %561 = vmatpush.msra.mxu0 %v329_v23  ;;  %775 = vmatpush.msra.mxu2 %v330_v24  ;;  %v293_v38 = vld [vmem:[#allocation3 + $0x168] sm:$0xff]  ;;  %v294_v40 = vld [vmem:[#allocation3 + $0x170] sm:$0xff]  ;;  %v448_v41 = vld [vmem:[#allocation3 + $0x640] sm:$0xff] }
  0x1a   : > { %4202 = vmatpush.msra.mxu3 %v4536_v25  ;;  %4193 = vmatpush.msra.mxu1 %v4543_v26  ;;  %v385_v39 = vld [vmem:[#allocation3 + $0x448] sm:$0xff]  ;;  %v284_v42 = vld [vmem:[#allocation3 + $0x120] sm:$0xff]  ;;  %v439_v45 = vld [vmem:[#allocation3 + $0x5f8] sm:$0xff] }
  0x1b   : > { %562 = vmatpush.msra.mxu0 %v320_v27  ;;  %776 = vmatpush.msra.mxu2 %v321_v28  ;;  %v376_v43 = vld [vmem:[#allocation3 + $0x400] sm:$0xff]  ;;  %v285_v44 = vld [vmem:[#allocation3 + $0x128] sm:$0xff]  ;;  %v275_v47 = vld [vmem:[#allocation3 + $0xd8] sm:$0xff] }
  0x1c   : > { %4203 = vmatpush.msra.mxu3 %v4547_v29  ;;  %4194 = vmatpush.msra.mxu1 %v4549_v30  ;;  %v4566_v46 = vld [vmem:[%s4541_s24 + $0xf8] sm:$0xff]  ;;  %v367_v49 = vld [vmem:[#allocation3 + $0x3b8] sm:$0xff]  ;;  %v266_v50 = vld [vmem:[#allocation3 + $0x90] sm:$0xff] }
  0x1d   : > { %3960 = vmatmul.msk.f32.vlgmr.msra.gmra.mxu3 %vm464_vm0, %v4553_v31  ;;  %563 = vmatpush.msra.mxu0 %v311_v32  ;;  %v276_v48 = vld [vmem:[#allocation3 + $0xe0] sm:$0xff]  ;;  %v267_v51 = vld [vmem:[#allocation3 + $0x98] sm:$0xff]  ;;  %v257_v52 = vld [vmem:[#allocation3 + $0x48] sm:$0xff] }
  0x1e   : > { %777 = vmatpush.msra.mxu2 %v312_v33  ;;  %1098 = vmatpush.msrb.mxu3 %v457_v34  ;;  %v358_v53 = vld [vmem:[#allocation3 + $0x370] sm:$0xff]  ;;  %v248_v55 = vld [vmem:[#allocation3] sm:$0xff]  ;;  %v349_v56 = vld [vmem:[#allocation3 + $0x328] sm:$0xff] }
  0x1f   : > { %564 = vmatpush.msra.mxu0 %v302_v35  ;;  %4195 = vmatpush.msra.mxu1 %v4558_v36  ;;  %v258_v54 = vld [vmem:[#allocation3 + $0x50] sm:$0xff]  ;;  %v249_v57 = vld [vmem:[#allocation3 + $0x8] sm:$0xff]  ;;  %v340_v60 = vld [vmem:[#allocation3 + $0x2e0] sm:$0xff] }
  0x20   : > { %778 = vmatpush.msra.mxu2 %v303_v37  ;;  %3930 = vmatmul.msk.f32.vlgmr.msra.gmra.mxu1 %vm464_vm0, %v4553_v31  ;;  %v4573_v58 = vld [vmem:[%s4541_s24] sm:$0xff]  ;;  %v4576_v59 = vld [vmem:[%s4541_s24 + $0x108] sm:$0xff]  ;;  %v4588_v62 = vld [vmem:[%s4541_s24 + $0x10] sm:$0xff] }
  0x21   : > { %565 = vmatpush.msra.mxu0 %v293_v38  ;;  %983 = vmatpush.msrb.mxu1 %v385_v39  ;;  %v430_v61 = vld [vmem:[#allocation3 + $0x5b0] sm:$0xff]  ;;  %v4592_v63 = vld [vmem:[%s4541_s24 + $0x118] sm:$0xff]  ;;  %v331_v0 = vld [vmem:[#allocation3 + $0x298] sm:$0xff] }
  0x22   : > { %779 = vmatpush.msra.mxu2 %v294_v40  ;;  %1099 = vmatpush.msrb.mxu3 %v448_v41  ;;  %v4607_v1 = vld [vmem:[%s4541_s24 + $0x20] sm:$0xff]  ;;  %v322_v3 = vld [vmem:[#allocation3 + $0x250] sm:$0xff]  ;;  %v4628_v6 = vld [vmem:[%s4541_s24 + $0x138] sm:$0xff] }
  0x23   : > { %566 = vmatpush.msra.mxu0 %v284_v42  ;;  %984 = vmatpush.msrb.mxu1 %v376_v43  ;;  %v421_v4 = vld [vmem:[#allocation3 + $0x568] sm:$0xff]  ;;  %v304_v10 = vld [vmem:[#allocation3 + $0x1c0] sm:$0xff]  ;;  %v295_v14 = vld [vmem:[#allocation3 + $0x178] sm:$0xff] }
  0x24   : > { %780 = vmatpush.msra.mxu2 %v285_v44  ;;  %1100 = vmatpush.msrb.mxu3 %v439_v45  ;;  %v313_v7 = vld [vmem:[#allocation3 + $0x208] sm:$0xff]  ;;  %v412_v11 = vld [vmem:[#allocation3 + $0x520] sm:$0xff]  ;;  %v4673_v19 = vld [vmem:[%s4541_s24 + $0x70] sm:$0xff] }
  0x25   : > { %3961 = vmatmul.msk.f32.gmra.mxu3 %vm464_vm0, %v4566_v46  ;;  %567 = vmatpush.msra.mxu0 %v275_v47  ;;  %v4661_v15 = vld [vmem:[%s4541_s24 + $0x60] sm:$0xff]  ;;  %v4676_v20 = vld [vmem:[%s4541_s24 + $0x178] sm:$0xff]  ;;  %v4688_v23 = vld [vmem:[%s4541_s24 + $0x188] sm:$0xff] }
  0x26   : > { %781 = vmatpush.msra.mxu2 %v276_v48  ;;  %985 = vmatpush.msrb.mxu1 %v367_v49  ;;  %v268_v24 = vld [vmem:[#allocation3 + $0xa0] sm:$0xff]  ;;  %v259_v28 = vld [vmem:[#allocation3 + $0x58] sm:$0xff]  ;;  %v250_v32 = vld [vmem:[#allocation3 + $0x10] sm:$0xff] }
  0x27   : > { %568 = vmatpush.msra.mxu0 %v266_v50  ;;  %1101 = vmatpush.msrb.mxu3 %v430_v61  ;;  %v4700_v27 = vld [vmem:[%s4541_s24 + $0x198] sm:$0xff]  ;;  %v459_v33 = vld [vmem:[#allocation3 + $0x698] sm:$0xff]  ;;  %v4733_v37 = vld [vmem:[%s4541_s24 + $0xc0] sm:$0xff] }
  0x28   : > { %782 = vmatpush.msra.mxu2 %v267_v51  ;;  %3931 = vmatmul.msk.f32.gmra.mxu1 %vm464_vm0, %v4566_v46  ;;  %v4721_v34 = vld [vmem:[%s4541_s24 + $0xb0] sm:$0xff]  ;;  %v4724_v35 = vld [vmem:[%s4541_s24 + $0x1b8] sm:$0xff]  ;;  %v4736_v38 = vld [vmem:[%s4541_s24 + $0x1c8] sm:$0xff] }
  0x29   : > { %569 = vmatpush.msra.mxu0 %v257_v52  ;;  %986 = vmatpush.msrb.mxu1 %v358_v53  ;;  %6304 = vst [vmem:[#allocation7_spill] sm:$0xff] %v4724_v35  ;;  %v4745_v39 = vld [vmem:[%s4541_s24 + $0xd0] sm:$0xff]  ;;  %v378_v40 = vld [vmem:[#allocation3 + $0x410] sm:$0xff]  ;;  %v4748_v41 = vld [vmem:[%s4541_s24 + $0x1d8] sm:$0xff] }
  0x2a   : > { %783 = vmatpush.msra.mxu2 %v258_v54  ;;  %1102 = vmatpush.msrb.mxu3 %v421_v4  ;;  %6305 = vst [vmem:[#allocation8_spill] sm:$0xff] %v4736_v38  ;;  %v4757_v42 = vld [vmem:[%s4541_s24 + $0xe0] sm:$0xff]  ;;  %v4760_v43 = vld [vmem:[%s4541_s24 + $0x8] sm:$0xff]  ;;  %v4772_v48 = vld [vmem:[%s4541_s24 + $0xf0] sm:$0xff] }
  0x2b   : > { %570 = vmatpush.msra.mxu0 %v248_v55  ;;  %987 = vmatpush.msrb.mxu1 %v349_v56  ;;  %6306 = vst [vmem:[#allocation9_spill] sm:$0xff] %v4748_v41  ;;  %v450_v45 = vld [vmem:[#allocation3 + $0x650] sm:$0xff]  ;;  %v369_v49 = vld [vmem:[#allocation3 + $0x3c8] sm:$0xff]  ;;  %v4775_v50 = vld [vmem:[%s4541_s24 + $0x18] sm:$0xff] }
  0x2c   : > { %784 = vmatpush.msra.mxu2 %v249_v57  ;;  %571 = vmatmul.f32.vlgmr.msra.gmra.mxu0 %v4573_v58  ;;  %v4789_v54 = vld [vmem:[%s4541_s24 + $0x100] sm:$0xff]  ;;  %v4792_v55 = vld [vmem:[%s4541_s24 + $0x28] sm:$0xff]  ;;  %v4808_v61 = vld [vmem:[%s4541_s24 + $0x110] sm:$0xff] }
  0x2d   : > { %785 = vmatmul.f32.vlgmr.msra.gmra.mxu2 %v4573_v58  ;;  %3962 = vmatmul.msk.f32.gmra.mxu3 %vm464_vm0, %v4576_v59 }
  0x2e   : > { %884 = vmatpush.msrb.mxu2 %v4499_v2  ;;  %670 = vmatpush.msrb.mxu0 %v4506_v9  ;;  %v4611_v2 = vld [vmem:[%s4541_s24 + $0x128] sm:$0xff] }
  0x2f   : > { %988 = vmatpush.msrb.mxu1 %v340_v60  ;;  %v4640_v9 = vld [vmem:[%s4541_s24 + $0x148] sm:$0xff]  ;;  %1103 = vmatpush.msrb.mxu3 %v412_v11  ;;  %v441_v11 = vld [vmem:[#allocation3 + $0x608] sm:$0xff] }
  0x30   : > { %3932 = vmatmul.msk.f32.gmra.mxu1 %vm464_vm0, %v4576_v59  ;;  %885 = vmatpush.msrb.mxu2 %v4501_v5  ;;  %v4624_v5 = vld [vmem:[%s4541_s24 + $0x30] sm:$0xff] }
  0x31   : > { %671 = vmatpush.msrb.mxu0 %v4515_v12  ;;  %989 = vmatpush.msrb.mxu1 %v331_v0  ;;  %v4649_v12 = vld [vmem:[%s4541_s24 + $0x50] sm:$0xff]  ;;  %v4811_v0 = vld [vmem:[%s4541_s24 + $0x38] sm:$0xff] }
  0x32   : > { %886 = vmatpush.msrb.mxu2 %v4504_v8  ;;  %v4637_v8 = vld [vmem:[%s4541_s24 + $0x40] sm:$0xff] }
  0x33   : > { %672 = vmatpush.msrb.mxu0 %v4521_v16  ;;  %990 = vmatpush.msrb.mxu1 %v322_v3  ;;  %v4664_v16 = vld [vmem:[%s4541_s24 + $0x168] sm:$0xff] }
  0x34   : > { %574 = vmatmul.f32.gmra.mxu0 %v4588_v62  ;;  %887 = vmatpush.msrb.mxu2 %v4517_v13  ;;  %v4652_v13 = vld [vmem:[%s4541_s24 + $0x158] sm:$0xff] }
  0x35   : > { %788 = vmatmul.f32.gmra.mxu2 %v4588_v62  ;;  %3963 = vmatmul.msk.f32.gmra.mxu3 %vm464_vm0, %v4592_v63 }
  0x36   : > { %673 = vmatpush.msrb.mxu0 %v4525_v18  ;;  %888 = vmatpush.msrb.mxu2 %v4523_v17  ;;  %v286_v17 = vld [vmem:[#allocation3 + $0x130] sm:$0xff]  ;;  %v403_v18 = vld [vmem:[#allocation3 + $0x4d8] sm:$0xff] }
  0x37   : > { %991 = vmatpush.msrb.mxu1 %v313_v7  ;;  %1104 = vmatpush.msrb.mxu3 %v403_v18 }
  0x38   : > { %3933 = vmatmul.msk.f32.gmra.mxu1 %vm464_vm0, %v4592_v63  ;;  %674 = vmatpush.msrb.mxu0 %v4532_v22  ;;  %v4685_v22 = vld [vmem:[%s4541_s24 + $0x80] sm:$0xff] }
  0x39   : > { %889 = vmatpush.msrb.mxu2 %v4530_v21  ;;  %992 = vmatpush.msrb.mxu1 %v304_v10  ;;  %v277_v21 = vld [vmem:[#allocation3 + $0xe8] sm:$0xff] }
  0x3a   : > { %675 = vmatpush.msrb.mxu0 %v4543_v26  ;;  %v4697_v26 = vld [vmem:[%s4541_s24 + $0x90] sm:$0xff]  ;;  %v4827_v10 = vld [vmem:[%s4541_s24 + $0x120] sm:$0xff] }
  0x3b   : > { %890 = vmatpush.msrb.mxu2 %v4536_v25  ;;  %993 = vmatpush.msrb.mxu1 %v295_v14  ;;  %v394_v25 = vld [vmem:[#allocation3 + $0x490] sm:$0xff] }
  0x3c   : > { %577 = vmatmul.f32.gmra.mxu0 %v4607_v1  ;;  %1105 = vmatpush.msrb.mxu3 %v394_v25  ;;  %v4830_v14 = vld [vmem:[%s4541_s24 + $0x48] sm:$0xff]  ;;  %v4846_v25 = vld [vmem:[%s4541_s24 + $0x130] sm:$0xff] }
  0x3d   : > { %791 = vmatmul.f32.gmra.mxu2 %v4607_v1  ;;  %3964 = vmatmul.msk.f32.gmra.mxu3 %vm464_vm0, %v4611_v2 }
  0x3e   : > { %676 = vmatpush.msrb.mxu0 %v4549_v30  ;;  %891 = vmatpush.msrb.mxu2 %v4547_v29  ;;  %v4709_v29 = vld [vmem:[%s4541_s24 + $0xa0] sm:$0xff]  ;;  %v4712_v30 = vld [vmem:[%s4541_s24 + $0x1a8] sm:$0xff] }
  0x3f   : > { %994 = vmatpush.msrb.mxu1 %v286_v17  ;;  %6303 = vst [vmem:[#allocation6_spill] sm:$0xff] %v4712_v30  ;;  %1526 = vmatpush.msra.mxu3 %v459_v33 }
  0x40   : > { %3934 = vmatmul.msk.f32.gmra.mxu1 %vm464_vm0, %v4611_v2  ;;  %677 = vmatpush.msrb.mxu0 %v4558_v36  ;;  %v387_v36 = vld [vmem:[#allocation3 + $0x458] sm:$0xff] }
  0x41   : > { %995 = vmatpush.msrb.mxu1 %v277_v21  ;;  %1527 = vmatpush.msra.mxu3 %v450_v45  ;;  %v351_v21 = vld [vmem:[#allocation3 + $0x338] sm:$0xff]  ;;  %v4868_v45 = vld [vmem:[%s4541_s24 + $0x68] sm:$0xff] }
  0x43   : > { %996 = vmatpush.msrb.mxu1 %v268_v24  ;;  %1528 = vmatpush.msra.mxu3 %v441_v11 }
  0x44   : > { %580 = vmatmul.f32.gmra.mxu0 %v4624_v5 }
  0x45   : > { %794 = vmatmul.f32.gmra.mxu2 %v4624_v5  ;;  %3965 = vmatmul.msk.f32.gmra.mxu3 %vm464_vm0, %v4628_v6 }
  0x46   : > { %997 = vmatpush.msrb.mxu1 %v259_v28  ;;  %v4849_v28 = vld [vmem:[%s4541_s24 + $0x58] sm:$0xff] }
  0x48   : > { %3935 = vmatmul.msk.f32.gmra.mxu1 %vm464_vm0, %v4628_v6 }
  0x49   : > { %998 = vmatpush.msrb.mxu1 %v250_v32 }
  0x4b   : > { %1411 = vmatpush.msra.mxu1 %v387_v36 }
  0x4c   : > { %583 = vmatmul.f32.gmra.mxu0 %v4637_v8 }
  0x4d   : > { %797 = vmatmul.f32.gmra.mxu2 %v4637_v8  ;;  %3966 = vmatmul.msk.f32.gmra.mxu3 %vm464_vm0, %v4640_v9 }
  0x4e   : > { %1412 = vmatpush.msra.mxu1 %v378_v40  ;;  %v4865_v40 = vld [vmem:[%s4541_s24 + $0x140] sm:$0xff] }
  0x50   : > { %3936 = vmatmul.msk.f32.gmra.mxu1 %vm464_vm0, %v4640_v9 }
  0x51   : > { %1413 = vmatpush.msra.mxu1 %v369_v49 }
  0x54   : > { %586 = vmatmul.f32.gmra.mxu0 %v4649_v12 }
  0x55   : > { %800 = vmatmul.f32.gmra.mxu2 %v4649_v12  ;;  %3967 = vmatmul.msk.f32.gmra.mxu3 %vm464_vm0, %v4652_v13 }
  0x58   : > { %3937 = vmatmul.msk.f32.gmra.mxu1 %vm464_vm0, %v4652_v13 }
  0x5c   : > { %589 = vmatmul.f32.gmra.mxu0 %v4661_v15 }
  0x5d   : > { %803 = vmatmul.f32.gmra.mxu2 %v4661_v15  ;;  %3968 = vmatmul.msk.f32.gmra.mxu3 %vm464_vm0, %v4664_v16 }
  0x60   : > { %3938 = vmatmul.msk.f32.gmra.mxu1 %vm464_vm0, %v4664_v16 }
  0x64   : > { %592 = vmatmul.f32.gmra.mxu0 %v4673_v19 }
  0x65   : > { %806 = vmatmul.f32.gmra.mxu2 %v4673_v19  ;;  %3969 = vmatmul.msk.f32.gmra.mxu3 %vm464_vm0, %v4676_v20 }
  0x68   : > { %3939 = vmatmul.msk.f32.gmra.mxu1 %vm464_vm0, %v4676_v20 }
  0x6c   : > { %595 = vmatmul.f32.gmra.mxu0 %v4685_v22 }
  0x6d   : > { %809 = vmatmul.f32.gmra.mxu2 %v4685_v22  ;;  %3970 = vmatmul.msk.f32.gmra.mxu3 %vm464_vm0, %v4688_v23 }
  0x70   : > { %3940 = vmatmul.msk.f32.gmra.mxu1 %vm464_vm0, %v4688_v23 }
  0x74   : > { %598 = vmatmul.f32.gmra.mxu0 %v4697_v26 }
  0x75   : > { %812 = vmatmul.f32.gmra.mxu2 %v4697_v26  ;;  %3971 = vmatmul.msk.f32.gmra.mxu3 %vm464_vm0, %v4700_v27 }
  0x78   : > { %3941 = vmatmul.msk.f32.gmra.mxu1 %vm464_vm0, %v4700_v27 }
  0x7c   : > { %601 = vmatmul.f32.gmra.mxu0 %v4709_v29 }
  0x7d   : > { %815 = vmatmul.f32.gmra.mxu2 %v4709_v29  ;;  %3972 = vmatmul.msk.f32.gmra.mxu3 %vm464_vm0, %v4712_v30 }
  0x80   : > { %3942 = vmatmul.msk.f32.gmra.mxu1 %vm464_vm0, %v4712_v30  ;;  %v4958_v30 = vld [vmem:[%s4541_s24 + $0x190] sm:$0xff] }
  0x81   : > { %6329 = vst [vmem:[#allocation32_spill] sm:$0xff] %v4958_v30 }
  0x84   : > { %604 = vmatmul.f32.gmra.mxu0 %v4721_v34 }
  0x85   : > { %818 = vmatmul.f32.gmra.mxu2 %v4721_v34  ;;  %3973 = vmatmul.msk.f32.gmra.mxu3 %vm464_vm0, %v4724_v35 }
  0x88   : > { %3943 = vmatmul.msk.f32.gmra.mxu1 %vm464_vm0, %v4724_v35 }
  0x8c   : > { %607 = vmatmul.f32.gmra.mxu0 %v4733_v37 }
  0x8d   : > { %821 = vmatmul.f32.gmra.mxu2 %v4733_v37  ;;  %3974 = vmatmul.msk.f32.gmra.mxu3 %vm464_vm0, %v4736_v38 }
  0x90   : > { %3944 = vmatmul.msk.f32.gmra.mxu1 %vm464_vm0, %v4736_v38  ;;  %v324_v38 = vld [vmem:[#allocation3 + $0x260] sm:$0xff] }
  0x94   : > { %610 = vmatmul.f32.gmra.mxu0 %v4745_v39 }
  0x95   : > { %824 = vmatmul.f32.gmra.mxu2 %v4745_v39  ;;  %3975 = vmatmul.msk.f32.gmra.mxu3 %vm464_vm0, %v4748_v41 }
  0x98   : > { %3945 = vmatmul.msk.f32.gmra.mxu1 %vm464_vm0, %v4748_v41  ;;  %v4944_v41 = vld [vmem:[%s4541_s24 + $0xa8] sm:$0xff] }
  0x99   : > { %6325 = vst [vmem:[#allocation28_spill] sm:$0xff] %v4944_v41 }
  0x9c   : > { %613 = vmatmul.f32.gmra.mxu0 %v4757_v42 }
  0x9d   : > { %827 = vmatmul.f32.gmra.mxu2 %v4757_v42  ;;  %3976 = vmatmul.msk.f32.vlgmr.msrb.gmra.mxu3 %vm464_vm0, %v4760_v43  ;;  %v4766_v44 = vpop.f32.mrf.mxu1 }
  0xa0   : > { %v4768_v47 = vpop.f32.mrf.mxu3  ;;  %999 = vmatmul.f32.vlgmr.msrb.gmra.mxu1 %v4573_v58 }
  0xa4   : > { %616 = vmatmul.f32.gmra.mxu0 %v4772_v48 }
  0xa5   : > { %830 = vmatmul.f32.gmra.mxu2 %v4772_v48  ;;  %3977 = vmatmul.msk.f32.gmra.mxu3 %vm464_vm0, %v4775_v50  ;;  %v4781_v51 = vpop.f32.mrf.mxu1 }
  0xa8   : > { %v4783_v52 = vpop.f32.mrf.mxu3  ;;  %1002 = vmatmul.f32.gmra.mxu1 %v4588_v62  ;;  %v360_v62 = vld [vmem:[#allocation3 + $0x380] sm:$0xff] }
  0xa9   : > { %v4786_v53 = vpop.f32.mrf.mxu0  ;;  %1414 = vmatpush.msra.mxu1 %v360_v62 }
  0xaa   : > { %6307 = vst [vmem:[#allocation10_spill] sm:$0xff] %v4786_v53 }
  0xab   : > { %1415 = vmatpush.msra.mxu1 %v351_v21 }
  0xac   : > { %619 = vmatmul.f32.gmra.mxu0 %v4789_v54 }
  0xad   : > { %833 = vmatmul.f32.gmra.mxu2 %v4789_v54  ;;  %3978 = vmatmul.msk.f32.gmra.mxu3 %vm464_vm0, %v4792_v55  ;;  %v4798_v56 = vpop.f32.mrf.mxu1 }
  0xb0   : > { %v4800_v57 = vpop.f32.mrf.mxu2  ;;  %v4802_v58 = vpop.f32.mrf.mxu3  ;;  %1005 = vmatmul.f32.gmra.mxu1 %v4607_v1 }
  0xb1   : > { %6308 = vst [vmem:[#allocation11_spill] sm:$0xff] %v4800_v57  ;;  %v4805_v60 = vpop.f32.mrf.mxu0  ;;  %v4925_v57 = vld [vmem:[%s4541_s24 + $0x98] sm:$0xff] }
  0xb2   : > { %6309 = vst [vmem:[#allocation12_spill] sm:$0xff] %v4805_v60  ;;  %v4922_v60 = vld [vmem:[%s4541_s24 + $0x170] sm:$0xff] }
  0xb4   : > { %622 = vmatmul.f32.gmra.mxu0 %v4808_v61 }
  0xb5   : > { %836 = vmatmul.f32.gmra.mxu2 %v4808_v61  ;;  %3979 = vmatmul.msk.f32.gmra.mxu3 %vm464_vm0, %v4811_v0  ;;  %v4817_v3 = vpop.f32.mrf.mxu1 }
  0xb8   : > { %v4819_v4 = vpop.f32.mrf.mxu2  ;;  %v4821_v1 = vpop.f32.mrf.mxu3  ;;  %1008 = vmatmul.f32.gmra.mxu1 %v4624_v5 }
  0xb9   : > { %6310 = vst [vmem:[#allocation13_spill] sm:$0xff] %v4819_v4  ;;  %v4824_v7 = vpop.f32.mrf.mxu0 }
  0xba   : > { %6311 = vst [vmem:[#allocation14_spill] sm:$0xff] %v4824_v7  ;;  %v4906_v7 = vld [vmem:[%s4541_s24 + $0x88] sm:$0xff] }
  0xbc   : > { %625 = vmatmul.f32.gmra.mxu0 %v4827_v10 }
  0xbd   : > { %839 = vmatmul.f32.gmra.mxu2 %v4827_v10  ;;  %3980 = vmatmul.msk.f32.gmra.mxu3 %vm464_vm0, %v4830_v14  ;;  %v4836_v17 = vpop.f32.mrf.mxu1 }
  0xc0   : > { %v4838_v18 = vpop.f32.mrf.mxu2  ;;  %v4840_v5 = vpop.f32.mrf.mxu3  ;;  %1011 = vmatmul.f32.gmra.mxu1 %v4637_v8 }
  0xc1   : > { %6312 = vst [vmem:[#allocation15_spill] sm:$0xff] %v4838_v18  ;;  %v4843_v24 = vpop.f32.mrf.mxu0  ;;  %v4903_v18 = vld [vmem:[%s4541_s24 + $0x160] sm:$0xff] }
  0xc2   : > { %6313 = vst [vmem:[#allocation16_spill] sm:$0xff] %v4843_v24 }
  0xc4   : > { %628 = vmatmul.f32.gmra.mxu0 %v4846_v25 }
  0xc5   : > { %842 = vmatmul.f32.gmra.mxu2 %v4846_v25  ;;  %3981 = vmatmul.msk.f32.gmra.mxu3 %vm464_vm0, %v4849_v28  ;;  %v4855_v32 = vpop.f32.mrf.mxu1 }
  0xc8   : > { %v4857_v33 = vpop.f32.mrf.mxu2  ;;  %v4859_v8 = vpop.f32.mrf.mxu3  ;;  %1014 = vmatmul.f32.gmra.mxu1 %v4649_v12  ;;  %v342_v12 = vld [vmem:[#allocation3 + $0x2f0] sm:$0xff] }
  0xc9   : > { %6314 = vst [vmem:[#allocation17_spill] sm:$0xff] %v4857_v33  ;;  %v4862_v36 = vpop.f32.mrf.mxu0  ;;  %1416 = vmatpush.msra.mxu1 %v342_v12  ;;  %v4887_v33 = vld [vmem:[%s4541_s24 + $0x78] sm:$0xff] }
  0xca   : > { %6315 = vst [vmem:[#allocation18_spill] sm:$0xff] %v4862_v36  ;;  %v4884_v36 = vld [vmem:[%s4541_s24 + $0x150] sm:$0xff] }
  0xcc   : > { %631 = vmatmul.f32.gmra.mxu0 %v4865_v40 }
  0xcd   : > { %845 = vmatmul.f32.gmra.mxu2 %v4865_v40  ;;  %3982 = vmatmul.msk.f32.gmra.mxu3 %vm464_vm0, %v4868_v45  ;;  %v4874_v49 = vpop.f32.mrf.mxu1 }
  0xd0   : > { %v4876_v62 = vpop.f32.mrf.mxu2  ;;  %v4878_v11 = vpop.f32.mrf.mxu3  ;;  %1017 = vmatmul.f32.gmra.mxu1 %v4661_v15 }
  0xd1   : > { %6316 = vst [vmem:[#allocation19_spill] sm:$0xff] %v4876_v62  ;;  %v4881_v21 = vpop.f32.mrf.mxu0 }
  0xd2   : > { %6317 = vst [vmem:[#allocation20_spill] sm:$0xff] %v4881_v21  ;;  %v432_v21 = vld [vmem:[#allocation3 + $0x5c0] sm:$0xff] }
  0xd3   : > { %1529 = vmatpush.msra.mxu3 %v432_v21 }
  0xd4   : > { %634 = vmatmul.f32.gmra.mxu0 %v4884_v36 }
  0xd5   : > { %848 = vmatmul.f32.gmra.mxu2 %v4884_v36  ;;  %3983 = vmatmul.msk.f32.gmra.mxu3 %vm464_vm0, %v4887_v33  ;;  %v4893_v62 = vpop.f32.mrf.mxu1 }
  0xd8   : > { %v4895_v24 = vpop.f32.mrf.mxu2  ;;  %v4897_v15 = vpop.f32.mrf.mxu3  ;;  %1020 = vmatmul.f32.gmra.mxu1 %v4673_v19  ;;  %v333_v19 = vld [vmem:[#allocation3 + $0x2a8] sm:$0xff] }
  0xd9   : > { %6318 = vst [vmem:[#allocation21_spill] sm:$0xff] %v4895_v24  ;;  %v4900_v12 = vpop.f32.mrf.mxu0  ;;  %1417 = vmatpush.msra.mxu1 %v333_v19 }
  0xda   : > { %6319 = vst [vmem:[#allocation22_spill] sm:$0xff] %v4900_v12 }
  0xdb   : > { %1418 = vmatpush.msra.mxu1 %v324_v38 }
  0xdc   : > { %637 = vmatmul.f32.gmra.mxu0 %v4903_v18 }
  0xdd   : > { %851 = vmatmul.f32.gmra.mxu2 %v4903_v18  ;;  %3984 = vmatmul.msk.f32.gmra.mxu3 %vm464_vm0, %v4906_v7  ;;  %v4912_v24 = vpop.f32.mrf.mxu1 }
  0xe0   : > { %v4914_v4 = vpop.f32.mrf.mxu2  ;;  %v4916_v12 = vpop.f32.mrf.mxu3  ;;  %1023 = vmatmul.f32.gmra.mxu1 %v4685_v22 }
  0xe1   : > { %6320 = vst [vmem:[#allocation23_spill] sm:$0xff] %v4914_v4  ;;  %v4919_v21 = vpop.f32.mrf.mxu0 }
  0xe2   : > { %6321 = vst [vmem:[#allocation24_spill] sm:$0xff] %v4919_v21  ;;  %v4941_v21 = vld [vmem:[%s4541_s24 + $0x180] sm:$0xff] }
  0xe4   : > { %640 = vmatmul.f32.gmra.mxu0 %v4922_v60 }
  0xe5   : > { %854 = vmatmul.f32.gmra.mxu2 %v4922_v60  ;;  %3985 = vmatmul.msk.f32.gmra.mxu3 %vm464_vm0, %v4925_v57  ;;  %v4931_v19 = vpop.f32.mrf.mxu1 }
  0xe8   : > { %v4933_v4 = vpop.f32.mrf.mxu2  ;;  %v4935_v53 = vpop.f32.mrf.mxu3  ;;  %1026 = vmatmul.f32.gmra.mxu1 %v4697_v26 }
  0xe9   : > { %6322 = vst [vmem:[#allocation25_spill] sm:$0xff] %v4933_v4  ;;  %v4938_v22 = vpop.f32.mrf.mxu0 }
  0xea   : > { %6323 = vst [vmem:[#allocation26_spill] sm:$0xff] %v4935_v53  ;;  %v4961_v53 = vld [vmem:[%s4541_s24 + $0xb8] sm:$0xff] }
  0xeb   : > { %6324 = vst [vmem:[#allocation27_spill] sm:$0xff] %v4938_v22 }
  0xec   : > { %643 = vmatmul.f32.gmra.mxu0 %v4941_v21  ;;  %6330 = vst [vmem:[#allocation33_spill] sm:$0xff] %v4961_v53 }
  0xed   : > { %857 = vmatmul.f32.gmra.mxu2 %v4941_v21  ;;  %3986 = vmatmul.msk.f32.gmra.mxu3 %vm464_vm0, %v4944_v41  ;;  %v751_v4 = vpop.f32.mrf.mxu1  ;;  %v4976_v41 = vld [vmem:[%s4541_s24 + $0xc8] sm:$0xff] }
  0xee   : > { %v423_v4 = vld [vmem:[#allocation3 + $0x578] sm:$0xff]  ;;  %6333 = vst [vmem:[#allocation36_spill] sm:$0xff] %v4976_v41 }
  0xef   : > { %1530 = vmatpush.msra.mxu3 %v423_v4  ;;  %v458_v4 = vld [vmem:[#allocation3 + $0x690] sm:$0xff] }
  0xf0   : > { %v4950_v35 = vpop.f32.mrf.mxu2  ;;  %v4952_v26 = vpop.f32.mrf.mxu3  ;;  %1029 = vmatmul.f32.gmra.mxu1 %v4709_v29  ;;  %1312 = vmatpush.msra.mxu2 %v458_v4 }
  0xf1   : > { %6326 = vst [vmem:[#allocation29_spill] sm:$0xff] %v4950_v35  ;;  %v4955_v22 = vpop.f32.mrf.mxu0 }
  0xf2   : > { %6327 = vst [vmem:[#allocation30_spill] sm:$0xff] %v4952_v26 }
  0xf3   : > { %6328 = vst [vmem:[#allocation31_spill] sm:$0xff] %v4955_v22  ;;  %v4973_v22 = vld [vmem:[%s4541_s24 + $0x1a0] sm:$0xff] }
  0xf4   : > { %646 = vmatmul.f32.gmra.mxu0 %v4958_v30 }
  0xf5   : > { %860 = vmatmul.f32.gmra.mxu2 %v4958_v30  ;;  %3987 = vmatmul.msk.f32.gmra.mxu3 %vm464_vm0, %v4961_v53  ;;  %v754_v38 = vpop.f32.mrf.mxu1  ;;  %v4988_v53 = vld [vmem:[%s4541_s24 + $0x1b0] sm:$0xff]  ;;  %v4991_v30 = vld [vmem:[%s4541_s24 + $0xd8] sm:$0xff] }
  0xf6   : > { %6336 = vst [vmem:[#allocation39_spill] sm:$0xff] %v4991_v30 }
  0xf8   : > { %v4967_v35 = vpop.f32.mrf.mxu2  ;;  %v968_v26 = vpop.f32.mrf.mxu3  ;;  %1032 = vmatmul.f32.gmra.mxu1 %v4721_v34 }
  0xf9   : > { %6331 = vst [vmem:[#allocation34_spill] sm:$0xff] %v4967_v35  ;;  %v4970_v29 = vpop.f32.mrf.mxu0  ;;  %v315_v26 = vld [vmem:[#allocation3 + $0x218] sm:$0xff] }
  0xfa   : > { %6332 = vst [vmem:[#allocation35_spill] sm:$0xff] %v4970_v29  ;;  %1419 = vmatpush.msra.mxu1 %v315_v26 }
  0xfc   : > { %649 = vmatmul.f32.gmra.mxu0 %v4973_v22 }
  0xfd   : > { %863 = vmatmul.f32.gmra.mxu2 %v4973_v22  ;;  %3988 = vmatmul.msk.f32.gmra.mxu3 %vm464_vm0, %v4976_v41  ;;  %v757_v38 = vpop.f32.mrf.mxu1  ;;  %v5015_v41 = vld [vmem:[%s4541_s24 + $0x1d0] sm:$0xff] }
 0x100   : > { %v4982_v34 = vpop.f32.mrf.mxu2  ;;  %v971_v29 = vpop.f32.mrf.mxu3  ;;  %1035 = vmatmul.f32.gmra.mxu1 %v4733_v37 }
 0x101   : > { %6334 = vst [vmem:[#allocation37_spill] sm:$0xff] %v4982_v34  ;;  %v4985_v35 = vpop.f32.mrf.mxu0  ;;  %v5003_v29 = vld [vmem:[%s4541_s24 + $0x1c0] sm:$0xff] }
 0x102   : > { %6335 = vst [vmem:[#allocation38_spill] sm:$0xff] %v4985_v35  ;;  %v386_v35 = vld [vmem:[#allocation3 + $0x450] sm:$0xff] }
 0x103   : > { %1197 = vmatpush.msra.mxu0 %v386_v35  ;;  %v414_v35 = vld [vmem:[#allocation3 + $0x530] sm:$0xff] }
 0x104   : > { %652 = vmatmul.f32.gmra.mxu0 %v4988_v53  ;;  %1531 = vmatpush.msra.mxu3 %v414_v35  ;;  %v350_v35 = vld [vmem:[#allocation3 + $0x330] sm:$0xff] }
 0x105   : > { %866 = vmatmul.f32.gmra.mxu2 %v4988_v53  ;;  %3989 = vmatmul.msk.f32.gmra.mxu3 %vm464_vm0, %v4991_v30  ;;  %v760_v38 = vpop.f32.mrf.mxu1  ;;  %v449_v30 = vld [vmem:[#allocation3 + $0x648] sm:$0xff] }
 0x106   : > { %v377_v38 = vld [vmem:[#allocation3 + $0x408] sm:$0xff]  ;;  %1313 = vmatpush.msra.mxu2 %v449_v30  ;;  %v368_v30 = vld [vmem:[#allocation3 + $0x3c0] sm:$0xff] }
 0x107   : > { %1198 = vmatpush.msra.mxu0 %v377_v38 }
 0x108   : > { %v4997_v4 = vpop.f32.mrf.mxu2  ;;  %v974_v26 = vpop.f32.mrf.mxu3  ;;  %1038 = vmatmul.f32.gmra.mxu1 %v4745_v39 }
 0x109   : > { %6337 = vst [vmem:[#allocation40_spill] sm:$0xff] %v4997_v4  ;;  %v5000_v37 = vpop.f32.mrf.mxu0  ;;  %v306_v4 = vld [vmem:[#allocation3 + $0x1d0] sm:$0xff]  ;;  %1199 = vmatpush.msra.mxu0 %v368_v30  ;;  %v297_v30 = vld [vmem:[#allocation3 + $0x188] sm:$0xff] }
 0x10a   : > { %6338 = vst [vmem:[#allocation41_spill] sm:$0xff] %v5000_v37  ;;  %1420 = vmatpush.msra.mxu1 %v306_v4 }
 0x10c   : > { %655 = vmatmul.f32.gmra.mxu0 %v5003_v29  ;;  %1421 = vmatpush.msra.mxu1 %v297_v30 }
 0x10d   : > { %869 = vmatmul.f32.gmra.mxu2 %v5003_v29  ;;  %3990 = vmatmul.msk.f32.gmra.mxu3 %vm464_vm0, %v4553_v31  ;;  %v763_v34 = vpop.f32.mrf.mxu1 }
 0x110   : > { %v5009_v39 = vpop.f32.mrf.mxu2  ;;  %v977_v26 = vpop.f32.mrf.mxu3  ;;  %1041 = vmatmul.f32.gmra.mxu1 %v4757_v42 }
 0x111   : > { %v5012_v37 = vpop.f32.mrf.mxu0  ;;  %v359_v26 = vld [vmem:[#allocation3 + $0x378] sm:$0xff] }
 0x112   : > { %1200 = vmatpush.msra.mxu0 %v359_v26 }
 0x114   : > { %658 = vmatmul.f32.gmra.mxu0 %v5015_v41 }
 0x115   : > { %872 = vmatmul.f32.gmra.mxu2 %v5015_v41  ;;  %3991 = vmatmul.msk.f32.gmra.mxu3 %vm464_vm0, %v4566_v46  ;;  %v766_v31 = vpop.f32.mrf.mxu1 }
 0x116   : > { %v440_v31 = vld [vmem:[#allocation3 + $0x600] sm:$0xff]  ;;  %1201 = vmatpush.msra.mxu0 %v350_v35 }
 0x117   : > { %1314 = vmatpush.msra.mxu2 %v440_v31  ;;  %v431_v31 = vld [vmem:[#allocation3 + $0x5b8] sm:$0xff] }
 0x118   : > { %v5021_v34 = vpop.f32.mrf.mxu2  ;;  %v980_v42 = vpop.f32.mrf.mxu3  ;;  %1044 = vmatmul.f32.gmra.mxu1 %v4772_v48 }
 0x119   : > { %v614_v4 = vpop.f32.mrf.mxu0  ;;  %1315 = vmatpush.msra.mxu2 %v431_v31 }
 0x11a   : > { %v722_v38 = vadd.f32 %v4766_v44, %v614_v4 }
 0x11c   : > { %3916 = vmatmul.msk.f32.vlgmr.msrb.gmra.mxu0 %vm464_vm0, %v4760_v43 }
 0x11d   : > { %3946 = vmatmul.msk.f32.vlgmr.msrb.gmra.mxu2 %vm464_vm0, %v4760_v43  ;;  %3992 = vmatmul.msk.f32.gmra.mxu3 %vm464_vm0, %v4576_v59  ;;  %v1000_v46 = vpop.f32.mrf.mxu1 }
 0x120   : > { %v828_v48 = vpop.f32.mrf.mxu2  ;;  %v1107_v42 = vpop.f32.mrf.mxu3  ;;  %1047 = vmatmul.f32.gmra.mxu1 %v4789_v54  ;;  %v341_v54 = vld [vmem:[#allocation3 + $0x2e8] sm:$0xff] }
 0x121   : > { %v5033_v44 = vadd.f32 %v4768_v47, %v828_v48  ;;  %v1108_v43 = vadd.f32 %v1107_v42, %v1000_v46  ;;  %v617_v4 = vpop.f32.mrf.mxu0  ;;  %1202 = vmatpush.msra.mxu0 %v341_v54 }
 0x122   : > { %v725_v59 = vadd.f32 %v4781_v51, %v617_v4 }
 0x123   : > { %2483 = vst [vmem:[#allocation2 + $0x7f8] sm:$0xff] %v1108_v43  ;;  %v2862_v48 = vrot.slane %v5033_v44, 1  ;;  %v332_v43 = vld [vmem:[#allocation3 + $0x2a0] sm:$0xff] }
 0x124   : > { %3917 = vmatmul.msk.f32.gmra.mxu0 %vm464_vm0, %v4775_v50 }
 0x125   : > { %3947 = vmatmul.msk.f32.gmra.mxu2 %vm464_vm0, %v4775_v50  ;;  %3993 = vmatmul.msk.f32.gmra.mxu3 %vm464_vm0, %v4592_v63  ;;  %v1003_v26 = vpop.f32.mrf.mxu1 }
 0x126   : > { %1203 = vmatpush.msra.mxu0 %v332_v43 }
 0x128   : > { %v831_v47 = vpop.f32.mrf.mxu2  ;;  %v1110_v46 = vpop.f32.mrf.mxu3  ;;  %1050 = vmatmul.f32.gmra.mxu1 %v4808_v61  ;;  %v288_v61 = vld [vmem:[#allocation3 + $0x140] sm:$0xff] }
 0x129   : > { %v939_v51 = vadd.f32 %v4783_v52, %v831_v47  ;;  %v5044_v30 = vadd.f32 %v1110_v46, %v1003_v26  ;;  %v620_v35 = vpop.f32.mrf.mxu0  ;;  %1422 = vmatpush.msra.mxu1 %v288_v61 }
 0x12a   : > { %v728_v50 = vadd.f32 %v4798_v56, %v620_v35  ;;  %v323_v35 = vld [vmem:[#allocation3 + $0x258] sm:$0xff] }
 0x12b   : > { %v2864_v63 = vrot.slane %v939_v51, 1  ;;  %v2984_v46 = vrot.slane %v5044_v30, 2  ;;  %1204 = vmatpush.msra.mxu0 %v323_v35  ;;  %v4288_v30 = vld [vmem:[%s4541_s24 + $0x58] sm:$0xff] }
 0x12c   : > { %3918 = vmatmul.msk.f32.gmra.mxu0 %vm464_vm0, %v4792_v55 }
 0x12d   : > { %v2865_v42 = vsel %vm2834_vm1, %v2862_v48, %v2864_v63  ;;  %3948 = vmatmul.msk.f32.gmra.mxu2 %vm464_vm0, %v4792_v55  ;;  %3994 = vmatmul.msk.f32.gmra.mxu3 %vm464_vm0, %v4611_v2  ;;  %v1006_v52 = vpop.f32.mrf.mxu1 }
 0x12e   : > { %v5057_v56 = vadd.f32 %v2865_v42, %v722_v38 }
 0x130   : > { %v834_v4 = vpop.f32.mrf.mxu2  ;;  %v1113_v26 = vpop.f32.mrf.mxu3  ;;  %1053 = vmatmul.f32.gmra.mxu1 %v4827_v10  ;;  %v405_v10 = vld [vmem:[#allocation3 + $0x4e8] sm:$0xff] }
 0x131   : > { %v942_v54 = vadd.f32 %v4802_v58, %v834_v4  ;;  %v1114_v31 = vadd.f32 %v1113_v26, %v1006_v52  ;;  %v623_v47 = vpop.f32.mrf.mxu0  ;;  %1532 = vmatpush.msra.mxu3 %v405_v10 }
 0x132   : > { %v731_v55 = vadd.f32 %v4817_v3, %v623_v47  ;;  %v422_v3 = vld [vmem:[#allocation3 + $0x570] sm:$0xff] }
 0x133   : > { %v2866_v2 = vrot.slane %v942_v54, 1  ;;  %v2986_v51 = vrot.slane %v1114_v31, 2  ;;  %1316 = vmatpush.msra.mxu2 %v422_v3 }
 0x134   : > { %3919 = vmatmul.msk.f32.gmra.mxu0 %vm464_vm0, %v4811_v0 }
 0x135   : > { %v2867_v38 = vsel %vm2834_vm1, %v2864_v63, %v2866_v2  ;;  %3949 = vmatmul.msk.f32.gmra.mxu2 %vm464_vm0, %v4811_v0  ;;  %3995 = vmatmul.msk.f32.gmra.mxu3 %vm464_vm0, %v4628_v6  ;;  %v1009_v58 = vpop.f32.mrf.mxu1  ;;  %v5073_v42 = vsel %vm2982_vm2, %v2984_v46, %v2986_v51 }
 0x136   : > { %v5075_v52 = vadd.f32 %v2867_v38, %v725_v59  ;;  %v279_v59 = vld [vmem:[#allocation3 + $0xf8] sm:$0xff] }
 0x137   : > { %1423 = vmatpush.msra.mxu1 %v279_v59 }
 0x138   : > { %v837_v63 = vpop.f32.mrf.mxu2  ;;  %v1116_v61 = vpop.f32.mrf.mxu3  ;;  %1056 = vmatmul.f32.gmra.mxu1 %v4846_v25 }
 0x139   : > { %v945_v6 = vadd.f32 %v4821_v1, %v837_v63  ;;  %v1117_v0 = vadd.f32 %v1116_v61, %v1009_v58  ;;  %v626_v43 = vpop.f32.mrf.mxu0  ;;  %v314_v1 = vld [vmem:[#allocation3 + $0x210] sm:$0xff] }
 0x13a   : > { %v734_v4 = vadd.f32 %v4836_v17, %v626_v43  ;;  %1205 = vmatpush.msra.mxu0 %v314_v1 }
 0x13b   : > { %v2868_v26 = vrot.slane %v945_v6, 1  ;;  %v2988_v54 = vrot.slane %v1117_v0, 2 }
 0x13c   : > { %3920 = vmatmul.msk.f32.gmra.mxu0 %vm464_vm0, %v4830_v14 }
 0x13d   : > { %v2869_v31 = vsel %vm2834_vm1, %v2866_v2, %v2868_v26  ;;  %3950 = vmatmul.msk.f32.gmra.mxu2 %vm464_vm0, %v4830_v14  ;;  %3996 = vmatmul.msk.f32.gmra.mxu3 %vm464_vm0, %v4640_v9  ;;  %v1012_v25 = vpop.f32.mrf.mxu1  ;;  %v5088_v47 = vsel %vm2982_vm2, %v2986_v51, %v2988_v54 }
 0x13e   : > { %v5090_v17 = vadd.f32 %v2869_v31, %v728_v50  ;;  %v305_v50 = vld [vmem:[#allocation3 + $0x1c8] sm:$0xff] }
 0x13f   : > { %1206 = vmatpush.msra.mxu0 %v305_v50 }
 0x140   : > { %v840_v38 = vpop.f32.mrf.mxu2  ;;  %v1119_v58 = vpop.f32.mrf.mxu3  ;;  %1059 = vmatmul.f32.gmra.mxu1 %v4865_v40 }
 0x141   : > { %v948_v2 = vadd.f32 %v4840_v5, %v840_v38  ;;  %v1120_v14 = vadd.f32 %v1119_v58, %v1012_v25  ;;  %v629_v10 = vpop.f32.mrf.mxu0  ;;  %v413_v5 = vld [vmem:[#allocation3 + $0x528] sm:$0xff] }
 0x142   : > { %v737_v9 = vadd.f32 %v4855_v32, %v629_v10  ;;  %1317 = vmatpush.msra.mxu2 %v413_v5 }
 0x143   : > { %v2870_v35 = vrot.slane %v948_v2, 1  ;;  %v2990_v3 = vrot.slane %v1120_v14, 2 }
 0x144   : > { %3921 = vmatmul.msk.f32.gmra.mxu0 %vm464_vm0, %v4849_v28 }
 0x145   : > { %v2871_v51 = vsel %vm2834_vm1, %v2868_v26, %v2870_v35  ;;  %3951 = vmatmul.msk.f32.gmra.mxu2 %vm464_vm0, %v4849_v28  ;;  %3997 = vmatmul.msk.f32.gmra.mxu3 %vm464_vm0, %v4652_v13  ;;  %v1015_v40 = vpop.f32.mrf.mxu1  ;;  %v5103_v63 = vsel %vm2982_vm2, %v2988_v54, %v2990_v3 }
 0x146   : > { %v5105_v32 = vadd.f32 %v2871_v51, %v731_v55  ;;  %v270_v55 = vld [vmem:[#allocation3 + $0xb0] sm:$0xff] }
 0x147   : > { %1424 = vmatpush.msra.mxu1 %v270_v55 }
 0x148   : > { %v843_v61 = vpop.f32.mrf.mxu2  ;;  %v1122_v6 = vpop.f32.mrf.mxu3  ;;  %1062 = vmatmul.f32.gmra.mxu1 %v4884_v36 }
 0x149   : > { %v951_v0 = vadd.f32 %v4859_v8, %v843_v61  ;;  %v1123_v28 = vadd.f32 %v1122_v6, %v1015_v40  ;;  %v632_v43 = vpop.f32.mrf.mxu0  ;;  %v296_v8 = vld [vmem:[#allocation3 + $0x180] sm:$0xff]  ;;  %v278_v6 = vld [vmem:[#allocation3 + $0xf0] sm:$0xff] }
 0x14a   : > { %v740_v13 = vadd.f32 %v4874_v49, %v632_v43  ;;  %1207 = vmatpush.msra.mxu0 %v296_v8  ;;  %v396_v61 = vld [vmem:[#allocation3 + $0x4a0] sm:$0xff]  ;;  %v269_v43 = vld [vmem:[#allocation3 + $0xa8] sm:$0xff] }
 0x14b   : > { %v2872_v26 = vrot.slane %v951_v0, 1  ;;  %v2992_v31 = vrot.slane %v1123_v28, 2  ;;  %v261_v0 = vld [vmem:[#allocation3 + $0x68] sm:$0xff]  ;;  %1533 = vmatpush.msra.mxu3 %v396_v61  ;;  %v6343_v61 = vld [vmem:[#allocation30_spill] sm:$0xff] }
 0x14c   : > { %3922 = vmatmul.msk.f32.gmra.mxu0 %vm464_vm0, %v4868_v45  ;;  %1425 = vmatpush.msra.mxu1 %v261_v0 }
 0x14d   : > { %v2873_v54 = vsel %vm2834_vm1, %v2870_v35, %v2872_v26  ;;  %3952 = vmatmul.msk.f32.gmra.mxu2 %vm464_vm0, %v4868_v45  ;;  %3998 = vmatmul.msk.f32.gmra.mxu3 %vm464_vm0, %v4664_v16  ;;  %v1018_v36 = vpop.f32.mrf.mxu1  ;;  %v5118_v25 = vsel %vm2982_vm2, %v2990_v3, %v2992_v31 }
 0x14e   : > { %v5120_v49 = vadd.f32 %v2873_v54, %v734_v4 }
 0x150   : > { %v846_v59 = vpop.f32.mrf.mxu2  ;;  %v1125_v1 = vpop.f32.mrf.mxu3  ;;  %1065 = vmatmul.f32.gmra.mxu1 %v4903_v18 }
 0x151   : > { %v954_v38 = vadd.f32 %v4878_v11, %v846_v59  ;;  %v1126_v45 = vadd.f32 %v1125_v1, %v1018_v36  ;;  %v635_v58 = vpop.f32.mrf.mxu0  ;;  %v252_v1 = vld [vmem:[#allocation3 + $0x20] sm:$0xff] }
 0x152   : > { %v743_v16 = vadd.f32 %v4893_v62, %v635_v58  ;;  %1426 = vmatpush.msra.mxu1 %v252_v1 }
 0x153   : > { %v2874_v2 = vrot.slane %v954_v38, 1  ;;  %v2994_v14 = vrot.slane %v1126_v45, 2 }
 0x154   : > { %3923 = vmatmul.msk.f32.gmra.mxu0 %vm464_vm0, %v4887_v33 }
 0x155   : > { %v2875_v10 = vsel %vm2834_vm1, %v2872_v26, %v2874_v2  ;;  %3953 = vmatmul.msk.f32.gmra.mxu2 %vm464_vm0, %v4887_v33  ;;  %3999 = vmatmul.msk.f32.gmra.mxu3 %vm464_vm0, %v4676_v20  ;;  %v1021_v18 = vpop.f32.mrf.mxu1  ;;  %v5133_v11 = vsel %vm2982_vm2, %v2992_v31, %v2994_v14 }
 0x156   : > { %v5135_v4 = vadd.f32 %v2875_v10, %v737_v9  ;;  %v404_v9 = vld [vmem:[#allocation3 + $0x4e0] sm:$0xff] }
 0x157   : > { %1318 = vmatpush.msra.mxu2 %v404_v9 }
 0x158   : > { %v849_v62 = vpop.f32.mrf.mxu2  ;;  %v1128_v35 = vpop.f32.mrf.mxu3  ;;  %1068 = vmatmul.f32.gmra.mxu1 %v4922_v60 }
 0x159   : > { %v957_v3 = vadd.f32 %v4897_v15, %v849_v62  ;;  %v1129_v51 = vadd.f32 %v1128_v35, %v1021_v18  ;;  %v638_v40 = vpop.f32.mrf.mxu0  ;;  %v287_v15 = vld [vmem:[#allocation3 + $0x138] sm:$0xff]  ;;  %v6341_v35 = vld [vmem:[#allocation28_spill] sm:$0xff] }
 0x15a   : > { %v5140_v50 = vadd.f32 %v4912_v24, %v638_v40  ;;  %1208 = vmatpush.msra.mxu0 %v287_v15  ;;  %v251_v40 = vld [vmem:[#allocation3 + $0x18] sm:$0xff] }
 0x15b   : > { %v2876_v33 = vrot.slane %v957_v3, 1  ;;  %v2996_v5 = vrot.slane %v1129_v51, 2 }
 0x15c   : > { %3924 = vmatmul.msk.f32.gmra.mxu0 %vm464_vm0, %v4906_v7 }
 0x15d   : > { %v2877_v20 = vsel %vm2834_vm1, %v2874_v2, %v2876_v33  ;;  %3954 = vmatmul.msk.f32.gmra.mxu2 %vm464_vm0, %v4906_v7  ;;  %4000 = vmatmul.msk.f32.gmra.mxu3 %vm464_vm0, %v4688_v23  ;;  %v1024_v60 = vpop.f32.mrf.mxu1  ;;  %v5150_v24 = vsel %vm2982_vm2, %v2994_v14, %v2996_v5  ;;  %v395_v7 = vld [vmem:[#allocation3 + $0x498] sm:$0xff]  ;;  %v6339_v2 = vld [vmem:[#allocation32_spill] sm:$0xff]  ;;  %v6340_v14 = vld [vmem:[#allocation26_spill] sm:$0xff] }
 0x15e   : > { %v5152_v28 = vadd.f32 %v2877_v20, %v740_v13  ;;  %1209 = vmatpush.msra.mxu0 %v278_v6  ;;  %1319 = vmatpush.msra.mxu2 %v395_v7 }
 0x160   : > { %v852_v26 = vpop.f32.mrf.mxu2  ;;  %v1131_v31 = vpop.f32.mrf.mxu3  ;;  %1071 = vmatmul.f32.gmra.mxu1 %v4941_v21  ;;  %1210 = vmatpush.msra.mxu0 %v269_v43  ;;  %v260_v21 = vld [vmem:[#allocation3 + $0x60] sm:$0xff] }
 0x161   : > { %v960_v23 = vadd.f32 %v4916_v12, %v852_v26  ;;  %v1132_v54 = vadd.f32 %v1131_v31, %v1024_v60  ;;  %v641_v36 = vpop.f32.mrf.mxu0  ;;  %v6344_v26 = vld [vmem:[#allocation33_spill] sm:$0xff]  ;;  %v6345_v31 = vld [vmem:[#allocation7_spill] sm:$0xff] }
 0x162   : > { %v5157_v55 = vadd.f32 %v4931_v19, %v641_v36  ;;  %1211 = vmatpush.msra.mxu0 %v260_v21 }
 0x163   : > { %v2878_v13 = vrot.slane %v960_v23, 1  ;;  %v2998_v8 = vrot.slane %v1132_v54, 2  ;;  %v388_v23 = vld [vmem:[#allocation3 + $0x460] sm:$0xff]  ;;  %v389_v54 = vld [vmem:[#allocation3 + $0x468] sm:$0xff] }
 0x164   : > { %3925 = vmatmul.msk.f32.gmra.mxu0 %vm464_vm0, %v4925_v57  ;;  %1839 = vmatpush.msrb.mxu1 %v389_v54 }
 0x165   : > { %v2879_v59 = vsel %vm2834_vm1, %v2876_v33, %v2878_v13  ;;  %3955 = vmatmul.msk.f32.gmra.mxu2 %vm464_vm0, %v4925_v57  ;;  %4001 = vmatmul.msk.f32.gmra.mxu3 %vm464_vm0, %v4700_v27  ;;  %v1027_v12 = vpop.f32.mrf.mxu1  ;;  %v5167_v19 = vsel %vm2982_vm2, %v2996_v5, %v2998_v8  ;;  %v460_v33 = vld [vmem:[#allocation3 + $0x6a0] sm:$0xff]  ;;  %v461_v5 = vld [vmem:[#allocation3 + $0x6a8] sm:$0xff] }
 0x166   : > { %v5169_v38 = vadd.f32 %v2879_v59, %v743_v16  ;;  %v6342_v16 = vld [vmem:[#allocation6_spill] sm:$0xff]  ;;  %1212 = vmatpush.msra.mxu0 %v251_v40  ;;  %1740 = vmatpush.msrb.mxu2 %v460_v33 }
 0x167   : > { %1954 = vmatpush.msrb.mxu3 %v461_v5 }
 0x168   : > { %v855_v45 = vpop.f32.mrf.mxu2  ;;  %v1134_v58 = vpop.f32.mrf.mxu3  ;;  %1074 = vmatmul.f32.gmra.mxu1 %v6339_v2  ;;  %1625 = vmatpush.msrb.mxu0 %v388_v23  ;;  %v6347_v2 = vld [vmem:[#allocation8_spill] sm:$0xff] }
 0x169   : > { %v963_v10 = vadd.f32 %v6340_v14, %v855_v45  ;;  %v1135_v57 = vadd.f32 %v1134_v58, %v1027_v12  ;;  %v644_v18 = vpop.f32.mrf.mxu0  ;;  %v6346_v45 = vld [vmem:[#allocation36_spill] sm:$0xff] }
 0x16b   : > { %v2880_v62 = vrot.slane %v963_v10, 1  ;;  %v3000_v27 = vrot.slane %v1135_v57, 2 }
 0x16c   : > { %3926 = vmatmul.msk.f32.gmra.mxu0 %vm464_vm0, %v6341_v35 }
 0x16d   : > { %v2881_v3 = vsel %vm2834_vm1, %v2878_v13, %v2880_v62  ;;  %3956 = vmatmul.msk.f32.gmra.mxu2 %vm464_vm0, %v6341_v35  ;;  %4002 = vmatmul.msk.f32.gmra.mxu3 %vm464_vm0, %v6342_v16  ;;  %v1030_v51 = vpop.f32.mrf.mxu1  ;;  %v5181_v20 = vsel %vm2982_vm2, %v2998_v8, %v3000_v27  ;;  %v6349_v16 = vld [vmem:[#allocation9_spill] sm:$0xff] }
 0x16e   : > { %v5184_v60 = vadd.f32 %v2881_v3, %v5140_v50  ;;  %v6348_v3 = vld [vmem:[#allocation39_spill] sm:$0xff] }
 0x170   : > { %v858_v15 = vpop.f32.mrf.mxu2  ;;  %v1137_v9 = vpop.f32.mrf.mxu3  ;;  %1077 = vmatmul.f32.gmra.mxu1 %v4973_v22 }
 0x171   : > { %v966_v6 = vadd.f32 %v6343_v61, %v858_v15  ;;  %v1138_v0 = vadd.f32 %v1137_v9, %v1030_v51  ;;  %v647_v43 = vpop.f32.mrf.mxu0  ;;  %v379_v9 = vld [vmem:[#allocation3 + $0x418] sm:$0xff]  ;;  %v380_v61 = vld [vmem:[#allocation3 + $0x420] sm:$0xff] }
 0x172   : > { %1840 = vmatpush.msrb.mxu1 %v380_v61  ;;  %1626 = vmatpush.msrb.mxu0 %v379_v9  ;;  %v6352_v61 = vld [vmem:[#allocation12_spill] sm:$0xff] }
 0x173   : > { %2698 = vst [vmem:[#allocation2 + $0x4b0] sm:$0xff] %v966_v6  ;;  %v3002_v7 = vrot.slane %v1138_v0, 2  ;;  %v4277_v6 = vld [vmem:[%s4541_s24] sm:$0xff]  ;;  %v4278_v0 = vld [vmem:[%s4541_s24 + $0x8] sm:$0xff] }
 0x174   : > { %3927 = vmatmul.msk.f32.gmra.mxu0 %vm464_vm0, %v6344_v26 }
 0x175   : > { %3957 = vmatmul.msk.f32.gmra.mxu2 %vm464_vm0, %v6344_v26  ;;  %4003 = vmatmul.msk.f32.gmra.mxu3 %vm464_vm0, %v6345_v31  ;;  %v1033_v50 = vpop.f32.mrf.mxu1  ;;  %v5195_v22 = vsel %vm2982_vm2, %v3000_v27, %v3002_v7  ;;  %v452_v26 = vld [vmem:[#allocation3 + $0x660] sm:$0xff] }
 0x176   : > { %1955 = vmatpush.msrb.mxu3 %v452_v26  ;;  %v361_v26 = vld [vmem:[#allocation3 + $0x388] sm:$0xff] }
 0x178   : > { %v861_v36 = vpop.f32.mrf.mxu2  ;;  %v1140_v13 = vpop.f32.mrf.mxu3  ;;  %1080 = vmatmul.f32.gmra.mxu1 %v4988_v53 }
 0x179   : > { %v1141_v8 = vadd.f32 %v1140_v13, %v1033_v50  ;;  %v650_v59 = vpop.f32.mrf.mxu0  ;;  %v4279_v13 = vld [vmem:[%s4541_s24 + $0x10] sm:$0xff] }
 0x17a   : > { %v2808_v12 = vld [vmem:[#allocation2 + $0x4b0] sm:$0x1] }
 0x17b   : > { %v2882_v21 = vrot.slane %v2808_v12, 1  ;;  %v3004_v1 = vrot.slane %v1141_v8, 2  ;;  %v4280_v8 = vld [vmem:[%s4541_s24 + $0x18] sm:$0xff]  ;;  %v370_v12 = vld [vmem:[#allocation3 + $0x3d0] sm:$0xff] }
 0x17c   : > { %3928 = vmatmul.msk.f32.gmra.mxu0 %vm464_vm0, %v6346_v45 }
 0x17d   : > { %v2883_v58 = vsel %vm2834_vm1, %v2880_v62, %v2882_v21  ;;  %3958 = vmatmul.msk.f32.gmra.mxu2 %vm464_vm0, %v6346_v45  ;;  %4004 = vmatmul.msk.f32.gmra.mxu3 %vm464_vm0, %v6347_v2  ;;  %v1036_v14 = vpop.f32.mrf.mxu1  ;;  %v5206_v10 = vsel %vm2982_vm2, %v3002_v7, %v3004_v1  ;;  %v451_v7 = vld [vmem:[#allocation3 + $0x658] sm:$0xff] }
 0x17e   : > { %v5209_v53 = vadd.f32 %v2883_v58, %v5157_v55  ;;  %1741 = vmatpush.msrb.mxu2 %v451_v7  ;;  %v371_v21 = vld [vmem:[#allocation3 + $0x3d8] sm:$0xff]  ;;  %1627 = vmatpush.msrb.mxu0 %v370_v12  ;;  %v4284_v7 = vld [vmem:[%s4541_s24 + $0x38] sm:$0xff] }
 0x17f   : > { %1841 = vmatpush.msrb.mxu1 %v371_v21 }
 0x180   : > { %v864_v57 = vpop.f32.mrf.mxu2  ;;  %v1143_v18 = vpop.f32.mrf.mxu3  ;;  %1083 = vmatmul.f32.gmra.mxu1 %v5003_v29  ;;  %1628 = vmatpush.msrb.mxu0 %v361_v26  ;;  %v6355_v26 = vld [vmem:[#allocation15_spill] sm:$0xff] }
 0x181   : > { %v1144_v27 = vadd.f32 %v1143_v18, %v1036_v14  ;;  %v653_v62 = vpop.f32.mrf.mxu0  ;;  %v6350_v57 = vld [vmem:[#allocation10_spill] sm:$0xff] }
 0x182   : > { %v4281_v62 = vld [vmem:[%s4541_s24 + $0x20] sm:$0xff] }
 0x183   : > { %v3006_v35 = vrot.slane %v1144_v27, 2 }
 0x184   : > { %3929 = vmatmul.msk.f32.gmra.mxu0 %vm464_vm0, %v6348_v3 }
 0x185   : > { %3959 = vmatmul.msk.f32.gmra.mxu2 %vm464_vm0, %v6348_v3  ;;  %4005 = vmatmul.msk.f32.gmra.mxu3 %vm464_vm0, %v6349_v16  ;;  %v1039_v55 = vpop.f32.mrf.mxu1  ;;  %v5219_v51 = vsel %vm2982_vm2, %v3004_v1, %v3006_v35 }
 0x188   : > { %v867_v40 = vpop.f32.mrf.mxu2  ;;  %v1146_v29 = vpop.f32.mrf.mxu3  ;;  %1086 = vmatmul.f32.gmra.mxu1 %v5015_v41 }
 0x189   : > { %v1147_v33 = vadd.f32 %v1146_v29, %v1039_v55  ;;  %v656_v5 = vpop.f32.mrf.mxu0 }
 0x18b   : > { %v3008_v15 = vrot.slane %v1147_v33, 2  ;;  %v6351_v33 = vld [vmem:[#allocation11_spill] sm:$0xff] }
 0x18c   : > { %1213 = vmatmul.f32.vlgmr.msra.gmra.mxu0 %v4277_v6 }
 0x18d   : > { %4006 = vmatmul.msk.f32.vlgmr.msra.gmra.mxu2 %vm464_vm0, %v4278_v0  ;;  %4036 = vmatmul.msk.f32.vlgmr.msra.gmra.mxu3 %vm464_vm0, %v4278_v0  ;;  %v1042_v43 = vpop.f32.mrf.mxu1  ;;  %v5227_v41 = vsel %vm2982_vm2, %v3006_v35, %v3008_v15  ;;  %v4282_v35 = vld [vmem:[%s4541_s24 + $0x28] sm:$0xff] }
 0x190   : > { %v870_v31 = vpop.f32.mrf.mxu2  ;;  %v1149_v50 = vpop.f32.mrf.mxu3  ;;  %1427 = vmatmul.f32.vlgmr.msra.gmra.mxu1 %v4277_v6 }
 0x191   : > { %v1150_v23 = vadd.f32 %v1149_v50, %v1042_v43  ;;  %v659_v54 = vpop.f32.mrf.mxu0  ;;  %v4283_v43 = vld [vmem:[%s4541_s24 + $0x30] sm:$0xff]  ;;  %v362_v31 = vld [vmem:[#allocation3 + $0x390] sm:$0xff] }
 0x192   : > { %1842 = vmatpush.msrb.mxu1 %v362_v31  ;;  %v2932_v54 = vld [vmem:[#allocation2 + $0x7f8] sm:$0xfc] }
 0x193   : > { %v3010_v36 = vrot.slane %v1150_v23, 2 }
 0x194   : > { %1216 = vmatmul.f32.gmra.mxu0 %v4279_v13 }
 0x195   : > { %4007 = vmatmul.msk.f32.gmra.mxu2 %vm464_vm0, %v4280_v8  ;;  %4037 = vmatmul.msk.f32.gmra.mxu3 %vm464_vm0, %v4280_v8  ;;  %v1045_v59 = vpop.f32.mrf.mxu1  ;;  %v5234_v1 = vsel %vm2982_vm2, %v3008_v15, %v3010_v36  ;;  %v6353_v8 = vld [vmem:[#allocation13_spill] sm:$0xff] }
 0x198   : > { %v873_v45 = vpop.f32.mrf.mxu2  ;;  %v1152_v58 = vpop.f32.mrf.mxu3  ;;  %1430 = vmatmul.f32.gmra.mxu1 %v4279_v13 }
 0x199   : > { %v1153_v2 = vadd.f32 %v1152_v58, %v1045_v59  ;;  %v679_v14 = vpop.f32.mrf.mxu0  ;;  %v6354_v58 = vld [vmem:[#allocation14_spill] sm:$0xff] }
 0x19a   : > { %v680_v18 = vadd.f32 %v679_v14, %v6350_v57  ;;  %v2983_v14 = vrot.slane %v2932_v54, 2  ;;  %v6356_v54 = vld [vmem:[#allocation16_spill] sm:$0xff] }
 0x19b   : > { %v3012_v27 = vrot.slane %v1153_v2, 2 }
 0x19c   : > { %1219 = vmatmul.f32.gmra.mxu0 %v4281_v62 }
 0x19d   : > { %4008 = vmatmul.msk.f32.gmra.mxu2 %vm464_vm0, %v4282_v35  ;;  %4038 = vmatmul.msk.f32.gmra.mxu3 %vm464_vm0, %v4282_v35  ;;  %v1048_v3 = vpop.f32.mrf.mxu1  ;;  %v3013_v16 = vsel %vm2982_vm2, %v3010_v36, %v3012_v27  ;;  %v4285_v35 = vld [vmem:[%s4541_s24 + $0x40] sm:$0xff] }
 0x19e   : > { %v5243_v55 = vadd.f32 %v3013_v16, %v5057_v56 }
 0x1a0   : > { %v893_v40 = vpop.f32.mrf.mxu2  ;;  %v1155_v29 = vpop.f32.mrf.mxu3  ;;  %1433 = vmatmul.f32.gmra.mxu1 %v4281_v62 }
 0x1a1   : > { %v894_v5 = vadd.f32 %v893_v40, %v6351_v33  ;;  %v1156_v15 = vadd.f32 %v1155_v29, %v1048_v3  ;;  %v682_v9 = vpop.f32.mrf.mxu0  ;;  %v4286_v3 = vld [vmem:[%s4541_s24 + $0x48] sm:$0xff]  ;;  %v443_v29 = vld [vmem:[#allocation3 + $0x618] sm:$0xff]  ;;  %v352_v33 = vld [vmem:[#allocation3 + $0x340] sm:$0xff] }
 0x1a2   : > { %v5247_v6 = vadd.f32 %v682_v9, %v6352_v61  ;;  %v442_v40 = vld [vmem:[#allocation3 + $0x610] sm:$0xff]  ;;  %1956 = vmatpush.msrb.mxu3 %v443_v29  ;;  %1629 = vmatpush.msrb.mxu0 %v352_v33  ;;  %v2985_v61 = vsel %vm2982_vm2, %v2983_v14, %v2984_v46  ;;  %v4289_v33 = vld [vmem:[%s4541_s24 + $0x60] sm:$0xff] }
 0x1a3   : > { %2482 = vst [vmem:[#allocation2 + $0x808] sm:$0xff] %v894_v5  ;;  %v3014_v0 = vrot.slane %v1156_v15, 2  ;;  %1742 = vmatpush.msrb.mxu2 %v442_v40 }
 0x1a4   : > { %1222 = vmatmul.f32.gmra.mxu0 %v4283_v43 }
 0x1a5   : > { %4009 = vmatmul.msk.f32.gmra.mxu2 %vm464_vm0, %v4284_v7  ;;  %4039 = vmatmul.msk.f32.gmra.mxu3 %vm464_vm0, %v4284_v7  ;;  %v1051_v56 = vpop.f32.mrf.mxu1  ;;  %v3015_v50 = vsel %vm2982_vm2, %v3012_v27, %v3014_v0 }
 0x1a6   : > { %v5255_v23 = vadd.f32 %v3015_v50, %v5075_v52 }
 0x1a8   : > { %v896_v36 = vpop.f32.mrf.mxu2  ;;  %v1158_v13 = vpop.f32.mrf.mxu3  ;;  %1436 = vmatmul.f32.gmra.mxu1 %v4283_v43 }
 0x1a9   : > { %v897_v59 = vadd.f32 %v896_v36, %v6353_v8  ;;  %v1159_v12 = vadd.f32 %v1158_v13, %v1051_v56  ;;  %v685_v21 = vpop.f32.mrf.mxu0  ;;  %v4287_v13 = vld [vmem:[%s4541_s24 + $0x50] sm:$0xff] }
 0x1aa   : > { %v2784_v45 = vld [vmem:[#allocation2 + $0x808] sm:$0xfe]  ;;  %v5259_v2 = vadd.f32 %v685_v21, %v6354_v58 }
 0x1ab   : > { %v2835_v57 = vrot.slane %v2784_v45, 1  ;;  %v2836_v27 = vrot.slane %v897_v59, 1  ;;  %v3016_v62 = vrot.slane %v1159_v12, 2  ;;  %v353_v59 = vld [vmem:[#allocation3 + $0x348] sm:$0xff] }
 0x1ac   : > { %1225 = vmatmul.f32.gmra.mxu0 %v4285_v35  ;;  %1843 = vmatpush.msrb.mxu1 %v353_v59 }
 0x1ad   : > { %v2837_v52 = vsel %vm2834_vm1, %v2835_v57, %v2836_v27  ;;  %4010 = vmatmul.msk.f32.gmra.mxu2 %vm464_vm0, %v4286_v3  ;;  %4040 = vmatmul.msk.f32.gmra.mxu3 %vm464_vm0, %v4286_v3  ;;  %v1054_v16 = vpop.f32.mrf.mxu1  ;;  %v3017_v5 = vsel %vm2982_vm2, %v3014_v0, %v3016_v62 }
 0x1ae   : > { %v2908_v15 = vadd.f32 %v2837_v52, %v680_v18  ;;  %v5268_v9 = vadd.f32 %v3017_v5, %v5090_v17 }
 0x1b0   : > { %v899_v43 = vpop.f32.mrf.mxu2  ;;  %v1161_v7 = vpop.f32.mrf.mxu3  ;;  %1439 = vmatmul.f32.gmra.mxu1 %v4285_v35  ;;  %v5273_v56 = vadd.f32 %v2985_v61, %v2908_v15 }
 0x1b1   : > { %v900_v0 = vadd.f32 %v899_v43, %v6355_v26  ;;  %v1162_v31 = vadd.f32 %v1161_v7, %v1054_v16  ;;  %v688_v50 = vpop.f32.mrf.mxu0  ;;  %v6358_v16 = vld [vmem:[#allocation18_spill] sm:$0xff] }
 0x1b2   : > { %v689_v18 = vadd.f32 %v688_v50, %v6356_v54 }
 0x1b3   : > { %v2838_v36 = vrot.slane %v900_v0, 1  ;;  %v3018_v17 = vrot.slane %v1162_v31, 2  ;;  %v6359_v31 = vld [vmem:[#allocation19_spill] sm:$0xff] }
 0x1b4   : > { %1228 = vmatmul.f32.gmra.mxu0 %v4287_v13 }
 0x1b5   : > { %v2839_v8 = vsel %vm2834_vm1, %v2836_v27, %v2838_v36  ;;  %4011 = vmatmul.msk.f32.gmra.mxu2 %vm464_vm0, %v4288_v30  ;;  %4041 = vmatmul.msk.f32.gmra.mxu3 %vm464_vm0, %v4288_v30  ;;  %v1057_v46 = vpop.f32.mrf.mxu1  ;;  %v3019_v12 = vsel %vm2982_vm2, %v3016_v62, %v3018_v17  ;;  %v6357_v27 = vld [vmem:[#allocation17_spill] sm:$0xff] }
 0x1b6   : > { %v2909_v21 = vadd.f32 %v2839_v8, %v5247_v6  ;;  %v5285_v45 = vadd.f32 %v3019_v12, %v5105_v32  ;;  %v4290_v32 = vld [vmem:[%s4541_s24 + $0x68] sm:$0xff] }
 0x1b8   : > { %v902_v58 = vpop.f32.mrf.mxu2  ;;  %v1164_v14 = vpop.f32.mrf.mxu3  ;;  %1442 = vmatmul.f32.gmra.mxu1 %v4287_v13  ;;  %v5288_v57 = vadd.f32 %v5073_v42, %v2909_v21  ;;  %v343_v42 = vld [vmem:[#allocation3 + $0x2f8] sm:$0xff]  ;;  %v6360_v13 = vld [vmem:[#allocation20_spill] sm:$0xff] }
 0x1b9   : > { %v903_v35 = vadd.f32 %v902_v58, %v6357_v27  ;;  %v1165_v52 = vadd.f32 %v1164_v14, %v1057_v46  ;;  %v691_v3 = vpop.f32.mrf.mxu0  ;;  %1630 = vmatpush.msrb.mxu0 %v343_v42  ;;  %v4291_v46 = vld [vmem:[%s4541_s24 + $0x70] sm:$0xff]  ;;  %v4294_v42 = vld [vmem:[%s4541_s24 + $0x88] sm:$0xff] }
 0x1ba   : > { %v692_v40 = vadd.f32 %v691_v3, %v6358_v16 }
 0x1bb   : > { %v2840_v62 = vrot.slane %v903_v35, 1  ;;  %v3020_v29 = vrot.slane %v1165_v52, 2  ;;  %v6361_v35 = vld [vmem:[#allocation21_spill] sm:$0xff] }
 0x1bc   : > { %1231 = vmatmul.f32.gmra.mxu0 %v4289_v33 }
 0x1bd   : > { %v2841_v6 = vsel %vm2834_vm1, %v2838_v36, %v2840_v62  ;;  %4012 = vmatmul.msk.f32.gmra.mxu2 %vm464_vm0, %v4290_v32  ;;  %4042 = vmatmul.msk.f32.gmra.mxu3 %vm464_vm0, %v4290_v32  ;;  %v1060_v5 = vpop.f32.mrf.mxu1  ;;  %v3021_v15 = vsel %vm2982_vm2, %v3018_v17, %v3020_v29  ;;  %v433_v32 = vld [vmem:[#allocation3 + $0x5c8] sm:$0xff] }
 0x1be   : > { %v2910_v61 = vadd.f32 %v2841_v6, %v5259_v2  ;;  %v5300_v43 = vadd.f32 %v3021_v15, %v5120_v49  ;;  %v4292_v49 = vld [vmem:[%s4541_s24 + $0x78] sm:$0xff]  ;;  %v434_v15 = vld [vmem:[#allocation3 + $0x5d0] sm:$0xff]  ;;  %1743 = vmatpush.msrb.mxu2 %v433_v32 }
 0x1bf   : > { %1957 = vmatpush.msrb.mxu3 %v434_v15  ;;  %v4298_v15 = vld [vmem:[%s4541_s24 + $0xa8] sm:$0xff] }
 0x1c0   : > { %v905_v7 = vpop.f32.mrf.mxu2  ;;  %v1167_v26 = vpop.f32.mrf.mxu3  ;;  %1445 = vmatmul.f32.gmra.mxu1 %v4289_v33  ;;  %v5303_v0 = vadd.f32 %v5088_v47, %v2910_v61  ;;  %v334_v61 = vld [vmem:[#allocation3 + $0x2b0] sm:$0xff] }
 0x1c1   : > { %v906_v50 = vadd.f32 %v905_v7, %v6359_v31  ;;  %v1168_v54 = vadd.f32 %v1167_v26, %v1060_v5  ;;  %v694_v36 = vpop.f32.mrf.mxu0  ;;  %v335_v26 = vld [vmem:[#allocation3 + $0x2b8] sm:$0xff]  ;;  %1631 = vmatpush.msrb.mxu0 %v334_v61  ;;  %v325_v61 = vld [vmem:[#allocation3 + $0x268] sm:$0xff] }
 0x1c2   : > { %v695_v8 = vadd.f32 %v694_v36, %v6360_v13 }
 0x1c3   : > { %v2842_v17 = vrot.slane %v906_v50, 1  ;;  %v3022_v30 = vrot.slane %v1168_v54, 2  ;;  %1632 = vmatpush.msrb.mxu0 %v325_v61 }
 0x1c4   : > { %1234 = vmatmul.f32.gmra.mxu0 %v4291_v46 }
 0x1c5   : > { %v2843_v2 = vsel %vm2834_vm1, %v2840_v62, %v2842_v17  ;;  %4013 = vmatmul.msk.f32.gmra.mxu2 %vm464_vm0, %v4292_v49  ;;  %4043 = vmatmul.msk.f32.gmra.mxu3 %vm464_vm0, %v4292_v49  ;;  %v1063_v47 = vpop.f32.mrf.mxu1  ;;  %v3023_v59 = vsel %vm2982_vm2, %v3020_v29, %v3022_v30  ;;  %v6362_v62 = vld [vmem:[#allocation22_spill] sm:$0xff]  ;;  %v6364_v49 = vld [vmem:[#allocation24_spill] sm:$0xff] }
 0x1c6   : > { %v2911_v12 = vadd.f32 %v2843_v2, %v689_v18  ;;  %v5314_v21 = vadd.f32 %v3023_v59, %v5135_v4  ;;  %v4293_v18 = vld [vmem:[%s4541_s24 + $0x80] sm:$0xff]  ;;  %v344_v4 = vld [vmem:[#allocation3 + $0x300] sm:$0xff] }
 0x1c7   : > { %1844 = vmatpush.msrb.mxu1 %v344_v4 }
 0x1c8   : > { %v908_v58 = vpop.f32.mrf.mxu2  ;;  %v1170_v14 = vpop.f32.mrf.mxu3  ;;  %1448 = vmatmul.f32.gmra.mxu1 %v4291_v46  ;;  %v5317_v27 = vadd.f32 %v5103_v63, %v2911_v12 }
 0x1c9   : > { %v909_v52 = vadd.f32 %v908_v58, %v6361_v35  ;;  %v1171_v3 = vadd.f32 %v1170_v14, %v1063_v47  ;;  %v697_v16 = vpop.f32.mrf.mxu0  ;;  %1845 = vmatpush.msrb.mxu1 %v335_v26  ;;  %v4296_v58 = vld [vmem:[%s4541_s24 + $0x98] sm:$0xff] }
 0x1ca   : > { %v5321_v33 = vadd.f32 %v697_v16, %v6362_v62 }
 0x1cb   : > { %v2844_v6 = vrot.slane %v909_v52, 1  ;;  %v3024_v29 = vrot.slane %v1171_v3, 2 }
 0x1cc   : > { %1237 = vmatmul.f32.gmra.mxu0 %v4293_v18 }
 0x1cd   : > { %v2845_v5 = vsel %vm2834_vm1, %v2842_v17, %v2844_v6  ;;  %4014 = vmatmul.msk.f32.gmra.mxu2 %vm464_vm0, %v4294_v42  ;;  %4044 = vmatmul.msk.f32.gmra.mxu3 %vm464_vm0, %v4294_v42  ;;  %v1066_v63 = vpop.f32.mrf.mxu1  ;;  %v3025_v7 = vsel %vm2982_vm2, %v3022_v30, %v3024_v29  ;;  %v6363_v17 = vld [vmem:[#allocation23_spill] sm:$0xff] }
 0x1ce   : > { %v2912_v31 = vadd.f32 %v2845_v5, %v692_v40  ;;  %v5330_v50 = vadd.f32 %v3025_v7, %v5152_v28  ;;  %v4295_v28 = vld [vmem:[%s4541_s24 + $0x90] sm:$0xff]  ;;  %v6366_v5 = vld [vmem:[#allocation27_spill] sm:$0xff]  ;;  %v326_v7 = vld [vmem:[#allocation3 + $0x270] sm:$0xff] }
 0x1cf   : > { %1846 = vmatpush.msrb.mxu1 %v326_v7  ;;  %v4302_v7 = vld [vmem:[%s4541_s24 + $0xc8] sm:$0xff] }
 0x1d0   : > { %v911_v54 = vpop.f32.mrf.mxu2  ;;  %v1173_v36 = vpop.f32.mrf.mxu3  ;;  %1451 = vmatmul.f32.gmra.mxu1 %v4293_v18  ;;  %v5333_v13 = vadd.f32 %v5118_v25, %v2912_v31 }
 0x1d1   : > { %v912_v46 = vadd.f32 %v911_v54, %v6363_v17  ;;  %v1174_v30 = vadd.f32 %v1173_v36, %v1066_v63  ;;  %v700_v2 = vpop.f32.mrf.mxu0 }
 0x1d2   : > { %v701_v47 = vadd.f32 %v700_v2, %v6364_v49 }
 0x1d3   : > { %v2846_v40 = vrot.slane %v912_v46, 1  ;;  %v3026_v59 = vrot.slane %v1174_v30, 2  ;;  %v6367_v30 = vld [vmem:[#allocation29_spill] sm:$0xff] }
 0x1d4   : > { %1240 = vmatmul.f32.gmra.mxu0 %v4295_v28 }
 0x1d5   : > { %v2847_v12 = vsel %vm2834_vm1, %v2844_v6, %v2846_v40  ;;  %4015 = vmatmul.msk.f32.gmra.mxu2 %vm464_vm0, %v4296_v58  ;;  %4045 = vmatmul.msk.f32.gmra.mxu3 %vm464_vm0, %v4296_v58  ;;  %v1069_v25 = vpop.f32.mrf.mxu1  ;;  %v3027_v14 = vsel %vm2982_vm2, %v3024_v29, %v3026_v59  ;;  %v6365_v6 = vld [vmem:[#allocation25_spill] sm:$0xff] }
 0x1d6   : > { %v2913_v35 = vadd.f32 %v2847_v12, %v695_v8  ;;  %v5344_v52 = vadd.f32 %v3027_v14, %v5169_v38  ;;  %v4297_v8 = vld [vmem:[%s4541_s24 + $0xa0] sm:$0xff]  ;;  %v4299_v58 = vld [vmem:[%s4541_s24 + $0xb0] sm:$0xff] }
 0x1d7   : > { %v425_v14 = vld [vmem:[#allocation3 + $0x588] sm:$0xff] }
 0x1d8   : > { %v914_v3 = vpop.f32.mrf.mxu2  ;;  %v1176_v16 = vpop.f32.mrf.mxu3  ;;  %1454 = vmatmul.f32.gmra.mxu1 %v4295_v28  ;;  %v5347_v62 = vadd.f32 %v5133_v11, %v2913_v35  ;;  %v6368_v28 = vld [vmem:[#allocation31_spill] sm:$0xff]  ;;  %1958 = vmatpush.msrb.mxu3 %v425_v14 }
 0x1d9   : > { %v915_v18 = vadd.f32 %v914_v3, %v6365_v6  ;;  %v5350_v4 = vadd.f32 %v1176_v16, %v1069_v25  ;;  %v703_v32 = vpop.f32.mrf.mxu0 }
 0x1da   : > { %v704_v42 = vadd.f32 %v703_v32, %v6366_v5  ;;  %v6370_v5 = vld [vmem:[#allocation35_spill] sm:$0xff] }
 0x1db   : > { %v2848_v63 = vrot.slane %v915_v18, 1  ;;  %v3028_v29 = vrot.slane %v5350_v4, 2  ;;  %v6369_v18 = vld [vmem:[#allocation34_spill] sm:$0xff] }
 0x1dc   : > { %1243 = vmatmul.f32.gmra.mxu0 %v4297_v8 }
 0x1dd   : > { %v2849_v38 = vsel %vm2834_vm1, %v2846_v40, %v2848_v63  ;;  %4016 = vmatmul.msk.f32.gmra.mxu2 %vm464_vm0, %v4298_v15  ;;  %4046 = vmatmul.msk.f32.gmra.mxu3 %vm464_vm0, %v4298_v15  ;;  %v1072_v11 = vpop.f32.mrf.mxu1  ;;  %v3029_v26 = vsel %vm2982_vm2, %v3026_v59, %v3028_v29 }
 0x1de   : > { %v2914_v31 = vadd.f32 %v2849_v38, %v5321_v33  ;;  %v5362_v54 = vadd.f32 %v3029_v26, %v5184_v60  ;;  %v4300_v60 = vld [vmem:[%s4541_s24 + $0xb8] sm:$0xff]  ;;  %v317_v26 = vld [vmem:[#allocation3 + $0x228] sm:$0xff] }
 0x1df   : > { %1847 = vmatpush.msrb.mxu1 %v317_v26 }
 0x1e0   : > { %v917_v36 = vpop.f32.mrf.mxu2  ;;  %v1179_v17 = vpop.f32.mrf.mxu3  ;;  %1457 = vmatmul.f32.gmra.mxu1 %v4297_v8  ;;  %v5365_v46 = vadd.f32 %v5150_v24, %v2914_v31  ;;  %v424_v24 = vld [vmem:[#allocation3 + $0x580] sm:$0xff] }
 0x1e1   : > { %v918_v2 = vadd.f32 %v917_v36, %v6367_v30  ;;  %v1180_v49 = vadd.f32 %v1179_v17, %v1072_v11  ;;  %v706_v40 = vpop.f32.mrf.mxu0  ;;  %1744 = vmatpush.msrb.mxu2 %v424_v24  ;;  %v4301_v11 = vld [vmem:[%s4541_s24 + $0xc0] sm:$0xff] }
 0x1e2   : > { %v707_v59 = vadd.f32 %v706_v40, %v6368_v28  ;;  %v6371_v40 = vld [vmem:[#allocation37_spill] sm:$0xff] }
 0x1e3   : > { %v2850_v12 = vrot.slane %v918_v2, 1  ;;  %2699 = vst [vmem:[#allocation2 + $0x668] sm:$0xff] %v1180_v49 }
 0x1e4   : > { %1246 = vmatmul.f32.gmra.mxu0 %v4299_v58 }
 0x1e5   : > { %v2851_v33 = vsel %vm2834_vm1, %v2848_v63, %v2850_v12  ;;  %4017 = vmatmul.msk.f32.gmra.mxu2 %vm464_vm0, %v4300_v60  ;;  %4047 = vmatmul.msk.f32.gmra.mxu3 %vm464_vm0, %v4300_v60  ;;  %v1075_v25 = vpop.f32.mrf.mxu1 }
 0x1e6   : > { %v2915_v35 = vadd.f32 %v2851_v33, %v701_v47  ;;  %v4303_v25 = vld [vmem:[%s4541_s24 + $0xd0] sm:$0xff] }
 0x1e8   : > { %v920_v3 = vpop.f32.mrf.mxu2  ;;  %v1182_v16 = vpop.f32.mrf.mxu3  ;;  %1460 = vmatmul.f32.gmra.mxu1 %v4299_v58  ;;  %v5375_v6 = vadd.f32 %v5167_v19, %v2915_v35  ;;  %v316_v19 = vld [vmem:[#allocation3 + $0x220] sm:$0xff] }
 0x1e9   : > { %v921_v4 = vadd.f32 %v920_v3, %v6369_v18  ;;  %v709_v32 = vpop.f32.mrf.mxu0  ;;  %1633 = vmatpush.msrb.mxu0 %v316_v19  ;;  %v6372_v58 = vld [vmem:[#allocation38_spill] sm:$0xff]  ;;  %v6373_v3 = vld [vmem:[#allocation40_spill] sm:$0xff] }
 0x1ea   : > { %v710_v63 = vadd.f32 %v709_v32, %v6370_v5  ;;  %v2956_v8 = vld [vmem:[#allocation2 + $0x668] sm:$0x3] }
 0x1eb   : > { %v2852_v38 = vrot.slane %v921_v4, 1  ;;  %v3030_v15 = vrot.slane %v2956_v8, 2  ;;  %v6374_v4 = vld [vmem:[#allocation41_spill] sm:$0xff]  ;;  %v4305_v8 = vld [vmem:[%s4541_s24 + $0xe0] sm:$0xff] }
 0x1ec   : > { %1249 = vmatmul.f32.gmra.mxu0 %v4301_v11 }
 0x1ed   : > { %v2853_v61 = vsel %vm2834_vm1, %v2850_v12, %v2852_v38  ;;  %4018 = vmatmul.msk.f32.gmra.mxu2 %vm464_vm0, %v4302_v7  ;;  %4048 = vmatmul.msk.f32.gmra.mxu3 %vm464_vm0, %v4302_v7  ;;  %v1078_v47 = vpop.f32.mrf.mxu1  ;;  %v3031_v36 = vsel %vm2982_vm2, %v3028_v29, %v3030_v15  ;;  %v4304_v29 = vld [vmem:[%s4541_s24 + $0xd8] sm:$0xff] }
 0x1ee   : > { %v2916_v31 = vadd.f32 %v2853_v61, %v704_v42  ;;  %v5386_v17 = vadd.f32 %v3031_v36, %v5209_v53  ;;  %v308_v15 = vld [vmem:[#allocation3 + $0x1e0] sm:$0xff] }
 0x1ef   : > { %1848 = vmatpush.msrb.mxu1 %v308_v15 }
 0x1f0   : > { %v923_v30 = vpop.f32.mrf.mxu2  ;;  %v1185_v2 = vpop.f32.mrf.mxu3  ;;  %1463 = vmatmul.f32.gmra.mxu1 %v4301_v11  ;;  %v5389_v49 = vadd.f32 %v5181_v20, %v2916_v31 }
 0x1f1   : > { %v924_v28 = vadd.f32 %v923_v30, %v6371_v40  ;;  %v712_v12 = vpop.f32.mrf.mxu0  ;;  %v4307_v2 = vld [vmem:[%s4541_s24 + $0xf0] sm:$0xff] }
 0x1f2   : > { %v713_v33 = vadd.f32 %v712_v12, %v6372_v58  ;;  %v415_v40 = vld [vmem:[#allocation3 + $0x538] sm:$0xff]  ;;  %v4308_v12 = vld [vmem:[%s4541_s24 + $0xf8] sm:$0xff] }
 0x1f3   : > { %v2854_v60 = vrot.slane %v924_v28, 1  ;;  %1745 = vmatpush.msrb.mxu2 %v415_v40  ;;  %v406_v40 = vld [vmem:[#allocation3 + $0x4f0] sm:$0xff] }
 0x1f4   : > { %1252 = vmatmul.f32.gmra.mxu0 %v4303_v25 }
 0x1f5   : > { %v2855_v42 = vsel %vm2834_vm1, %v2852_v38, %v2854_v60  ;;  %4019 = vmatmul.msk.f32.gmra.mxu2 %vm464_vm0, %v4304_v29  ;;  %4049 = vmatmul.msk.f32.gmra.mxu3 %vm464_vm0, %v4304_v29  ;;  %v1081_v53 = vpop.f32.mrf.mxu1  ;;  %v307_v38 = vld [vmem:[#allocation3 + $0x1d8] sm:$0xff] }
 0x1f6   : > { %v2917_v20 = vadd.f32 %v2855_v42, %v707_v59  ;;  %v4306_v59 = vld [vmem:[%s4541_s24 + $0xe8] sm:$0xff]  ;;  %1634 = vmatpush.msrb.mxu0 %v307_v38  ;;  %v4309_v53 = vld [vmem:[%s4541_s24 + $0x100] sm:$0xff]  ;;  %v4312_v38 = vld [vmem:[%s4541_s24 + $0x118] sm:$0xff]  ;;  %1746 = vmatpush.msrb.mxu2 %v406_v40 }
 0x1f8   : > { %v926_v24 = vpop.f32.mrf.mxu2  ;;  %v1188_v14 = vpop.f32.mrf.mxu3  ;;  %1466 = vmatmul.f32.gmra.mxu1 %v4303_v25  ;;  %v5399_v35 = vadd.f32 %v5195_v22, %v2917_v20 }
 0x1f9   : > { %v927_v16 = vadd.f32 %v926_v24, %v6373_v3  ;;  %v715_v18 = vpop.f32.mrf.mxu0 }
 0x1fa   : > { %v716_v32 = vadd.f32 %v715_v18, %v6374_v4 }
 0x1fb   : > { %v2856_v5 = vrot.slane %v927_v16, 1 }
 0x1fc   : > { %1255 = vmatmul.f32.gmra.mxu0 %v4305_v8 }
 0x1fd   : > { %v2857_v11 = vsel %vm2834_vm1, %v2854_v60, %v2856_v5  ;;  %4020 = vmatmul.msk.f32.gmra.mxu2 %vm464_vm0, %v4306_v59  ;;  %4050 = vmatmul.msk.f32.gmra.mxu3 %vm464_vm0, %v4306_v59  ;;  %v1084_v22 = vpop.f32.mrf.mxu1  ;;  %v4314_v59 = vld [vmem:[%s4541_s24 + $0x128] sm:$0xff] }
 0x1fe   : > { %v2918_v61 = vadd.f32 %v2857_v11, %v710_v63  ;;  %v4313_v11 = vld [vmem:[%s4541_s24 + $0x120] sm:$0xff] }
 0x200   : > { %v929_v7 = vpop.f32.mrf.mxu2  ;;  %v1191_v47 = vpop.f32.mrf.mxu3  ;;  %1469 = vmatmul.f32.gmra.mxu1 %v4305_v8  ;;  %v5409_v19 = vadd.f32 %v5206_v10, %v2918_v61  ;;  %v416_v10 = vld [vmem:[#allocation3 + $0x540] sm:$0xff]  ;;  %v299_v8 = vld [vmem:[#allocation3 + $0x198] sm:$0xff]  ;;  %v289_v61 = vld [vmem:[#allocation3 + $0x148] sm:$0xff] }
 0x201   : > { %v930_v26 = vadd.f32 %v929_v7, %v5009_v39  ;;  %v718_v31 = vpop.f32.mrf.mxu0  ;;  %1959 = vmatpush.msrb.mxu3 %v416_v10  ;;  %1849 = vmatpush.msrb.mxu1 %v299_v8  ;;  %v290_v7 = vld [vmem:[#allocation3 + $0x150] sm:$0xff] }
 0x202   : > { %v719_v36 = vadd.f32 %v718_v31, %v5012_v37 }
 0x203   : > { %v2858_v30 = vrot.slane %v930_v26, 1  ;;  %1850 = vmatpush.msrb.mxu1 %v290_v7  ;;  %v4321_v7 = vld [vmem:[%s4541_s24 + $0x160] sm:$0xff] }
 0x204   : > { %1258 = vmatmul.f32.gmra.mxu0 %v4307_v2 }
 0x205   : > { %v2859_v28 = vsel %vm2834_vm1, %v2856_v5, %v2858_v30  ;;  %4021 = vmatmul.msk.f32.gmra.mxu2 %vm464_vm0, %v4308_v12  ;;  %4051 = vmatmul.msk.f32.gmra.mxu3 %vm464_vm0, %v4308_v12  ;;  %v1087_v63 = vpop.f32.mrf.mxu1  ;;  %v298_v5 = vld [vmem:[#allocation3 + $0x190] sm:$0xff]  ;;  %v280_v12 = vld [vmem:[#allocation3 + $0x100] sm:$0xff] }
 0x206   : > { %v2919_v39 = vadd.f32 %v2859_v28, %v713_v33  ;;  %v4310_v33 = vld [vmem:[%s4541_s24 + $0x108] sm:$0xff]  ;;  %1635 = vmatpush.msrb.mxu0 %v298_v5  ;;  %v407_v28 = vld [vmem:[#allocation3 + $0x4f8] sm:$0xff]  ;;  %v4320_v5 = vld [vmem:[%s4541_s24 + $0x158] sm:$0xff] }
 0x207   : > { %1960 = vmatpush.msrb.mxu3 %v407_v28 }
 0x208   : > { %v932_v58 = vpop.f32.mrf.mxu2  ;;  %v1194_v37 = vpop.f32.mrf.mxu3  ;;  %1472 = vmatmul.f32.gmra.mxu1 %v4307_v2  ;;  %v5419_v60 = vadd.f32 %v5219_v51, %v2919_v39  ;;  %1636 = vmatpush.msrb.mxu0 %v289_v61 }
 0x209   : > { %v933_v25 = vadd.f32 %v932_v58, %v5021_v34  ;;  %v1214_v42 = vpop.f32.mrf.mxu0 }
 0x20a   : > { %1637 = vmatpush.msrb.mxu0 %v280_v12  ;;  %v4317_v42 = vld [vmem:[%s4541_s24 + $0x140] sm:$0xff] }
 0x20b   : > { %v2860_v29 = vrot.slane %v933_v25, 1 }
 0x20c   : > { %1261 = vmatmul.f32.gmra.mxu0 %v4309_v53 }
 0x20d   : > { %v2861_v20 = vsel %vm2834_vm1, %v2858_v30, %v2860_v29  ;;  %v2863_v24 = vsel %vm2834_vm1, %v2860_v29, %v2862_v48  ;;  %4022 = vmatmul.msk.f32.gmra.mxu2 %vm464_vm0, %v4310_v33  ;;  %4052 = vmatmul.msk.f32.gmra.mxu3 %vm464_vm0, %v4310_v33  ;;  %v1428_v51 = vpop.f32.mrf.mxu1  ;;  %v4311_v48 = vld [vmem:[%s4541_s24 + $0x110] sm:$0xff]  ;;  %v4316_v30 = vld [vmem:[%s4541_s24 + $0x138] sm:$0xff]  ;;  %v4318_v29 = vld [vmem:[%s4541_s24 + $0x148] sm:$0xff] }
 0x20e   : > { %v2920_v14 = vadd.f32 %v2861_v20, %v716_v32  ;;  %v2921_v34 = vadd.f32 %v2863_v24, %v719_v36  ;;  %v4315_v36 = vld [vmem:[%s4541_s24 + $0x130] sm:$0xff]  ;;  %v281_v20 = vld [vmem:[#allocation3 + $0x108] sm:$0xff] }
 0x20f   : > { %1851 = vmatpush.msrb.mxu1 %v281_v20  ;;  %v263_v20 = vld [vmem:[#allocation3 + $0x78] sm:$0xff] }
 0x210   : > { %v1321_v3 = vpop.f32.mrf.mxu2  ;;  %v1535_v16 = vpop.f32.mrf.mxu3  ;;  %1475 = vmatmul.f32.gmra.mxu1 %v4309_v53  ;;  %v5431_v18 = vadd.f32 %v5227_v41, %v2920_v14  ;;  %v5434_v4 = vadd.f32 %v5234_v1, %v2921_v34 }
 0x211   : > { %v1217_v44 = vpop.f32.mrf.mxu0 }
 0x214   : > { %1264 = vmatmul.f32.gmra.mxu0 %v4311_v48 }
 0x215   : > { %4023 = vmatmul.msk.f32.gmra.mxu2 %vm464_vm0, %v4312_v38  ;;  %4053 = vmatmul.msk.f32.gmra.mxu3 %vm464_vm0, %v4312_v38  ;;  %v1431_v32 = vpop.f32.mrf.mxu1  ;;  %v271_v38 = vld [vmem:[#allocation3 + $0xb8] sm:$0xff] }
 0x216   : > { %1638 = vmatpush.msrb.mxu0 %v271_v38 }
 0x218   : > { %v1324_v41 = vpop.f32.mrf.mxu2  ;;  %v1538_v15 = vpop.f32.mrf.mxu3  ;;  %1478 = vmatmul.f32.gmra.mxu1 %v4311_v48  ;;  %v4319_v48 = vld [vmem:[%s4541_s24 + $0x150] sm:$0xff] }
 0x219   : > { %v1220_v1 = vpop.f32.mrf.mxu0 }
 0x21c   : > { %1267 = vmatmul.f32.gmra.mxu0 %v4313_v11 }
 0x21d   : > { %4024 = vmatmul.msk.f32.gmra.mxu2 %vm464_vm0, %v4314_v59  ;;  %4054 = vmatmul.msk.f32.gmra.mxu3 %vm464_vm0, %v4314_v59  ;;  %v1434_v22 = vpop.f32.mrf.mxu1 }
 0x220   : > { %v1327_v47 = vpop.f32.mrf.mxu2  ;;  %v1541_v26 = vpop.f32.mrf.mxu3  ;;  %1481 = vmatmul.f32.gmra.mxu1 %v4313_v11 }
 0x221   : > { %v1223_v31 = vpop.f32.mrf.mxu0  ;;  %v4322_v26 = vld [vmem:[%s4541_s24 + $0x168] sm:$0xff] }
 0x224   : > { %1270 = vmatmul.f32.gmra.mxu0 %v4315_v36 }
 0x225   : > { %4025 = vmatmul.msk.f32.gmra.mxu2 %vm464_vm0, %v4316_v30  ;;  %4055 = vmatmul.msk.f32.gmra.mxu3 %vm464_vm0, %v4316_v30  ;;  %v1437_v2 = vpop.f32.mrf.mxu1  ;;  %v397_v30 = vld [vmem:[#allocation3 + $0x4a8] sm:$0xff] }
 0x226   : > { %1747 = vmatpush.msrb.mxu2 %v397_v30 }
 0x228   : > { %v1330_v63 = vpop.f32.mrf.mxu2  ;;  %v1544_v10 = vpop.f32.mrf.mxu3  ;;  %1484 = vmatmul.f32.gmra.mxu1 %v4315_v36  ;;  %v272_v36 = vld [vmem:[#allocation3 + $0xc0] sm:$0xff] }
 0x229   : > { %v1331_v39 = vadd.f32 %v1330_v63, %v1223_v31  ;;  %v1545_v58 = vadd.f32 %v1544_v10, %v1437_v2  ;;  %v1226_v37 = vpop.f32.mrf.mxu0  ;;  %1852 = vmatpush.msrb.mxu1 %v272_v36 }
 0x22b   : > { %v3104_v25 = vadd.f32 %v5273_v56, %v1331_v39  ;;  %2512 = vst [vmem:[#allocation2 + $0x6e8] sm:$0xff] %v1545_v58  ;;  %v4323_v58 = vld [vmem:[%s4541_s24 + $0x170] sm:$0xff]  ;;  %1853 = vmatpush.msrb.mxu1 %v263_v20 }
 0x22c   : > { %1273 = vmatmul.f32.gmra.mxu0 %v4317_v42 }
 0x22d   : > { %4026 = vmatmul.msk.f32.gmra.mxu2 %vm464_vm0, %v4318_v29  ;;  %4056 = vmatmul.msk.f32.gmra.mxu3 %vm464_vm0, %v4318_v29  ;;  %v1440_v53 = vpop.f32.mrf.mxu1  ;;  %v398_v29 = vld [vmem:[#allocation3 + $0x4b0] sm:$0xff] }
 0x22e   : > { %1961 = vmatpush.msrb.mxu3 %v398_v29 }
 0x230   : > { %v1333_v24 = vpop.f32.mrf.mxu2  ;;  %v1547_v33 = vpop.f32.mrf.mxu3  ;;  %1487 = vmatmul.f32.gmra.mxu1 %v4317_v42 }
 0x231   : > { %v1334_v51 = vadd.f32 %v1333_v24, %v1226_v37  ;;  %v1548_v14 = vadd.f32 %v1547_v33, %v1440_v53  ;;  %v1229_v34 = vpop.f32.mrf.mxu0  ;;  %v262_v53 = vld [vmem:[#allocation3 + $0x70] sm:$0xff] }
 0x232   : > { %v3128_v56 = vld [vmem:[#allocation2 + $0x6e8] sm:$0xfe]  ;;  %1639 = vmatpush.msrb.mxu0 %v262_v53 }
 0x233   : > { %v3105_v3 = vadd.f32 %v5288_v57, %v1334_v51  ;;  %v3179_v16 = vrot.slane %v1548_v14, 1  ;;  %v3178_v44 = vrot.slane %v3128_v56, 1 }
 0x234   : > { %1276 = vmatmul.f32.gmra.mxu0 %v4319_v48 }
 0x235   : > { %4027 = vmatmul.msk.f32.gmra.mxu2 %vm464_vm0, %v4320_v5  ;;  %4057 = vmatmul.msk.f32.gmra.mxu3 %vm464_vm0, %v4320_v5  ;;  %v1443_v8 = vpop.f32.mrf.mxu1  ;;  %v3180_v32 = vsel %vm2834_vm1, %v3178_v44, %v3179_v16 }
 0x236   : > { %v5459_v41 = vadd.f32 %v3180_v32, %v3104_v25  ;;  %v4324_v25 = vld [vmem:[%s4541_s24 + $0x178] sm:$0xff] }
 0x238   : > { %v1336_v15 = vpop.f32.mrf.mxu2  ;;  %v1550_v57 = vpop.f32.mrf.mxu3  ;;  %1490 = vmatmul.f32.gmra.mxu1 %v4319_v48  ;;  %v4326_v48 = vld [vmem:[%s4541_s24 + $0x188] sm:$0xff] }
 0x239   : > { %v1337_v1 = vadd.f32 %v1336_v15, %v1229_v34  ;;  %v1551_v11 = vadd.f32 %v1550_v57, %v1443_v8  ;;  %v1232_v59 = vpop.f32.mrf.mxu0 }
 0x23b   : > { %v3106_v22 = vadd.f32 %v5303_v0, %v1337_v1  ;;  %v3181_v61 = vrot.slane %v1551_v11, 1 }
 0x23c   : > { %1279 = vmatmul.f32.gmra.mxu0 %v4321_v7 }
 0x23d   : > { %v3182_v47 = vsel %vm2834_vm1, %v3179_v16, %v3181_v61  ;;  %4028 = vmatmul.msk.f32.gmra.mxu2 %vm464_vm0, %v4322_v26  ;;  %4058 = vmatmul.msk.f32.gmra.mxu3 %vm464_vm0, %v4322_v26  ;;  %v1446_v31 = vpop.f32.mrf.mxu1  ;;  %v4325_v16 = vld [vmem:[%s4541_s24 + $0x180] sm:$0xff]  ;;  %v254_v26 = vld [vmem:[#allocation3 + $0x30] sm:$0xff] }
 0x23e   : > { %v5467_v2 = vadd.f32 %v3182_v47, %v3105_v3  ;;  %v253_v47 = vld [vmem:[#allocation3 + $0x28] sm:$0xff]  ;;  %1854 = vmatpush.msrb.mxu1 %v254_v26 }
 0x23f   : > { %1640 = vmatpush.msrb.mxu0 %v253_v47 }
 0x240   : > { %v1339_v0 = vpop.f32.mrf.mxu2  ;;  %v1553_v40 = vpop.f32.mrf.mxu3  ;;  %1493 = vmatmul.f32.gmra.mxu1 %v4321_v7 }
 0x241   : > { %v1340_v28 = vadd.f32 %v1339_v0, %v1232_v59  ;;  %v1554_v12 = vadd.f32 %v1553_v40, %v1446_v31  ;;  %v1235_v63 = vpop.f32.mrf.mxu0  ;;  %v4327_v59 = vld [vmem:[%s4541_s24 + $0x190] sm:$0xff] }
 0x243   : > { %v3107_v10 = vadd.f32 %v5317_v27, %v1340_v28  ;;  %v3183_v39 = vrot.slane %v1554_v12, 1 }
 0x244   : > { %1282 = vmatmul.f32.gmra.mxu0 %v4323_v58 }
 0x245   : > { %v3184_v37 = vsel %vm2834_vm1, %v3181_v61, %v3183_v39  ;;  %4029 = vmatmul.msk.f32.gmra.mxu2 %vm464_vm0, %v4324_v25  ;;  %4059 = vmatmul.msk.f32.gmra.mxu3 %vm464_vm0, %v4324_v25  ;;  %v1449_v42 = vpop.f32.mrf.mxu1  ;;  %v4328_v61 = vld [vmem:[%s4541_s24 + $0x198] sm:$0xff]  ;;  %v463_v25 = vld [vmem:[#allocation3 + $0x6b8] sm:$0xff] }
 0x246   : > { %v5475_v24 = vadd.f32 %v3184_v37, %v3106_v22  ;;  %v462_v37 = vld [vmem:[#allocation3 + $0x6b0] sm:$0xff]  ;;  %2382 = vmatpush.msra.mxu3 %v463_v25 }
 0x247   : > { %2168 = vmatpush.msra.mxu2 %v462_v37 }
 0x248   : > { %v1342_v27 = vpop.f32.mrf.mxu2  ;;  %v1556_v33 = vpop.f32.mrf.mxu3  ;;  %1496 = vmatmul.f32.gmra.mxu1 %v4323_v58 }
 0x249   : > { %v1343_v51 = vadd.f32 %v1342_v27, %v1235_v63  ;;  %v1557_v14 = vadd.f32 %v1556_v33, %v1449_v42  ;;  %v1238_v34 = vpop.f32.mrf.mxu0  ;;  %v4329_v63 = vld [vmem:[%s4541_s24 + $0x1a0] sm:$0xff] }
 0x24b   : > { %v3108_v56 = vadd.f32 %v5333_v13, %v1343_v51  ;;  %v3185_v3 = vrot.slane %v1557_v14, 1  ;;  %v4331_v14 = vld [vmem:[%s4541_s24 + $0x1b0] sm:$0xff] }
 0x24c   : > { %1285 = vmatmul.f32.gmra.mxu0 %v4325_v16 }
 0x24d   : > { %v3186_v44 = vsel %vm2834_vm1, %v3183_v39, %v3185_v3  ;;  %4030 = vmatmul.msk.f32.gmra.mxu2 %vm464_vm0, %v4326_v48  ;;  %4060 = vmatmul.msk.f32.gmra.mxu3 %vm464_vm0, %v4326_v48  ;;  %v1452_v5 = vpop.f32.mrf.mxu1  ;;  %v4330_v39 = vld [vmem:[%s4541_s24 + $0x1a8] sm:$0xff] }
 0x24e   : > { %v5483_v8 = vadd.f32 %v3186_v44, %v3107_v10  ;;  %v391_v44 = vld [vmem:[#allocation3 + $0x478] sm:$0xff] }
 0x24f   : > { %2267 = vmatpush.msra.mxu1 %v391_v44 }
 0x250   : > { %v1345_v38 = vpop.f32.mrf.mxu2  ;;  %v1559_v32 = vpop.f32.mrf.mxu3  ;;  %1499 = vmatmul.f32.gmra.mxu1 %v4325_v16  ;;  %v390_v16 = vld [vmem:[#allocation3 + $0x470] sm:$0xff] }
 0x251   : > { %v1346_v15 = vadd.f32 %v1345_v38, %v1238_v34  ;;  %v1560_v13 = vadd.f32 %v1559_v32, %v1452_v5  ;;  %v1241_v57 = vpop.f32.mrf.mxu0  ;;  %2053 = vmatpush.msra.mxu0 %v390_v16 }
 0x253   : > { %v3109_v1 = vadd.f32 %v5347_v62, %v1346_v15  ;;  %v3187_v11 = vrot.slane %v1560_v13, 1 }
 0x254   : > { %1288 = vmatmul.f32.gmra.mxu0 %v4327_v59 }
 0x255   : > { %v3188_v22 = vsel %vm2834_vm1, %v3185_v3, %v3187_v11  ;;  %4031 = vmatmul.msk.f32.gmra.mxu2 %vm464_vm0, %v4328_v61  ;;  %4061 = vmatmul.msk.f32.gmra.mxu3 %vm464_vm0, %v4328_v61  ;;  %v1455_v7 = vpop.f32.mrf.mxu1 }
 0x256   : > { %v5491_v31 = vadd.f32 %v3188_v22, %v3108_v56  ;;  %v4332_v56 = vld [vmem:[%s4541_s24 + $0x1b8] sm:$0xff] }
 0x258   : > { %v1348_v62 = vpop.f32.mrf.mxu2  ;;  %v1562_v36 = vpop.f32.mrf.mxu3  ;;  %1502 = vmatmul.f32.gmra.mxu1 %v4327_v59  ;;  %v4334_v59 = vld [vmem:[%s4541_s24 + $0x1c8] sm:$0xff] }
 0x259   : > { %v1349_v30 = vadd.f32 %v1348_v62, %v1241_v57  ;;  %v1563_v0 = vadd.f32 %v1562_v36, %v1455_v7  ;;  %v1244_v40 = vpop.f32.mrf.mxu0 }
 0x25b   : > { %v3110_v28 = vadd.f32 %v5365_v46, %v1349_v30  ;;  %v3189_v12 = vrot.slane %v1563_v0, 1  ;;  %v4335_v0 = vld [vmem:[%s4541_s24 + $0x1d0] sm:$0xff] }
 0x25c   : > { %1291 = vmatmul.f32.gmra.mxu0 %v4329_v63 }
 0x25d   : > { %v3190_v10 = vsel %vm2834_vm1, %v3187_v11, %v3189_v12  ;;  %4032 = vmatmul.msk.f32.gmra.mxu2 %vm464_vm0, %v4330_v39  ;;  %4062 = vmatmul.msk.f32.gmra.mxu3 %vm464_vm0, %v4330_v39  ;;  %v1458_v58 = vpop.f32.mrf.mxu1 }
 0x25e   : > { %v5499_v42 = vadd.f32 %v3190_v10, %v3109_v1  ;;  %v4333_v1 = vld [vmem:[%s4541_s24 + $0x1c0] sm:$0xff]  ;;  %v382_v10 = vld [vmem:[#allocation3 + $0x430] sm:$0xff] }
 0x25f   : > { %2268 = vmatpush.msra.mxu1 %v382_v10 }
 0x260   : > { %v1351_v46 = vpop.f32.mrf.mxu2  ;;  %v1565_v29 = vpop.f32.mrf.mxu3  ;;  %1505 = vmatmul.f32.gmra.mxu1 %v4329_v63  ;;  %v381_v63 = vld [vmem:[#allocation3 + $0x428] sm:$0xff] }
 0x261   : > { %v1352_v53 = vadd.f32 %v1351_v46, %v1244_v40  ;;  %v1566_v20 = vadd.f32 %v1565_v29, %v1458_v58  ;;  %v1247_v27 = vpop.f32.mrf.mxu0  ;;  %2054 = vmatpush.msra.mxu0 %v381_v63 }
 0x263   : > { %v3111_v33 = vadd.f32 %v5375_v6, %v1352_v53  ;;  %v3191_v51 = vrot.slane %v1566_v20, 1  ;;  %v4337_v20 = vld [vmem:[%s4541_s24] sm:$0xff] }
 0x264   : > { %1294 = vmatmul.f32.gmra.mxu0 %v4331_v14 }
 0x265   : > { %v3192_v34 = vsel %vm2834_vm1, %v3189_v12, %v3191_v51  ;;  %4033 = vmatmul.msk.f32.gmra.mxu2 %vm464_vm0, %v4332_v56  ;;  %4063 = vmatmul.msk.f32.gmra.mxu3 %vm464_vm0, %v4332_v56  ;;  %v1461_v3 = vpop.f32.mrf.mxu1 }
 0x266   : > { %v5507_v48 = vadd.f32 %v3192_v34, %v3110_v28  ;;  %v4336_v28 = vld [vmem:[%s4541_s24 + $0x1d8] sm:$0xff]  ;;  %v454_v34 = vld [vmem:[#allocation3 + $0x670] sm:$0xff] }
 0x267   : > { %2383 = vmatpush.msra.mxu3 %v454_v34 }
 0x268   : > { %v1354_v6 = vpop.f32.mrf.mxu2  ;;  %v1568_v5 = vpop.f32.mrf.mxu3  ;;  %1508 = vmatmul.f32.gmra.mxu1 %v4331_v14  ;;  %v453_v14 = vld [vmem:[#allocation3 + $0x668] sm:$0xff] }
 0x269   : > { %v1355_v38 = vadd.f32 %v1354_v6, %v1247_v27  ;;  %v1569_v32 = vadd.f32 %v1568_v5, %v1461_v3  ;;  %v1250_v15 = vpop.f32.mrf.mxu0  ;;  %2169 = vmatpush.msra.mxu2 %v453_v14 }
 0x26b   : > { %v3112_v13 = vadd.f32 %v5389_v49, %v1355_v38  ;;  %v3193_v57 = vrot.slane %v1569_v32, 1  ;;  %v4339_v32 = vld [vmem:[%s4541_s24 + $0x10] sm:$0xff] }
 0x26c   : > { %1297 = vmatmul.f32.gmra.mxu0 %v4333_v1 }
 0x26d   : > { %v3194_v11 = vsel %vm2834_vm1, %v3191_v51, %v3193_v57  ;;  %4034 = vmatmul.msk.f32.gmra.mxu2 %vm464_vm0, %v4334_v59  ;;  %4064 = vmatmul.msk.f32.gmra.mxu3 %vm464_vm0, %v4334_v59  ;;  %v1464_v22 = vpop.f32.mrf.mxu1 }
 0x26e   : > { %v5515_v61 = vadd.f32 %v3194_v11, %v3111_v33  ;;  %v4338_v33 = vld [vmem:[%s4541_s24 + $0x8] sm:$0xff]  ;;  %v373_v11 = vld [vmem:[#allocation3 + $0x3e8] sm:$0xff] }
 0x26f   : > { %2269 = vmatpush.msra.mxu1 %v373_v11 }
 0x270   : > { %v1357_v7 = vpop.f32.mrf.mxu2  ;;  %v1571_v47 = vpop.f32.mrf.mxu3  ;;  %1511 = vmatmul.f32.gmra.mxu1 %v4333_v1  ;;  %v372_v1 = vld [vmem:[#allocation3 + $0x3e0] sm:$0xff] }
 0x271   : > { %v1358_v26 = vadd.f32 %v1357_v7, %v1250_v15  ;;  %v1572_v49 = vadd.f32 %v1571_v47, %v1464_v22  ;;  %v1253_v62 = vpop.f32.mrf.mxu0  ;;  %2055 = vmatpush.msra.mxu0 %v372_v1 }
 0x273   : > { %v3113_v36 = vadd.f32 %v5399_v35, %v1358_v26  ;;  %v3195_v30 = vrot.slane %v1572_v49, 1 }
 0x274   : > { %1300 = vmatmul.f32.gmra.mxu0 %v4335_v0 }
 0x275   : > { %v3196_v40 = vsel %vm2834_vm1, %v3193_v57, %v3195_v30  ;;  %4035 = vmatmul.msk.f32.gmra.mxu2 %vm464_vm0, %v4336_v28  ;;  %4065 = vmatmul.msk.f32.gmra.mxu3 %vm464_vm0, %v4336_v28  ;;  %v1467_v12 = vpop.f32.mrf.mxu1 }
 0x276   : > { %v5523_v39 = vadd.f32 %v3196_v40, %v3112_v13  ;;  %v4340_v13 = vld [vmem:[%s4541_s24 + $0x18] sm:$0xff] }
 0x278   : > { %v1360_v35 = vpop.f32.mrf.mxu2  ;;  %v1574_v58 = vpop.f32.mrf.mxu3  ;;  %1514 = vmatmul.f32.gmra.mxu1 %v4335_v0  ;;  %v4342_v0 = vld [vmem:[%s4541_s24 + $0x28] sm:$0xff] }
 0x279   : > { %v1361_v37 = vadd.f32 %v1360_v35, %v1253_v62  ;;  %v1575_v25 = vadd.f32 %v1574_v58, %v1467_v12  ;;  %v1256_v46 = vpop.f32.mrf.mxu0 }
 0x27b   : > { %v3114_v29 = vadd.f32 %v5409_v19, %v1361_v37  ;;  %v3197_v53 = vrot.slane %v1575_v25, 1  ;;  %v4343_v25 = vld [vmem:[%s4541_s24 + $0x30] sm:$0xff] }
 0x27c   : > { %1641 = vmatmul.f32.vlgmr.msrb.gmra.mxu0 %v4337_v20 }
 0x27d   : > { %v3198_v27 = vsel %vm2834_vm1, %v3195_v30, %v3197_v53  ;;  %4066 = vmatmul.msk.f32.vlgmr.msrb.gmra.mxu2 %vm464_vm0, %v4338_v33  ;;  %4096 = vmatmul.msk.f32.vlgmr.msrb.gmra.mxu3 %vm464_vm0, %v4338_v33  ;;  %v1470_v51 = vpop.f32.mrf.mxu1 }
 0x27e   : > { %v5531_v56 = vadd.f32 %v3198_v27, %v3113_v36  ;;  %v4341_v36 = vld [vmem:[%s4541_s24 + $0x20] sm:$0xff]  ;;  %v364_v27 = vld [vmem:[#allocation3 + $0x3a0] sm:$0xff] }
 0x27f   : > { %2270 = vmatpush.msra.mxu1 %v364_v27 }
 0x280   : > { %v1363_v19 = vpop.f32.mrf.mxu2  ;;  %v1577_v3 = vpop.f32.mrf.mxu3  ;;  %1855 = vmatmul.f32.vlgmr.msrb.gmra.mxu1 %v4337_v20  ;;  %v363_v20 = vld [vmem:[#allocation3 + $0x398] sm:$0xff] }
 0x281   : > { %v1364_v16 = vadd.f32 %v1363_v19, %v1256_v46  ;;  %v1578_v44 = vadd.f32 %v1577_v3, %v1470_v51  ;;  %v1259_v6 = vpop.f32.mrf.mxu0  ;;  %2056 = vmatpush.msra.mxu0 %v363_v20 }
 0x283   : > { %v3115_v5 = vadd.f32 %v5419_v60, %v1364_v16  ;;  %v3199_v38 = vrot.slane %v1578_v44, 1  ;;  %v4345_v44 = vld [vmem:[%s4541_s24 + $0x40] sm:$0xff] }
 0x284   : > { %1644 = vmatmul.f32.gmra.mxu0 %v4339_v32 }
 0x285   : > { %v3200_v15 = vsel %vm2834_vm1, %v3197_v53, %v3199_v38  ;;  %4067 = vmatmul.msk.f32.gmra.mxu2 %vm464_vm0, %v4340_v13  ;;  %4097 = vmatmul.msk.f32.gmra.mxu3 %vm464_vm0, %v4340_v13  ;;  %v1473_v57 = vpop.f32.mrf.mxu1  ;;  %v354_v13 = vld [vmem:[#allocation3 + $0x350] sm:$0xff] }
 0x286   : > { %v5539_v59 = vadd.f32 %v3200_v15, %v3114_v29  ;;  %v4344_v29 = vld [vmem:[%s4541_s24 + $0x38] sm:$0xff]  ;;  %v445_v15 = vld [vmem:[#allocation3 + $0x628] sm:$0xff]  ;;  %2057 = vmatpush.msra.mxu0 %v354_v13 }
 0x287   : > { %2384 = vmatpush.msra.mxu3 %v445_v15 }
 0x288   : > { %v1366_v60 = vpop.f32.mrf.mxu2  ;;  %v1580_v22 = vpop.f32.mrf.mxu3  ;;  %1858 = vmatmul.f32.gmra.mxu1 %v4339_v32  ;;  %v444_v32 = vld [vmem:[#allocation3 + $0x620] sm:$0xff] }
 0x289   : > { %v1367_v7 = vadd.f32 %v1366_v60, %v1259_v6  ;;  %v1581_v47 = vadd.f32 %v1580_v22, %v1473_v57  ;;  %v1262_v26 = vpop.f32.mrf.mxu0  ;;  %2170 = vmatpush.msra.mxu2 %v444_v32 }
 0x28b   : > { %v3116_v49 = vadd.f32 %v5431_v18, %v1367_v7  ;;  %v3201_v62 = vrot.slane %v1581_v47, 1 }
 0x28c   : > { %1647 = vmatmul.f32.gmra.mxu0 %v4341_v36 }
 0x28d   : > { %v3202_v30 = vsel %vm2834_vm1, %v3199_v38, %v3201_v62  ;;  %4068 = vmatmul.msk.f32.gmra.mxu2 %vm464_vm0, %v4342_v0  ;;  %4098 = vmatmul.msk.f32.gmra.mxu3 %vm464_vm0, %v4342_v0  ;;  %v1476_v40 = vpop.f32.mrf.mxu1 }
 0x28e   : > { %v5547_v28 = vadd.f32 %v3202_v30, %v3115_v5  ;;  %v4346_v5 = vld [vmem:[%s4541_s24 + $0x48] sm:$0xff]  ;;  %v355_v30 = vld [vmem:[#allocation3 + $0x358] sm:$0xff] }
 0x28f   : > { %2271 = vmatpush.msra.mxu1 %v355_v30 }
 0x290   : > { %v1369_v12 = vpop.f32.mrf.mxu2  ;;  %v1583_v63 = vpop.f32.mrf.mxu3  ;;  %1861 = vmatmul.f32.gmra.mxu1 %v4341_v36 }
 0x291   : > { %v1370_v10 = vadd.f32 %v1369_v12, %v1262_v26  ;;  %v1584_v18 = vadd.f32 %v1583_v63, %v1476_v40  ;;  %v1265_v35 = vpop.f32.mrf.mxu0  ;;  %v4347_v26 = vld [vmem:[%s4541_s24 + $0x50] sm:$0xff] }
 0x293   : > { %v3117_v58 = vadd.f32 %v5434_v4, %v1370_v10  ;;  %v3203_v37 = vrot.slane %v1584_v18, 1 }
 0x294   : > { %1650 = vmatmul.f32.gmra.mxu0 %v4343_v25 }
 0x295   : > { %v3204_v46 = vsel %vm2834_vm1, %v3201_v62, %v3203_v37  ;;  %4069 = vmatmul.msk.f32.gmra.mxu2 %vm464_vm0, %v4344_v29  ;;  %4099 = vmatmul.msk.f32.gmra.mxu3 %vm464_vm0, %v4344_v29  ;;  %v1479_v53 = vpop.f32.mrf.mxu1  ;;  %v4348_v62 = vld [vmem:[%s4541_s24 + $0x58] sm:$0xff]  ;;  %v345_v29 = vld [vmem:[#allocation3 + $0x308] sm:$0xff] }
 0x296   : > { %v5555_v33 = vadd.f32 %v3204_v46, %v3116_v49  ;;  %2058 = vmatpush.msra.mxu0 %v345_v29 }
 0x298   : > { %v1372_v4 = vpop.f32.mrf.mxu2  ;;  %v1586_v51 = vpop.f32.mrf.mxu3  ;;  %1864 = vmatmul.f32.gmra.mxu1 %v4343_v25  ;;  %v4350_v25 = vld [vmem:[%s4541_s24 + $0x68] sm:$0xff] }
 0x299   : > { %v1373_v14 = vadd.f32 %v1372_v4, %v1265_v35  ;;  %v1587_v34 = vadd.f32 %v1586_v51, %v1479_v53  ;;  %v1268_v19 = vpop.f32.mrf.mxu0 }
 0x29b   : > { %v3118_v3 = vadd.f32 %v5243_v55, %v1373_v14  ;;  %v3205_v16 = vrot.slane %v1587_v34, 1 }
 0x29c   : > { %1653 = vmatmul.f32.gmra.mxu0 %v4345_v44 }
 0x29d   : > { %v3206_v6 = vsel %vm2834_vm1, %v3203_v37, %v3205_v16  ;;  %4070 = vmatmul.msk.f32.gmra.mxu2 %vm464_vm0, %v4346_v5  ;;  %4100 = vmatmul.msk.f32.gmra.mxu3 %vm464_vm0, %v4346_v5  ;;  %v1482_v38 = vpop.f32.mrf.mxu1  ;;  %v435_v5 = vld [vmem:[#allocation3 + $0x5d8] sm:$0xff] }
 0x29e   : > { %v5563_v57 = vadd.f32 %v3206_v6, %v3117_v58  ;;  %v4349_v58 = vld [vmem:[%s4541_s24 + $0x60] sm:$0xff]  ;;  %v346_v6 = vld [vmem:[#allocation3 + $0x310] sm:$0xff]  ;;  %2171 = vmatpush.msra.mxu2 %v435_v5 }
 0x29f   : > { %2272 = vmatpush.msra.mxu1 %v346_v6 }
 0x2a0   : > { %v1375_v55 = vpop.f32.mrf.mxu2  ;;  %v1589_v1 = vpop.f32.mrf.mxu3  ;;  %1867 = vmatmul.f32.gmra.mxu1 %v4345_v44 }
 0x2a1   : > { %v1376_v11 = vadd.f32 %v1375_v55, %v1268_v19  ;;  %v1590_v60 = vadd.f32 %v1589_v1, %v1482_v38  ;;  %v1271_v22 = vpop.f32.mrf.mxu0  ;;  %v4351_v19 = vld [vmem:[%s4541_s24 + $0x70] sm:$0xff] }
 0x2a3   : > { %v3119_v7 = vadd.f32 %v5255_v23, %v1376_v11  ;;  %v3207_v47 = vrot.slane %v1590_v60, 1  ;;  %v4353_v60 = vld [vmem:[%s4541_s24 + $0x80] sm:$0xff] }
 0x2a4   : > { %1656 = vmatmul.f32.gmra.mxu0 %v4347_v26 }
 0x2a5   : > { %v3208_v49 = vsel %vm2834_vm1, %v3205_v16, %v3207_v47  ;;  %4071 = vmatmul.msk.f32.gmra.mxu2 %vm464_vm0, %v4348_v62  ;;  %4101 = vmatmul.msk.f32.gmra.mxu3 %vm464_vm0, %v4348_v62  ;;  %v1485_v36 = vpop.f32.mrf.mxu1  ;;  %v4352_v16 = vld [vmem:[%s4541_s24 + $0x78] sm:$0xff]  ;;  %v337_v62 = vld [vmem:[#allocation3 + $0x2c8] sm:$0xff] }
 0x2a6   : > { %v5571_v0 = vadd.f32 %v3208_v49, %v3118_v3  ;;  %v336_v49 = vld [vmem:[#allocation3 + $0x2c0] sm:$0xff]  ;;  %2273 = vmatpush.msra.mxu1 %v337_v62 }
 0x2a7   : > { %2059 = vmatpush.msra.mxu0 %v336_v49 }
 0x2a8   : > { %v1378_v40 = vpop.f32.mrf.mxu2  ;;  %v1592_v12 = vpop.f32.mrf.mxu3  ;;  %1870 = vmatmul.f32.gmra.mxu1 %v4347_v26  ;;  %v436_v26 = vld [vmem:[#allocation3 + $0x5e0] sm:$0xff] }
 0x2a9   : > { %v1379_v23 = vadd.f32 %v1378_v40, %v1271_v22  ;;  %v1593_v63 = vadd.f32 %v1592_v12, %v1485_v36  ;;  %v1274_v10 = vpop.f32.mrf.mxu0  ;;  %2385 = vmatpush.msra.mxu3 %v436_v26 }
 0x2ab   : > { %v3120_v18 = vadd.f32 %v5268_v9, %v1379_v23  ;;  %v3209_v35 = vrot.slane %v1593_v63, 1 }
 0x2ac   : > { %1659 = vmatmul.f32.gmra.mxu0 %v4349_v58 }
 0x2ad   : > { %v3210_v37 = vsel %vm2834_vm1, %v3207_v47, %v3209_v35  ;;  %4072 = vmatmul.msk.f32.gmra.mxu2 %vm464_vm0, %v4350_v25  ;;  %4102 = vmatmul.msk.f32.gmra.mxu3 %vm464_vm0, %v4350_v25  ;;  %v1488_v46 = vpop.f32.mrf.mxu1 }
 0x2ae   : > { %v5579_v53 = vadd.f32 %v3210_v37, %v3119_v7  ;;  %v4354_v7 = vld [vmem:[%s4541_s24 + $0x88] sm:$0xff] }
 0x2b0   : > { %v1381_v20 = vpop.f32.mrf.mxu2  ;;  %v1595_v27 = vpop.f32.mrf.mxu3  ;;  %1873 = vmatmul.f32.gmra.mxu1 %v4349_v58  ;;  %v5604_v58 = vld [vmem:[%s4541_s24 + $0x98] sm:$0xff] }
 0x2b1   : > { %v1382_v9 = vadd.f32 %v1381_v20, %v1274_v10  ;;  %v1596_v4 = vadd.f32 %v1595_v27, %v1488_v46  ;;  %v1277_v51 = vpop.f32.mrf.mxu0 }
 0x2b3   : > { %v3121_v14 = vadd.f32 %v5285_v45, %v1382_v9  ;;  %v3211_v34 = vrot.slane %v1596_v4, 1 }
 0x2b4   : > { %1662 = vmatmul.f32.gmra.mxu0 %v4351_v19 }
 0x2b5   : > { %v3212_v3 = vsel %vm2834_vm1, %v3209_v35, %v3211_v34  ;;  %4073 = vmatmul.msk.f32.gmra.mxu2 %vm464_vm0, %v4352_v16  ;;  %4103 = vmatmul.msk.f32.gmra.mxu3 %vm464_vm0, %v4352_v16  ;;  %v1491_v44 = vpop.f32.mrf.mxu1 }
 0x2b6   : > { %v5587_v38 = vadd.f32 %v3212_v3, %v3120_v18  ;;  %v5599_v18 = vld [vmem:[%s4541_s24 + $0x90] sm:$0xff] }
 0x2b8   : > { %v1384_v45 = vpop.f32.mrf.mxu2  ;;  %v1598_v32 = vpop.f32.mrf.mxu3  ;;  %1876 = vmatmul.f32.gmra.mxu1 %v4351_v19 }
 0x2b9   : > { %v1385_v15 = vadd.f32 %v1384_v45, %v1277_v51  ;;  %v1599_v13 = vadd.f32 %v1598_v32, %v1491_v44  ;;  %v1280_v55 = vpop.f32.mrf.mxu0  ;;  %v5615_v51 = vld [vmem:[%s4541_s24 + $0xa0] sm:$0xff] }
 0x2bb   : > { %v3122_v1 = vadd.f32 %v5300_v43, %v1385_v15  ;;  %v3213_v11 = vrot.slane %v1599_v13, 1  ;;  %v5631_v15 = vld [vmem:[%s4541_s24 + $0xb0] sm:$0xff] }
 0x2bc   : > { %1665 = vmatmul.f32.gmra.mxu0 %v4353_v60 }
 0x2bd   : > { %v3214_v22 = vsel %vm2834_vm1, %v3211_v34, %v3213_v11  ;;  %4074 = vmatmul.msk.f32.gmra.mxu2 %vm464_vm0, %v4354_v7  ;;  %4104 = vmatmul.msk.f32.gmra.mxu3 %vm464_vm0, %v4354_v7  ;;  %v1494_v47 = vpop.f32.mrf.mxu1  ;;  %v5620_v34 = vld [vmem:[%s4541_s24 + $0xa8] sm:$0xff]  ;;  %v427_v7 = vld [vmem:[#allocation3 + $0x598] sm:$0xff] }
 0x2be   : > { %v5595_v36 = vadd.f32 %v3214_v22, %v3121_v14  ;;  %2386 = vmatpush.msra.mxu3 %v427_v7 }
 0x2c0   : > { %v1387_v43 = vpop.f32.mrf.mxu2  ;;  %v1601_v30 = vpop.f32.mrf.mxu3  ;;  %1879 = vmatmul.f32.gmra.mxu1 %v4353_v60  ;;  %v328_v60 = vld [vmem:[#allocation3 + $0x280] sm:$0xff] }
 0x2c1   : > { %v1388_v40 = vadd.f32 %v1387_v43, %v1280_v55  ;;  %v1602_v12 = vadd.f32 %v1601_v30, %v1494_v47  ;;  %v1283_v23 = vpop.f32.mrf.mxu0  ;;  %v5636_v55 = vld [vmem:[%s4541_s24 + $0xb8] sm:$0xff]  ;;  %2274 = vmatpush.msra.mxu1 %v328_v60 }
 0x2c3   : > { %v3123_v63 = vadd.f32 %v5314_v21, %v1388_v40  ;;  %v3215_v10 = vrot.slane %v1602_v12, 1  ;;  %v5647_v12 = vld [vmem:[%s4541_s24 + $0xc0] sm:$0xff] }
 0x2c4   : > { %1668 = vmatmul.f32.gmra.mxu0 %v5599_v18 }
 0x2c5   : > { %v3216_v35 = vsel %vm2834_vm1, %v3213_v11, %v3215_v10  ;;  %4075 = vmatmul.msk.f32.gmra.mxu2 %vm464_vm0, %v5604_v58  ;;  %4105 = vmatmul.msk.f32.gmra.mxu3 %vm464_vm0, %v5604_v58  ;;  %v1497_v37 = vpop.f32.mrf.mxu1  ;;  %v327_v11 = vld [vmem:[#allocation3 + $0x278] sm:$0xff] }
 0x2c6   : > { %v5610_v25 = vadd.f32 %v3216_v35, %v3122_v1  ;;  %2060 = vmatpush.msra.mxu0 %v327_v11  ;;  %v5682_v11 = vld [vmem:[%s4541_s24 + $0xe8] sm:$0xff] }
 0x2c8   : > { %v1390_v21 = vpop.f32.mrf.mxu2  ;;  %v1604_v46 = vpop.f32.mrf.mxu3  ;;  %1882 = vmatmul.f32.gmra.mxu1 %v5599_v18 }
 0x2c9   : > { %v1391_v29 = vadd.f32 %v1390_v21, %v1283_v23  ;;  %v1605_v20 = vadd.f32 %v1604_v46, %v1497_v37  ;;  %v1286_v27 = vpop.f32.mrf.mxu0  ;;  %v318_v23 = vld [vmem:[#allocation3 + $0x230] sm:$0xff] }
 0x2ca   : > { %2061 = vmatpush.msra.mxu0 %v318_v23  ;;  %v418_v23 = vld [vmem:[#allocation3 + $0x550] sm:$0xff] }
 0x2cb   : > { %v3124_v9 = vadd.f32 %v5330_v50, %v1391_v29  ;;  %v3217_v4 = vrot.slane %v1605_v20, 1  ;;  %2387 = vmatpush.msra.mxu3 %v418_v23 }
 0x2cc   : > { %1671 = vmatmul.f32.gmra.mxu0 %v5615_v51 }
 0x2cd   : > { %v3218_v14 = vsel %vm2834_vm1, %v3215_v10, %v3217_v4  ;;  %4076 = vmatmul.msk.f32.gmra.mxu2 %vm464_vm0, %v5620_v34  ;;  %4106 = vmatmul.msk.f32.gmra.mxu3 %vm464_vm0, %v5620_v34  ;;  %v1500_v19 = vpop.f32.mrf.mxu1  ;;  %v5652_v10 = vld [vmem:[%s4541_s24 + $0xc8] sm:$0xff] }
 0x2ce   : > { %v5626_v3 = vadd.f32 %v3218_v14, %v3123_v63  ;;  %v5663_v14 = vld [vmem:[%s4541_s24 + $0xd0] sm:$0xff] }
 0x2d0   : > { %v1393_v50 = vpop.f32.mrf.mxu2  ;;  %v1607_v16 = vpop.f32.mrf.mxu3  ;;  %1885 = vmatmul.f32.gmra.mxu1 %v5615_v51 }
 0x2d1   : > { %v1394_v44 = vadd.f32 %v1393_v50, %v1286_v27  ;;  %v1608_v6 = vadd.f32 %v1607_v16, %v1500_v19  ;;  %v1289_v5 = vpop.f32.mrf.mxu0  ;;  %v5668_v50 = vld [vmem:[%s4541_s24 + $0xd8] sm:$0xff] }
 0x2d3   : > { %v3125_v45 = vadd.f32 %v5344_v52, %v1394_v44  ;;  %v3219_v32 = vrot.slane %v1608_v6, 1  ;;  %v426_v52 = vld [vmem:[#allocation3 + $0x590] sm:$0xff] }
 0x2d4   : > { %1674 = vmatmul.f32.gmra.mxu0 %v5631_v15  ;;  %2172 = vmatpush.msra.mxu2 %v426_v52 }
 0x2d5   : > { %v3220_v13 = vsel %vm2834_vm1, %v3217_v4, %v3219_v32  ;;  %4077 = vmatmul.msk.f32.gmra.mxu2 %vm464_vm0, %v5636_v55  ;;  %4107 = vmatmul.msk.f32.gmra.mxu3 %vm464_vm0, %v5636_v55  ;;  %v1503_v1 = vpop.f32.mrf.mxu1 }
 0x2d6   : > { %v5642_v22 = vadd.f32 %v3220_v13, %v3124_v9  ;;  %v309_v13 = vld [vmem:[#allocation3 + $0x1e8] sm:$0xff] }
 0x2d7   : > { %2062 = vmatpush.msra.mxu0 %v309_v13 }
 0x2d8   : > { %v1396_v47 = vpop.f32.mrf.mxu2  ;;  %v1610_v26 = vpop.f32.mrf.mxu3  ;;  %1888 = vmatmul.f32.gmra.mxu1 %v5631_v15 }
 0x2d9   : > { %v1397_v49 = vadd.f32 %v1396_v47, %v1289_v5  ;;  %v1611_v62 = vadd.f32 %v1610_v26, %v1503_v1  ;;  %v1292_v43 = vpop.f32.mrf.mxu0  ;;  %v310_v1 = vld [vmem:[#allocation3 + $0x1f0] sm:$0xff] }
 0x2db   : > { %v3126_v30 = vadd.f32 %v5362_v54, %v1397_v49  ;;  %v3221_v40 = vrot.slane %v1611_v62, 1  ;;  %v319_v54 = vld [vmem:[#allocation3 + $0x238] sm:$0xff] }
 0x2dc   : > { %1677 = vmatmul.f32.gmra.mxu0 %v5647_v12  ;;  %2275 = vmatpush.msra.mxu1 %v319_v54  ;;  %v5690_v62 = vld [vmem:[%s4541_s24 + $0xf0] sm:$0xff] }
 0x2dd   : > { %v3222_v63 = vsel %vm2834_vm1, %v3219_v32, %v3221_v40  ;;  %4078 = vmatmul.msk.f32.gmra.mxu2 %vm464_vm0, %v5652_v10  ;;  %4108 = vmatmul.msk.f32.gmra.mxu3 %vm464_vm0, %v5652_v10  ;;  %v1506_v35 = vpop.f32.mrf.mxu1  ;;  %v5678_v32 = vld [vmem:[%s4541_s24 + $0xe0] sm:$0xff] }
 0x2de   : > { %v5658_v37 = vadd.f32 %v3222_v63, %v3125_v45  ;;  %2276 = vmatpush.msra.mxu1 %v310_v1 }
 0x2e0   : > { %v1399_v21 = vpop.f32.mrf.mxu2  ;;  %v1613_v46 = vpop.f32.mrf.mxu3  ;;  %1891 = vmatmul.f32.gmra.mxu1 %v5647_v12 }
 0x2e1   : > { %v1400_v29 = vadd.f32 %v1399_v21, %v1292_v43  ;;  %v1614_v20 = vadd.f32 %v1613_v46, %v1506_v35  ;;  %v1295_v27 = vpop.f32.mrf.mxu0  ;;  %v417_v43 = vld [vmem:[#allocation3 + $0x548] sm:$0xff] }
 0x2e2   : > { %2173 = vmatpush.msra.mxu2 %v417_v43 }
 0x2e3   : > { %v3127_v9 = vadd.f32 %v5386_v17, %v1400_v29  ;;  %v3223_v4 = vrot.slane %v1614_v20, 1  ;;  %v5705_v29 = vld [vmem:[%s4541_s24 + $0x100] sm:$0xff]  ;;  %v5709_v20 = vld [vmem:[%s4541_s24 + $0x108] sm:$0xff] }
 0x2e4   : > { %1680 = vmatmul.f32.gmra.mxu0 %v5663_v14 }
 0x2e5   : > { %v3224_v19 = vsel %vm2834_vm1, %v3221_v40, %v3223_v4  ;;  %4079 = vmatmul.msk.f32.gmra.mxu2 %vm464_vm0, %v5668_v50  ;;  %4109 = vmatmul.msk.f32.gmra.mxu3 %vm464_vm0, %v5668_v50  ;;  %v1509_v16 = vpop.f32.mrf.mxu1 }
 0x2e6   : > { %v5674_v44 = vadd.f32 %v3224_v19, %v3126_v30  ;;  %v5694_v30 = vld [vmem:[%s4541_s24 + $0xf8] sm:$0xff] }
 0x2e8   : > { %v1402_v17 = vpop.f32.mrf.mxu2  ;;  %v1616_v6 = vpop.f32.mrf.mxu3  ;;  %1894 = vmatmul.f32.gmra.mxu1 %v5663_v14 }
 0x2e9   : > { %v1617_v5 = vadd.f32 %v1616_v6, %v1509_v16  ;;  %v1298_v45 = vpop.f32.mrf.mxu0  ;;  %v300_v16 = vld [vmem:[#allocation3 + $0x1a0] sm:$0xff]  ;;  %v301_v17 = vld [vmem:[#allocation3 + $0x1a8] sm:$0xff]  ;;  %v5717_v6 = vld [vmem:[%s4541_s24 + $0x110] sm:$0xff] }
 0x2ea   : > { %2277 = vmatpush.msra.mxu1 %v301_v17  ;;  %2063 = vmatpush.msra.mxu0 %v300_v16 }
 0x2eb   : > { %2728 = vst [vmem:[#allocation2 + $0x310] sm:$0xff] %v1617_v5  ;;  %v5721_v5 = vld [vmem:[%s4541_s24 + $0x118] sm:$0xff] }
 0x2ec   : > { %1683 = vmatmul.f32.gmra.mxu0 %v5678_v32 }
 0x2ed   : > { %4080 = vmatmul.msk.f32.gmra.mxu2 %vm464_vm0, %v5682_v11  ;;  %4110 = vmatmul.msk.f32.gmra.mxu3 %vm464_vm0, %v5682_v11  ;;  %v1512_v60 = vpop.f32.mrf.mxu1 }
 0x2f0   : > { %v1405_v52 = vpop.f32.mrf.mxu2  ;;  %v1619_v7 = vpop.f32.mrf.mxu3  ;;  %1897 = vmatmul.f32.gmra.mxu1 %v5678_v32 }
 0x2f1   : > { %v1301_v47 = vpop.f32.mrf.mxu0  ;;  %v5729_v52 = vld [vmem:[%s4541_s24 + $0x120] sm:$0xff]  ;;  %v291_v7 = vld [vmem:[#allocation3 + $0x158] sm:$0xff] }
 0x2f2   : > { %v3152_v26 = vld [vmem:[#allocation2 + $0x310] sm:$0x1]  ;;  %v292_v47 = vld [vmem:[#allocation3 + $0x160] sm:$0xff]  ;;  %2064 = vmatpush.msra.mxu0 %v291_v7 }
 0x2f3   : > { %v3225_v49 = vrot.slane %v3152_v26, 1  ;;  %v5733_v26 = vld [vmem:[%s4541_s24 + $0x128] sm:$0xff]  ;;  %2278 = vmatpush.msra.mxu1 %v292_v47 }
 0x2f4   : > { %1686 = vmatmul.f32.gmra.mxu0 %v5690_v62 }
 0x2f5   : > { %4081 = vmatmul.msk.f32.gmra.mxu2 %vm464_vm0, %v5694_v30  ;;  %4111 = vmatmul.msk.f32.gmra.mxu3 %vm464_vm0, %v5694_v30  ;;  %v1515_v40 = vpop.f32.mrf.mxu1  ;;  %v3226_v63 = vsel %vm2834_vm1, %v3223_v4, %v3225_v49 }
 0x2f6   : > { %v5701_v35 = vadd.f32 %v3226_v63, %v3127_v9  ;;  %v5741_v63 = vld [vmem:[%s4541_s24 + $0x130] sm:$0xff] }
 0x2f8   : > { %v1408_v54 = vpop.f32.mrf.mxu2  ;;  %v1622_v21 = vpop.f32.mrf.mxu3  ;;  %1900 = vmatmul.f32.gmra.mxu1 %v5690_v62 }
 0x2f9   : > { %v1642_v46 = vpop.f32.mrf.mxu0  ;;  %v408_v54 = vld [vmem:[#allocation3 + $0x500] sm:$0xff]  ;;  %v409_v21 = vld [vmem:[#allocation3 + $0x508] sm:$0xff] }
 0x2fa   : > { %v5745_v46 = vld [vmem:[%s4541_s24 + $0x138] sm:$0xff]  ;;  %2174 = vmatpush.msra.mxu2 %v408_v54  ;;  %2388 = vmatpush.msra.mxu3 %v409_v21  ;;  %v5765_v21 = vld [vmem:[%s4541_s24 + $0x150] sm:$0xff] }
 0x2fb   : > { %6377 = vst [vmem:[#allocation28_spill] sm:$0xff] %v5765_v21 }
 0x2fc   : > { %1689 = vmatmul.f32.gmra.mxu0 %v5705_v29 }
 0x2fd   : > { %4082 = vmatmul.msk.f32.gmra.mxu2 %vm464_vm0, %v5709_v20  ;;  %4112 = vmatmul.msk.f32.gmra.mxu3 %vm464_vm0, %v5709_v20  ;;  %v1856_v27 = vpop.f32.mrf.mxu1 }
 0x300   : > { %v1749_v9 = vpop.f32.mrf.mxu2  ;;  %v1963_v4 = vpop.f32.mrf.mxu3  ;;  %1903 = vmatmul.f32.gmra.mxu1 %v5705_v29 }
 0x301   : > { %v1645_v19 = vpop.f32.mrf.mxu0  ;;  %v282_v9 = vld [vmem:[#allocation3 + $0x110] sm:$0xff] }
 0x302   : > { %2065 = vmatpush.msra.mxu0 %v282_v9 }
 0x304   : > { %1692 = vmatmul.f32.gmra.mxu0 %v5717_v6 }
 0x305   : > { %4083 = vmatmul.msk.f32.gmra.mxu2 %vm464_vm0, %v5721_v5  ;;  %4113 = vmatmul.msk.f32.gmra.mxu3 %vm464_vm0, %v5721_v5  ;;  %v1859_v45 = vpop.f32.mrf.mxu1 }
 0x306   : > { %v5753_v45 = vld [vmem:[%s4541_s24 + $0x140] sm:$0xff] }
 0x307   : > { %6375 = vst [vmem:[#allocation32_spill] sm:$0xff] %v5753_v45 }
 0x308   : > { %v1752_v13 = vpop.f32.mrf.mxu2  ;;  %v1966_v1 = vpop.f32.mrf.mxu3  ;;  %1906 = vmatmul.f32.gmra.mxu1 %v5717_v6 }
 0x309   : > { %v1648_v60 = vpop.f32.mrf.mxu0  ;;  %v283_v13 = vld [vmem:[#allocation3 + $0x118] sm:$0xff]  ;;  %v5757_v1 = vld [vmem:[%s4541_s24 + $0x148] sm:$0xff] }
 0x30a   : > { %6376 = vst [vmem:[#allocation26_spill] sm:$0xff] %v5757_v1  ;;  %2279 = vmatpush.msra.mxu1 %v283_v13 }
 0x30c   : > { %1695 = vmatmul.f32.gmra.mxu0 %v5729_v52 }
 0x30d   : > { %4084 = vmatmul.msk.f32.gmra.mxu2 %vm464_vm0, %v5733_v26  ;;  %4114 = vmatmul.msk.f32.gmra.mxu3 %vm464_vm0, %v5733_v26  ;;  %v1862_v49 = vpop.f32.mrf.mxu1 }
 0x310   : > { %v1755_v43 = vpop.f32.mrf.mxu2  ;;  %v1969_v40 = vpop.f32.mrf.mxu3  ;;  %1909 = vmatmul.f32.gmra.mxu1 %v5729_v52 }
 0x311   : > { %v1651_v23 = vpop.f32.mrf.mxu0 }
 0x314   : > { %1698 = vmatmul.f32.gmra.mxu0 %v5741_v63 }
 0x315   : > { %4085 = vmatmul.msk.f32.gmra.mxu2 %vm464_vm0, %v5745_v46  ;;  %4115 = vmatmul.msk.f32.gmra.mxu3 %vm464_vm0, %v5745_v46  ;;  %v1865_v27 = vpop.f32.mrf.mxu1 }
 0x316   : > { %v5769_v27 = vld [vmem:[%s4541_s24 + $0x158] sm:$0xff] }
 0x317   : > { %6378 = vst [vmem:[#allocation6_spill] sm:$0xff] %v5769_v27 }
 0x318   : > { %v1758_v4 = vpop.f32.mrf.mxu2  ;;  %v1972_v19 = vpop.f32.mrf.mxu3  ;;  %1912 = vmatmul.f32.gmra.mxu1 %v5741_v63 }
 0x319   : > { %v1759_v16 = vadd.f32 %v1758_v4, %v1651_v23  ;;  %v1654_v17 = vpop.f32.mrf.mxu0  ;;  %v273_v19 = vld [vmem:[#allocation3 + $0xc8] sm:$0xff] }
 0x31a   : > { %2066 = vmatpush.msra.mxu0 %v273_v19 }
 0x31b   : > { %2513 = vst [vmem:[#allocation2 + $0x498] sm:$0xff] %v1759_v16 }
 0x31c   : > { %1701 = vmatmul.f32.gmra.mxu0 %v5753_v45 }
 0x31d   : > { %4086 = vmatmul.msk.f32.gmra.mxu2 %vm464_vm0, %v5757_v1  ;;  %4116 = vmatmul.msk.f32.gmra.mxu3 %vm464_vm0, %v5757_v1  ;;  %v1868_v60 = vpop.f32.mrf.mxu1 }
 0x320   : > { %v1761_v7 = vpop.f32.mrf.mxu2  ;;  %v1975_v47 = vpop.f32.mrf.mxu3  ;;  %1915 = vmatmul.f32.gmra.mxu1 %v5753_v45  ;;  %v5799_v45 = vld [vmem:[%s4541_s24 + $0x178] sm:$0xff] }
 0x321   : > { %v1762_v49 = vadd.f32 %v1761_v7, %v1654_v17  ;;  %v1657_v43 = vpop.f32.mrf.mxu0  ;;  %6381 = vst [vmem:[#allocation7_spill] sm:$0xff] %v5799_v45 }
 0x322   : > { %v3275_v40 = vld [vmem:[#allocation2 + $0x498] sm:$0xfc] }
 0x323   : > { %v3325_v23 = vrot.slane %v3275_v40, 2  ;;  %v3326_v54 = vrot.slane %v1762_v49, 2  ;;  %v5779_v49 = vld [vmem:[%s4541_s24 + $0x160] sm:$0xff]  ;;  %v274_v40 = vld [vmem:[#allocation3 + $0xd0] sm:$0xff] }
 0x324   : > { %1704 = vmatmul.f32.gmra.mxu0 %v5765_v21  ;;  %2280 = vmatpush.msra.mxu1 %v274_v40  ;;  %v264_v40 = vld [vmem:[#allocation3 + $0x80] sm:$0xff] }
 0x325   : > { %4087 = vmatmul.msk.f32.gmra.mxu2 %vm464_vm0, %v5769_v27  ;;  %4117 = vmatmul.msk.f32.gmra.mxu3 %vm464_vm0, %v5769_v27  ;;  %v1871_v9 = vpop.f32.mrf.mxu1  ;;  %v3327_v4 = vsel %vm2982_vm2, %v3325_v23, %v3326_v54  ;;  %v5783_v27 = vld [vmem:[%s4541_s24 + $0x168] sm:$0xff] }
 0x326   : > { %v3398_v16 = vadd.f32 %v3327_v4, %v5459_v41  ;;  %6379 = vst [vmem:[#allocation30_spill] sm:$0xff] %v5783_v27  ;;  %2067 = vmatpush.msra.mxu0 %v264_v40 }
 0x328   : > { %v1764_v17 = vpop.f32.mrf.mxu2  ;;  %v1978_v13 = vpop.f32.mrf.mxu3  ;;  %1918 = vmatmul.f32.gmra.mxu1 %v5765_v21 }
 0x329   : > { %v1765_v60 = vadd.f32 %v1764_v17, %v1657_v43  ;;  %v1660_v7 = vpop.f32.mrf.mxu0  ;;  %v399_v43 = vld [vmem:[#allocation3 + $0x4b8] sm:$0xff] }
 0x32a   : > { %2175 = vmatpush.msra.mxu2 %v399_v43 }
 0x32b   : > { %v3328_v47 = vrot.slane %v1765_v60, 2 }
 0x32c   : > { %1707 = vmatmul.f32.gmra.mxu0 %v5779_v49 }
 0x32d   : > { %4088 = vmatmul.msk.f32.gmra.mxu2 %vm464_vm0, %v5783_v27  ;;  %4118 = vmatmul.msk.f32.gmra.mxu3 %vm464_vm0, %v5783_v27  ;;  %v1874_v41 = vpop.f32.mrf.mxu1  ;;  %v3329_v23 = vsel %vm2982_vm2, %v3326_v54, %v3328_v47  ;;  %v5795_v27 = vld [vmem:[%s4541_s24 + $0x170] sm:$0xff]  ;;  %v400_v54 = vld [vmem:[#allocation3 + $0x4c0] sm:$0xff] }
 0x32e   : > { %v3399_v9 = vadd.f32 %v3329_v23, %v5467_v2  ;;  %2389 = vmatpush.msra.mxu3 %v400_v54 }
 0x330   : > { %v1767_v4 = vpop.f32.mrf.mxu2  ;;  %v1981_v19 = vpop.f32.mrf.mxu3  ;;  %1921 = vmatmul.f32.gmra.mxu1 %v5779_v49 }
 0x331   : > { %v1768_v17 = vadd.f32 %v1767_v4, %v1660_v7  ;;  %v1982_v13 = vadd.f32 %v1981_v19, %v1874_v41  ;;  %v1663_v60 = vpop.f32.mrf.mxu0 }
 0x333   : > { %v3330_v21 = vrot.slane %v1768_v17, 2  ;;  %v5792_v1 = vadd.f32 %v3398_v16, %v1982_v13  ;;  %v265_v16 = vld [vmem:[#allocation3 + $0x88] sm:$0xff] }
 0x334   : > { %1710 = vmatmul.f32.gmra.mxu0 %v5795_v27  ;;  %2281 = vmatpush.msra.mxu1 %v265_v16 }
 0x335   : > { %6380 = vst [vmem:[#allocation33_spill] sm:$0xff] %v5792_v1  ;;  %4089 = vmatmul.msk.f32.gmra.mxu2 %vm464_vm0, %v5799_v45  ;;  %4119 = vmatmul.msk.f32.gmra.mxu3 %vm464_vm0, %v5799_v45  ;;  %v1877_v2 = vpop.f32.mrf.mxu1  ;;  %v3331_v7 = vsel %vm2982_vm2, %v3328_v47, %v3330_v21  ;;  %v5811_v45 = vld [vmem:[%s4541_s24 + $0x180] sm:$0xff]  ;;  %v5815_v47 = vld [vmem:[%s4541_s24 + $0x188] sm:$0xff] }
 0x336   : > { %v3400_v41 = vadd.f32 %v3331_v7, %v5475_v24 }
 0x338   : > { %v1770_v23 = vpop.f32.mrf.mxu2  ;;  %v1984_v43 = vpop.f32.mrf.mxu3  ;;  %1924 = vmatmul.f32.gmra.mxu1 %v5795_v27 }
 0x339   : > { %v1771_v4 = vadd.f32 %v1770_v23, %v1663_v60  ;;  %v1985_v19 = vadd.f32 %v1984_v43, %v1877_v2  ;;  %v1666_v17 = vpop.f32.mrf.mxu0 }
 0x33b   : > { %v3332_v13 = vrot.slane %v1771_v4, 2  ;;  %v5808_v1 = vadd.f32 %v3399_v9, %v1985_v19  ;;  %v5827_v4 = vld [vmem:[%s4541_s24 + $0x190] sm:$0xff] }
 0x33c   : > { %1713 = vmatmul.f32.gmra.mxu0 %v5811_v45  ;;  %v255_v19 = vld [vmem:[#allocation3 + $0x38] sm:$0xff] }
 0x33d   : > { %6382 = vst [vmem:[#allocation36_spill] sm:$0xff] %v5808_v1  ;;  %4090 = vmatmul.msk.f32.gmra.mxu2 %vm464_vm0, %v5815_v47  ;;  %4120 = vmatmul.msk.f32.gmra.mxu3 %vm464_vm0, %v5815_v47  ;;  %v1880_v24 = vpop.f32.mrf.mxu1  ;;  %v3333_v60 = vsel %vm2982_vm2, %v3330_v21, %v3332_v13  ;;  %v5831_v1 = vld [vmem:[%s4541_s24 + $0x198] sm:$0xff] }
 0x33e   : > { %v3401_v9 = vadd.f32 %v3333_v60, %v5483_v8  ;;  %6384 = vst [vmem:[#allocation39_spill] sm:$0xff] %v5831_v1  ;;  %2068 = vmatpush.msra.mxu0 %v255_v19 }
 0x340   : > { %v1773_v54 = vpop.f32.mrf.mxu2  ;;  %v1987_v2 = vpop.f32.mrf.mxu3  ;;  %1927 = vmatmul.f32.gmra.mxu1 %v5811_v45 }
 0x341   : > { %v1774_v7 = vadd.f32 %v1773_v54, %v1666_v17  ;;  %v1988_v40 = vadd.f32 %v1987_v2, %v1880_v24  ;;  %v1669_v16 = vpop.f32.mrf.mxu0 }
 0x343   : > { %v3334_v23 = vrot.slane %v1774_v7, 2  ;;  %v5824_v43 = vadd.f32 %v3400_v41, %v1988_v40  ;;  %v256_v41 = vld [vmem:[#allocation3 + $0x40] sm:$0xff] }
 0x344   : > { %1716 = vmatmul.f32.gmra.mxu0 %v5827_v4  ;;  %2282 = vmatpush.msra.mxu1 %v256_v41 }
 0x345   : > { %6383 = vst [vmem:[#allocation8_spill] sm:$0xff] %v5824_v43  ;;  %4091 = vmatmul.msk.f32.gmra.mxu2 %vm464_vm0, %v5831_v1  ;;  %4121 = vmatmul.msk.f32.gmra.mxu3 %vm464_vm0, %v5831_v1  ;;  %v1883_v8 = vpop.f32.mrf.mxu1  ;;  %v3335_v21 = vsel %vm2982_vm2, %v3332_v13, %v3334_v23  ;;  %v5843_v1 = vld [vmem:[%s4541_s24 + $0x1a0] sm:$0xff]  ;;  %v5847_v13 = vld [vmem:[%s4541_s24 + $0x1a8] sm:$0xff] }
 0x346   : > { %v3402_v17 = vadd.f32 %v3335_v21, %v5491_v31 }
 0x348   : > { %v1776_v24 = vpop.f32.mrf.mxu2  ;;  %v1990_v60 = vpop.f32.mrf.mxu3  ;;  %1930 = vmatmul.f32.gmra.mxu1 %v5827_v4 }
 0x349   : > { %v1777_v54 = vadd.f32 %v1776_v24, %v1669_v16  ;;  %v1991_v2 = vadd.f32 %v1990_v60, %v1883_v8  ;;  %v1672_v7 = vpop.f32.mrf.mxu0 }
 0x34b   : > { %v3336_v40 = vrot.slane %v1777_v54, 2  ;;  %v5840_v43 = vadd.f32 %v3401_v9, %v1991_v2  ;;  %v5859_v2 = vld [vmem:[%s4541_s24 + $0x1b0] sm:$0xff] }
 0x34c   : > { %1719 = vmatmul.f32.gmra.mxu0 %v5843_v1 }
 0x34d   : > { %6385 = vst [vmem:[#allocation9_spill] sm:$0xff] %v5840_v43  ;;  %4092 = vmatmul.msk.f32.gmra.mxu2 %vm464_vm0, %v5847_v13  ;;  %4122 = vmatmul.msk.f32.gmra.mxu3 %vm464_vm0, %v5847_v13  ;;  %v1886_v31 = vpop.f32.mrf.mxu1  ;;  %v3337_v16 = vsel %vm2982_vm2, %v3334_v23, %v3336_v40  ;;  %v5863_v43 = vld [vmem:[%s4541_s24 + $0x1b8] sm:$0xff] }
 0x34e   : > { %v3403_v9 = vadd.f32 %v3337_v16, %v5499_v42  ;;  %6387 = vst [vmem:[#allocation11_spill] sm:$0xff] %v5863_v43 }
 0x350   : > { %v1779_v19 = vpop.f32.mrf.mxu2  ;;  %v1993_v8 = vpop.f32.mrf.mxu3  ;;  %1933 = vmatmul.f32.gmra.mxu1 %v5843_v1 }
 0x351   : > { %v1780_v21 = vadd.f32 %v1779_v19, %v1672_v7  ;;  %v1994_v41 = vadd.f32 %v1993_v8, %v1886_v31  ;;  %v1675_v24 = vpop.f32.mrf.mxu0 }
 0x353   : > { %v3338_v60 = vrot.slane %v1780_v21, 2  ;;  %v5856_v54 = vadd.f32 %v3402_v17, %v1994_v41 }
 0x354   : > { %1722 = vmatmul.f32.gmra.mxu0 %v5859_v2 }
 0x355   : > { %6386 = vst [vmem:[#allocation10_spill] sm:$0xff] %v5856_v54  ;;  %4093 = vmatmul.msk.f32.gmra.mxu2 %vm464_vm0, %v5863_v43  ;;  %4123 = vmatmul.msk.f32.gmra.mxu3 %vm464_vm0, %v5863_v43  ;;  %v1889_v42 = vpop.f32.mrf.mxu1  ;;  %v3339_v23 = vsel %vm2982_vm2, %v3336_v40, %v3338_v60  ;;  %v5875_v54 = vld [vmem:[%s4541_s24 + $0x1c0] sm:$0xff]  ;;  %v5879_v43 = vld [vmem:[%s4541_s24 + $0x1c8] sm:$0xff] }
 0x356   : > { %v3404_v17 = vadd.f32 %v3339_v23, %v5507_v48  ;;  %6389 = vst [vmem:[#allocation13_spill] sm:$0xff] %v5875_v54 }
 0x357   : > { %6390 = vst [vmem:[#allocation14_spill] sm:$0xff] %v5879_v43 }
 0x358   : > { %v1782_v7 = vpop.f32.mrf.mxu2  ;;  %v1996_v31 = vpop.f32.mrf.mxu3  ;;  %1936 = vmatmul.f32.gmra.mxu1 %v5859_v2 }
 0x359   : > { %v1783_v16 = vadd.f32 %v1782_v7, %v1675_v24  ;;  %v1997_v19 = vadd.f32 %v1996_v31, %v1889_v42  ;;  %v1678_v8 = vpop.f32.mrf.mxu0 }
 0x35b   : > { %v3340_v21 = vrot.slane %v1783_v16, 2  ;;  %v5872_v41 = vadd.f32 %v3403_v9, %v1997_v19 }
 0x35c   : > { %1725 = vmatmul.f32.gmra.mxu0 %v5875_v54 }
 0x35d   : > { %6388 = vst [vmem:[#allocation12_spill] sm:$0xff] %v5872_v41  ;;  %4094 = vmatmul.msk.f32.gmra.mxu2 %vm464_vm0, %v5879_v43  ;;  %4124 = vmatmul.msk.f32.gmra.mxu3 %vm464_vm0, %v5879_v43  ;;  %v1892_v48 = vpop.f32.mrf.mxu1  ;;  %v3341_v40 = vsel %vm2982_vm2, %v3338_v60, %v3340_v21  ;;  %v5891_v41 = vld [vmem:[%s4541_s24 + $0x1d0] sm:$0xff]  ;;  %v5895_v43 = vld [vmem:[%s4541_s24 + $0x1d8] sm:$0xff] }
 0x35e   : > { %v3405_v9 = vadd.f32 %v3341_v40, %v5515_v61  ;;  %6392 = vst [vmem:[#allocation16_spill] sm:$0xff] %v5895_v43 }
 0x360   : > { %v1785_v24 = vpop.f32.mrf.mxu2  ;;  %v1999_v42 = vpop.f32.mrf.mxu3  ;;  %1939 = vmatmul.f32.gmra.mxu1 %v5875_v54  ;;  %v4398_v54 = vld [vmem:[%s4541_s24 + $0x8] sm:$0xff] }
 0x361   : > { %v1786_v23 = vadd.f32 %v1785_v24, %v1678_v8  ;;  %v2000_v7 = vadd.f32 %v1999_v42, %v1892_v48  ;;  %v1681_v31 = vpop.f32.mrf.mxu0 }
 0x363   : > { %v3342_v16 = vrot.slane %v1786_v23, 2  ;;  %v5888_v19 = vadd.f32 %v3404_v17, %v2000_v7 }
 0x364   : > { %1728 = vmatmul.f32.gmra.mxu0 %v5891_v41 }
 0x365   : > { %6391 = vst [vmem:[#allocation15_spill] sm:$0xff] %v5888_v19  ;;  %4095 = vmatmul.msk.f32.gmra.mxu2 %vm464_vm0, %v5895_v43  ;;  %4125 = vmatmul.msk.f32.gmra.mxu3 %vm464_vm0, %v5895_v43  ;;  %v1895_v61 = vpop.f32.mrf.mxu1  ;;  %v3343_v60 = vsel %vm2982_vm2, %v3340_v21, %v3342_v16  ;;  %v4397_v19 = vld [vmem:[%s4541_s24] sm:$0xff]  ;;  %v4400_v43 = vld [vmem:[%s4541_s24 + $0x18] sm:$0xff] }
 0x366   : > { %v3406_v17 = vadd.f32 %v3343_v60, %v5523_v39 }
 0x368   : > { %v1788_v8 = vpop.f32.mrf.mxu2  ;;  %v2002_v48 = vpop.f32.mrf.mxu3  ;;  %1942 = vmatmul.f32.gmra.mxu1 %v5891_v41 }
 0x369   : > { %v1789_v40 = vadd.f32 %v1788_v8, %v1681_v31  ;;  %v2003_v24 = vadd.f32 %v2002_v48, %v1895_v61  ;;  %v1684_v42 = vpop.f32.mrf.mxu0 }
 0x36b   : > { %v3344_v23 = vrot.slane %v1789_v40, 2  ;;  %v5904_v7 = vadd.f32 %v3405_v9, %v2003_v24 }
 0x36c   : > { %2069 = vmatmul.f32.vlgmr.msra.gmra.mxu0 %v4397_v19 }
 0x36d   : > { %6393 = vst [vmem:[#allocation17_spill] sm:$0xff] %v5904_v7  ;;  %4126 = vmatmul.msk.f32.vlgmr.msra.gmra.mxu2 %vm464_vm0, %v4398_v54  ;;  %4156 = vmatmul.msk.f32.vlgmr.msra.gmra.mxu3 %vm464_vm0, %v4398_v54  ;;  %v1898_v39 = vpop.f32.mrf.mxu1  ;;  %v3345_v21 = vsel %vm2982_vm2, %v3342_v16, %v3344_v23  ;;  %v4399_v7 = vld [vmem:[%s4541_s24 + $0x10] sm:$0xff] }
 0x36e   : > { %v3407_v60 = vadd.f32 %v3345_v21, %v5531_v56 }
 0x370   : > { %v1791_v31 = vpop.f32.mrf.mxu2  ;;  %v2005_v61 = vpop.f32.mrf.mxu3  ;;  %2283 = vmatmul.f32.vlgmr.msra.gmra.mxu1 %v4397_v19 }
 0x371   : > { %v1792_v8 = vadd.f32 %v1791_v31, %v1684_v42  ;;  %v2006_v9 = vadd.f32 %v2005_v61, %v1898_v39  ;;  %v1687_v48 = vpop.f32.mrf.mxu0 }
 0x373   : > { %v3346_v40 = vrot.slane %v1792_v8, 2  ;;  %v5912_v24 = vadd.f32 %v3406_v17, %v2006_v9  ;;  %v4401_v8 = vld [vmem:[%s4541_s24 + $0x20] sm:$0xff]  ;;  %v4402_v9 = vld [vmem:[%s4541_s24 + $0x28] sm:$0xff] }
 0x374   : > { %2072 = vmatmul.f32.gmra.mxu0 %v4399_v7 }
 0x375   : > { %4127 = vmatmul.msk.f32.gmra.mxu2 %vm464_vm0, %v4400_v43  ;;  %4157 = vmatmul.msk.f32.gmra.mxu3 %vm464_vm0, %v4400_v43  ;;  %v1901_v54 = vpop.f32.mrf.mxu1  ;;  %v3347_v56 = vsel %vm2982_vm2, %v3344_v23, %v3346_v40 }
 0x376   : > { %v3408_v16 = vadd.f32 %v3347_v56, %v5539_v59 }
 0x378   : > { %v1794_v19 = vpop.f32.mrf.mxu2  ;;  %v2008_v42 = vpop.f32.mrf.mxu3  ;;  %2286 = vmatmul.f32.gmra.mxu1 %v4399_v7 }
 0x379   : > { %v1795_v39 = vadd.f32 %v1794_v19, %v1687_v48  ;;  %v2009_v17 = vadd.f32 %v2008_v42, %v1901_v54  ;;  %v1690_v21 = vpop.f32.mrf.mxu0 }
 0x37b   : > { %v3348_v31 = vrot.slane %v1795_v39, 2  ;;  %v5920_v61 = vadd.f32 %v3407_v60, %v2009_v17  ;;  %v4403_v39 = vld [vmem:[%s4541_s24 + $0x30] sm:$0xff]  ;;  %v4404_v17 = vld [vmem:[%s4541_s24 + $0x38] sm:$0xff] }
 0x37c   : > { %2075 = vmatmul.f32.gmra.mxu0 %v4401_v8 }
 0x37d   : > { %4128 = vmatmul.msk.f32.gmra.mxu2 %vm464_vm0, %v4402_v9  ;;  %4158 = vmatmul.msk.f32.gmra.mxu3 %vm464_vm0, %v4402_v9  ;;  %v1904_v43 = vpop.f32.mrf.mxu1  ;;  %v3349_v59 = vsel %vm2982_vm2, %v3346_v40, %v3348_v31 }
 0x37e   : > { %v3409_v23 = vadd.f32 %v3349_v59, %v5547_v28 }
 0x380   : > { %v1797_v7 = vpop.f32.mrf.mxu2  ;;  %v2011_v48 = vpop.f32.mrf.mxu3  ;;  %2289 = vmatmul.f32.gmra.mxu1 %v4401_v8 }
 0x381   : > { %v1798_v54 = vadd.f32 %v1797_v7, %v1690_v21  ;;  %v2012_v60 = vadd.f32 %v2011_v48, %v1904_v43  ;;  %v1693_v56 = vpop.f32.mrf.mxu0 }
 0x383   : > { %v3350_v19 = vrot.slane %v1798_v54, 2  ;;  %v5928_v42 = vadd.f32 %v3408_v16, %v2012_v60  ;;  %v4405_v54 = vld [vmem:[%s4541_s24 + $0x40] sm:$0xff]  ;;  %v4406_v60 = vld [vmem:[%s4541_s24 + $0x48] sm:$0xff] }
 0x384   : > { %2078 = vmatmul.f32.gmra.mxu0 %v4403_v39 }
 0x385   : > { %4129 = vmatmul.msk.f32.gmra.mxu2 %vm464_vm0, %v4404_v17  ;;  %4159 = vmatmul.msk.f32.gmra.mxu3 %vm464_vm0, %v4404_v17  ;;  %v1907_v40 = vpop.f32.mrf.mxu1  ;;  %v3351_v28 = vsel %vm2982_vm2, %v3348_v31, %v3350_v19 }
 0x386   : > { %v3410_v8 = vadd.f32 %v3351_v28, %v5555_v33 }
 0x388   : > { %v1800_v21 = vpop.f32.mrf.mxu2  ;;  %v2014_v9 = vpop.f32.mrf.mxu3  ;;  %2292 = vmatmul.f32.gmra.mxu1 %v4403_v39 }
 0x389   : > { %v1801_v43 = vadd.f32 %v1800_v21, %v1693_v56  ;;  %v2015_v16 = vadd.f32 %v2014_v9, %v1907_v40  ;;  %v1696_v59 = vpop.f32.mrf.mxu0 }
 0x38b   : > { %v3352_v7 = vrot.slane %v1801_v43, 2  ;;  %v5936_v48 = vadd.f32 %v3409_v23, %v2015_v16  ;;  %v4407_v43 = vld [vmem:[%s4541_s24 + $0x50] sm:$0xff]  ;;  %v4408_v16 = vld [vmem:[%s4541_s24 + $0x58] sm:$0xff] }
 0x38c   : > { %2081 = vmatmul.f32.gmra.mxu0 %v4405_v54 }
 0x38d   : > { %4130 = vmatmul.msk.f32.gmra.mxu2 %vm464_vm0, %v4406_v60  ;;  %4160 = vmatmul.msk.f32.gmra.mxu3 %vm464_vm0, %v4406_v60  ;;  %v1910_v31 = vpop.f32.mrf.mxu1  ;;  %v3353_v33 = vsel %vm2982_vm2, %v3350_v19, %v3352_v7 }
 0x38e   : > { %v3411_v39 = vadd.f32 %v3353_v33, %v5563_v57 }
 0x390   : > { %v1803_v56 = vpop.f32.mrf.mxu2  ;;  %v2017_v17 = vpop.f32.mrf.mxu3  ;;  %2295 = vmatmul.f32.gmra.mxu1 %v4405_v54 }
 0x391   : > { %v1804_v40 = vadd.f32 %v1803_v56, %v1696_v59  ;;  %v2018_v23 = vadd.f32 %v2017_v17, %v1910_v31  ;;  %v1699_v28 = vpop.f32.mrf.mxu0 }
 0x393   : > { %v3354_v21 = vrot.slane %v1804_v40, 2  ;;  %v5944_v9 = vadd.f32 %v3410_v8, %v2018_v23  ;;  %v4409_v40 = vld [vmem:[%s4541_s24 + $0x60] sm:$0xff]  ;;  %v4410_v23 = vld [vmem:[%s4541_s24 + $0x68] sm:$0xff] }
 0x394   : > { %2084 = vmatmul.f32.gmra.mxu0 %v4407_v43 }
 0x395   : > { %4131 = vmatmul.msk.f32.gmra.mxu2 %vm464_vm0, %v4408_v16  ;;  %4161 = vmatmul.msk.f32.gmra.mxu3 %vm464_vm0, %v4408_v16  ;;  %v1913_v19 = vpop.f32.mrf.mxu1  ;;  %v3355_v57 = vsel %vm2982_vm2, %v3352_v7, %v3354_v21 }
 0x396   : > { %v3412_v54 = vadd.f32 %v3355_v57, %v5571_v0 }
 0x398   : > { %v1806_v59 = vpop.f32.mrf.mxu2  ;;  %v2020_v60 = vpop.f32.mrf.mxu3  ;;  %2298 = vmatmul.f32.gmra.mxu1 %v4407_v43 }
 0x399   : > { %v1807_v31 = vadd.f32 %v1806_v59, %v1699_v28  ;;  %v2021_v8 = vadd.f32 %v2020_v60, %v1913_v19  ;;  %v1702_v33 = vpop.f32.mrf.mxu0 }
 0x39b   : > { %v3356_v56 = vrot.slane %v1807_v31, 2  ;;  %v5952_v17 = vadd.f32 %v3411_v39, %v2021_v8  ;;  %v4411_v31 = vld [vmem:[%s4541_s24 + $0x70] sm:$0xff]  ;;  %v4412_v8 = vld [vmem:[%s4541_s24 + $0x78] sm:$0xff] }
 0x39c   : > { %2087 = vmatmul.f32.gmra.mxu0 %v4409_v40 }
 0x39d   : > { %4132 = vmatmul.msk.f32.gmra.mxu2 %vm464_vm0, %v4410_v23  ;;  %4162 = vmatmul.msk.f32.gmra.mxu3 %vm464_vm0, %v4410_v23  ;;  %v1916_v7 = vpop.f32.mrf.mxu1  ;;  %v3357_v0 = vsel %vm2982_vm2, %v3354_v21, %v3356_v56 }
 0x39e   : > { %v3413_v43 = vadd.f32 %v3357_v0, %v5579_v53 }
 0x3a0   : > { %v1809_v28 = vpop.f32.mrf.mxu2  ;;  %v2023_v16 = vpop.f32.mrf.mxu3  ;;  %2301 = vmatmul.f32.gmra.mxu1 %v4409_v40 }
 0x3a1   : > { %v1810_v19 = vadd.f32 %v1809_v28, %v1702_v33  ;;  %v2024_v39 = vadd.f32 %v2023_v16, %v1916_v7  ;;  %v1705_v57 = vpop.f32.mrf.mxu0 }
 0x3a3   : > { %v3358_v59 = vrot.slane %v1810_v19, 2  ;;  %v5960_v60 = vadd.f32 %v3412_v54, %v2024_v39  ;;  %v4413_v19 = vld [vmem:[%s4541_s24 + $0x80] sm:$0xff]  ;;  %v4414_v39 = vld [vmem:[%s4541_s24 + $0x88] sm:$0xff] }
 0x3a4   : > { %2090 = vmatmul.f32.gmra.mxu0 %v4411_v31 }
 0x3a5   : > { %4133 = vmatmul.msk.f32.gmra.mxu2 %vm464_vm0, %v4412_v8  ;;  %4163 = vmatmul.msk.f32.gmra.mxu3 %vm464_vm0, %v4412_v8  ;;  %v1919_v21 = vpop.f32.mrf.mxu1  ;;  %v3359_v53 = vsel %vm2982_vm2, %v3356_v56, %v3358_v59 }
 0x3a6   : > { %v3414_v40 = vadd.f32 %v3359_v53, %v5587_v38 }
 0x3a8   : > { %v1812_v33 = vpop.f32.mrf.mxu2  ;;  %v2026_v23 = vpop.f32.mrf.mxu3  ;;  %2304 = vmatmul.f32.gmra.mxu1 %v4411_v31 }
 0x3a9   : > { %v1813_v7 = vadd.f32 %v1812_v33, %v1705_v57  ;;  %v2027_v54 = vadd.f32 %v2026_v23, %v1919_v21  ;;  %v1708_v0 = vpop.f32.mrf.mxu0 }
 0x3ab   : > { %v3360_v28 = vrot.slane %v1813_v7, 2  ;;  %v5968_v16 = vadd.f32 %v3413_v43, %v2027_v54 }
 0x3ac   : > { %2093 = vmatmul.f32.gmra.mxu0 %v4413_v19 }
 0x3ad   : > { %4134 = vmatmul.msk.f32.gmra.mxu2 %vm464_vm0, %v4414_v39  ;;  %4164 = vmatmul.msk.f32.gmra.mxu3 %vm464_vm0, %v4414_v39  ;;  %v1922_v8 = vpop.f32.mrf.mxu1  ;;  %v3361_v56 = vsel %vm2982_vm2, %v3358_v59, %v3360_v28 }
 0x3ae   : > { %v3415_v38 = vadd.f32 %v3361_v56, %v5595_v36 }
 0x3b0   : > { %v1815_v53 = vpop.f32.mrf.mxu2  ;;  %v2029_v57 = vpop.f32.mrf.mxu3  ;;  %2307 = vmatmul.f32.gmra.mxu1 %v4413_v19  ;;  %v4415_v19 = vld [vmem:[%s4541_s24 + $0x90] sm:$0xff] }
 0x3b1   : > { %v1816_v31 = vadd.f32 %v1815_v53, %v1708_v0  ;;  %v2030_v21 = vadd.f32 %v2029_v57, %v1922_v8  ;;  %v1711_v43 = vpop.f32.mrf.mxu0 }
 0x3b3   : > { %v3362_v33 = vrot.slane %v1816_v31, 2  ;;  %v5976_v23 = vadd.f32 %v3414_v40, %v2030_v21  ;;  %v4416_v31 = vld [vmem:[%s4541_s24 + $0xa0] sm:$0xff] }
 0x3b4   : > { %2096 = vmatmul.f32.gmra.mxu0 %v5599_v18 }
 0x3b5   : > { %4135 = vmatmul.msk.f32.gmra.mxu2 %vm464_vm0, %v5604_v58  ;;  %4165 = vmatmul.msk.f32.gmra.mxu3 %vm464_vm0, %v5604_v58  ;;  %v1925_v59 = vpop.f32.mrf.mxu1  ;;  %v3363_v36 = vsel %vm2982_vm2, %v3360_v28, %v3362_v33 }
 0x3b6   : > { %v3416_v7 = vadd.f32 %v3363_v36, %v5610_v25 }
 0x3b8   : > { %v1818_v54 = vpop.f32.mrf.mxu2  ;;  %v2032_v0 = vpop.f32.mrf.mxu3  ;;  %2310 = vmatmul.f32.gmra.mxu1 %v4415_v19 }
 0x3b9   : > { %v1819_v40 = vadd.f32 %v1818_v54, %v1711_v43  ;;  %v2033_v39 = vadd.f32 %v2032_v0, %v1925_v59  ;;  %v1714_v8 = vpop.f32.mrf.mxu0  ;;  %v4417_v0 = vld [vmem:[%s4541_s24 + $0xb0] sm:$0xff] }
 0x3bb   : > { %v3364_v18 = vrot.slane %v1819_v40, 2  ;;  %v5986_v56 = vadd.f32 %v3415_v38, %v2033_v39 }
 0x3bc   : > { %2099 = vmatmul.f32.gmra.mxu0 %v5615_v51 }
 0x3bd   : > { %4136 = vmatmul.msk.f32.gmra.mxu2 %vm464_vm0, %v5620_v34  ;;  %4166 = vmatmul.msk.f32.gmra.mxu3 %vm464_vm0, %v5620_v34  ;;  %v1928_v58 = vpop.f32.mrf.mxu1  ;;  %v3365_v25 = vsel %vm2982_vm2, %v3362_v33, %v3364_v18 }
 0x3be   : > { %v3417_v28 = vadd.f32 %v3365_v25, %v5626_v3 }
 0x3c0   : > { %v1821_v53 = vpop.f32.mrf.mxu2  ;;  %v2035_v57 = vpop.f32.mrf.mxu3  ;;  %2313 = vmatmul.f32.gmra.mxu1 %v4416_v31 }
 0x3c1   : > { %v1822_v38 = vadd.f32 %v1821_v53, %v1714_v8  ;;  %v2036_v21 = vadd.f32 %v2035_v57, %v1928_v58  ;;  %v1717_v43 = vpop.f32.mrf.mxu0 }
 0x3c3   : > { %v3366_v51 = vrot.slane %v1822_v38, 2  ;;  %v5996_v59 = vadd.f32 %v3416_v7, %v2036_v21 }
 0x3c4   : > { %2102 = vmatmul.f32.gmra.mxu0 %v5631_v15 }
 0x3c5   : > { %4137 = vmatmul.msk.f32.gmra.mxu2 %vm464_vm0, %v5636_v55  ;;  %4167 = vmatmul.msk.f32.gmra.mxu3 %vm464_vm0, %v5636_v55  ;;  %v1931_v34 = vpop.f32.mrf.mxu1  ;;  %v3367_v3 = vsel %vm2982_vm2, %v3364_v18, %v3366_v51 }
 0x3c6   : > { %v3418_v33 = vadd.f32 %v3367_v3, %v5642_v22 }
 0x3c8   : > { %v1824_v36 = vpop.f32.mrf.mxu2  ;;  %v2038_v54 = vpop.f32.mrf.mxu3  ;;  %2316 = vmatmul.f32.gmra.mxu1 %v4417_v0 }
 0x3c9   : > { %v1825_v19 = vadd.f32 %v1824_v36, %v1717_v43  ;;  %v2039_v7 = vadd.f32 %v2038_v54, %v1931_v34  ;;  %v1720_v40 = vpop.f32.mrf.mxu0 }
 0x3cb   : > { %v3368_v39 = vrot.slane %v1825_v19, 2  ;;  %v6006_v15 = vadd.f32 %v3417_v28, %v2039_v7 }
 0x3cc   : > { %2105 = vmatmul.f32.gmra.mxu0 %v5647_v12 }
 0x3cd   : > { %4138 = vmatmul.msk.f32.gmra.mxu2 %vm464_vm0, %v5652_v10  ;;  %4168 = vmatmul.msk.f32.gmra.mxu3 %vm464_vm0, %v5652_v10  ;;  %v1934_v55 = vpop.f32.mrf.mxu1  ;;  %v3369_v22 = vsel %vm2982_vm2, %v3366_v51, %v3368_v39 }
 0x3ce   : > { %v3419_v8 = vadd.f32 %v3369_v22, %v5658_v37 }
 0x3d0   : > { %v1827_v18 = vpop.f32.mrf.mxu2  ;;  %v2041_v58 = vpop.f32.mrf.mxu3  ;;  %2319 = vmatmul.f32.gmra.mxu1 %v5647_v12 }
 0x3d1   : > { %v1828_v25 = vadd.f32 %v1827_v18, %v1720_v40  ;;  %v2042_v28 = vadd.f32 %v2041_v58, %v1934_v55  ;;  %v1723_v53 = vpop.f32.mrf.mxu0 }
 0x3d3   : > { %v3370_v57 = vrot.slane %v1828_v25, 2  ;;  %v6016_v31 = vadd.f32 %v3418_v33, %v2042_v28 }
 0x3d4   : > { %2108 = vmatmul.f32.gmra.mxu0 %v5663_v14 }
 0x3d5   : > { %4139 = vmatmul.msk.f32.gmra.mxu2 %vm464_vm0, %v5668_v50  ;;  %4169 = vmatmul.msk.f32.gmra.mxu3 %vm464_vm0, %v5668_v50  ;;  %v1937_v10 = vpop.f32.mrf.mxu1  ;;  %v3371_v37 = vsel %vm2982_vm2, %v3368_v39, %v3370_v57 }
 0x3d6   : > { %v3420_v38 = vadd.f32 %v3371_v37, %v5674_v44 }
 0x3d8   : > { %v1830_v12 = vpop.f32.mrf.mxu2  ;;  %v2044_v21 = vpop.f32.mrf.mxu3  ;;  %2322 = vmatmul.f32.gmra.mxu1 %v5663_v14 }
 0x3d9   : > { %v1831_v43 = vadd.f32 %v1830_v12, %v1723_v53  ;;  %v2045_v51 = vadd.f32 %v2044_v21, %v1937_v10  ;;  %v1726_v34 = vpop.f32.mrf.mxu0  ;;  %v6395_v12 = vld [vmem:[#allocation26_spill] sm:$0xff] }
 0x3da   : > { %v6397_v34 = vld [vmem:[#allocation6_spill] sm:$0xff] }
 0x3db   : > { %2729 = vst [vmem:[#allocation2 + $0x258] sm:$0xff] %v1831_v43  ;;  %v6026_v3 = vadd.f32 %v3419_v8, %v2045_v51  ;;  %v6396_v51 = vld [vmem:[#allocation28_spill] sm:$0xff] }
 0x3dc   : > { %2111 = vmatmul.f32.gmra.mxu0 %v5678_v32 }
 0x3dd   : > { %4140 = vmatmul.msk.f32.gmra.mxu2 %vm464_vm0, %v5682_v11  ;;  %4170 = vmatmul.msk.f32.gmra.mxu3 %vm464_vm0, %v5682_v11  ;;  %v1940_v50 = vpop.f32.mrf.mxu1 }
 0x3e0   : > { %v1833_v44 = vpop.f32.mrf.mxu2  ;;  %v2047_v33 = vpop.f32.mrf.mxu3  ;;  %2325 = vmatmul.f32.gmra.mxu1 %v5678_v32 }
 0x3e1   : > { %v2048_v14 = vadd.f32 %v2047_v33, %v1940_v50  ;;  %v1729_v36 = vpop.f32.mrf.mxu0 }
 0x3e2   : > { %v3299_v54 = vld [vmem:[#allocation2 + $0x258] sm:$0x3] }
 0x3e3   : > { %v3372_v0 = vrot.slane %v3299_v54, 2  ;;  %v6034_v19 = vadd.f32 %v3420_v38, %v2048_v14  ;;  %v6394_v38 = vld [vmem:[#allocation32_spill] sm:$0xff]  ;;  %v6398_v14 = vld [vmem:[#allocation30_spill] sm:$0xff] }
 0x3e4   : > { %2114 = vmatmul.f32.gmra.mxu0 %v5690_v62 }
 0x3e5   : > { %4141 = vmatmul.msk.f32.gmra.mxu2 %vm464_vm0, %v5694_v30  ;;  %4171 = vmatmul.msk.f32.gmra.mxu3 %vm464_vm0, %v5694_v30  ;;  %v1943_v11 = vpop.f32.mrf.mxu1  ;;  %v3373_v7 = vsel %vm2982_vm2, %v3370_v57, %v3372_v0 }
 0x3e6   : > { %v3421_v40 = vadd.f32 %v3373_v7, %v5701_v35 }
 0x3e8   : > { %v1836_v32 = vpop.f32.mrf.mxu2  ;;  %v2050_v39 = vpop.f32.mrf.mxu3  ;;  %2328 = vmatmul.f32.gmra.mxu1 %v5690_v62 }
 0x3e9   : > { %v2051_v55 = vadd.f32 %v2050_v39, %v1943_v11  ;;  %v2070_v22 = vpop.f32.mrf.mxu0  ;;  %v6399_v32 = vld [vmem:[#allocation7_spill] sm:$0xff] }
 0x3eb   : > { %v6044_v8 = vadd.f32 %v3421_v40, %v2051_v55 }
 0x3ec   : > { %2117 = vmatmul.f32.gmra.mxu0 %v5705_v29 }
 0x3ed   : > { %4142 = vmatmul.msk.f32.gmra.mxu2 %vm464_vm0, %v5709_v20  ;;  %4172 = vmatmul.msk.f32.gmra.mxu3 %vm464_vm0, %v5709_v20  ;;  %v2284_v30 = vpop.f32.mrf.mxu1 }
 0x3f0   : > { %v2177_v18 = vpop.f32.mrf.mxu2  ;;  %v2391_v58 = vpop.f32.mrf.mxu3  ;;  %2331 = vmatmul.f32.gmra.mxu1 %v5705_v29 }
 0x3f1   : > { %v2073_v35 = vpop.f32.mrf.mxu0 }
 0x3f4   : > { %2120 = vmatmul.f32.gmra.mxu0 %v5717_v6 }
 0x3f5   : > { %4143 = vmatmul.msk.f32.gmra.mxu2 %vm464_vm0, %v5721_v5  ;;  %4173 = vmatmul.msk.f32.gmra.mxu3 %vm464_vm0, %v5721_v5  ;;  %v2287_v62 = vpop.f32.mrf.mxu1 }
 0x3f8   : > { %v2180_v25 = vpop.f32.mrf.mxu2  ;;  %v2394_v28 = vpop.f32.mrf.mxu3  ;;  %2334 = vmatmul.f32.gmra.mxu1 %v5717_v6 }
 0x3f9   : > { %v2076_v20 = vpop.f32.mrf.mxu0 }
 0x3fc   : > { %2123 = vmatmul.f32.gmra.mxu0 %v5729_v52 }
 0x3fd   : > { %4144 = vmatmul.msk.f32.gmra.mxu2 %vm464_vm0, %v5733_v26  ;;  %4174 = vmatmul.msk.f32.gmra.mxu3 %vm464_vm0, %v5733_v26  ;;  %v2290_v29 = vpop.f32.mrf.mxu1 }
 0x400   : > { %v2183_v53 = vpop.f32.mrf.mxu2  ;;  %v2397_v57 = vpop.f32.mrf.mxu3  ;;  %2337 = vmatmul.f32.gmra.mxu1 %v5729_v52 }
 0x401   : > { %v2079_v5 = vpop.f32.mrf.mxu0  ;;  %v6400_v53 = vld [vmem:[#allocation33_spill] sm:$0xff] }
 0x404   : > { %2126 = vmatmul.f32.gmra.mxu0 %v5741_v63 }
 0x405   : > { %4145 = vmatmul.msk.f32.gmra.mxu2 %vm464_vm0, %v5745_v46  ;;  %4175 = vmatmul.msk.f32.gmra.mxu3 %vm464_vm0, %v5745_v46  ;;  %v2293_v6 = vpop.f32.mrf.mxu1 }
 0x406   : > { %v6105_v6 = vld [vmem:[%s6266_s2] ss:$0 sm:$0xff] }
 0x408   : > { %v2186_v10 = vpop.f32.mrf.mxu2  ;;  %v2400_v37 = vpop.f32.mrf.mxu3  ;;  %2340 = vmatmul.f32.gmra.mxu1 %v5741_v63 }
 0x409   : > { %v2082_v26 = vpop.f32.mrf.mxu0 }
 0x40c   : > { %2129 = vmatmul.f32.gmra.mxu0 %v6394_v38 }
 0x40d   : > { %4146 = vmatmul.msk.f32.gmra.mxu2 %vm464_vm0, %v6395_v12  ;;  %4176 = vmatmul.msk.f32.gmra.mxu3 %vm464_vm0, %v6395_v12  ;;  %v2296_v52 = vpop.f32.mrf.mxu1 }
 0x410   : > { %v2189_v21 = vpop.f32.mrf.mxu2  ;;  %v2403_v43 = vpop.f32.mrf.mxu3  ;;  %2343 = vmatmul.f32.gmra.mxu1 %v6394_v38 }
 0x411   : > { %v2085_v46 = vpop.f32.mrf.mxu0 }
 0x414   : > { %2132 = vmatmul.f32.gmra.mxu0 %v6396_v51 }
 0x415   : > { %4147 = vmatmul.msk.f32.gmra.mxu2 %vm464_vm0, %v6397_v34  ;;  %4177 = vmatmul.msk.f32.gmra.mxu3 %vm464_vm0, %v6397_v34  ;;  %v2299_v63 = vpop.f32.mrf.mxu1  ;;  %v6402_v34 = vld [vmem:[#allocation36_spill] sm:$0xff] }
 0x418   : > { %v2192_v50 = vpop.f32.mrf.mxu2  ;;  %v2406_v44 = vpop.f32.mrf.mxu3  ;;  %2346 = vmatmul.f32.gmra.mxu1 %v6396_v51  ;;  %v6401_v51 = vld [vmem:[#allocation39_spill] sm:$0xff] }
 0x419   : > { %v2088_v33 = vpop.f32.mrf.mxu0 }
 0x41c   : > { %2135 = vmatmul.f32.gmra.mxu0 %v5779_v49 }
 0x41d   : > { %4148 = vmatmul.msk.f32.gmra.mxu2 %vm464_vm0, %v6398_v14  ;;  %4178 = vmatmul.msk.f32.gmra.mxu3 %vm464_vm0, %v6398_v14  ;;  %v2302_v36 = vpop.f32.mrf.mxu1 }
 0x420   : > { %v2195_v54 = vpop.f32.mrf.mxu2  ;;  %v2409_v0 = vpop.f32.mrf.mxu3  ;;  %2349 = vmatmul.f32.gmra.mxu1 %v5779_v49 }
 0x421   : > { %v2196_v11 = vadd.f32 %v2195_v54, %v2088_v33  ;;  %v2410_v7 = vadd.f32 %v2409_v0, %v2302_v36  ;;  %v2091_v40 = vpop.f32.mrf.mxu0 }
 0x423   : > { %2542 = vst [vmem:[#allocation2 + $0x588] sm:$0xff] %v2196_v11 }
 0x424   : > { %2543 = vst [vmem:[#allocation2 + $0x6c8] sm:$0xff] %v2410_v7  ;;  %2138 = vmatmul.f32.gmra.mxu0 %v5795_v27 }
 0x425   : > { %4149 = vmatmul.msk.f32.gmra.mxu2 %vm464_vm0, %v6399_v32  ;;  %4179 = vmatmul.msk.f32.gmra.mxu3 %vm464_vm0, %v6399_v32  ;;  %v2305_v39 = vpop.f32.mrf.mxu1 }
 0x428   : > { %v2198_v55 = vpop.f32.mrf.mxu2  ;;  %v2412_v22 = vpop.f32.mrf.mxu3  ;;  %2352 = vmatmul.f32.gmra.mxu1 %v5795_v27 }
 0x429   : > { %v2199_v30 = vadd.f32 %v2198_v55, %v2091_v40  ;;  %v2413_v49 = vadd.f32 %v2412_v22, %v2305_v39  ;;  %v2094_v18 = vpop.f32.mrf.mxu0  ;;  %v6403_v55 = vld [vmem:[#allocation8_spill] sm:$0xff] }
 0x42a   : > { %v3470_v58 = vld [vmem:[#allocation2 + $0x588] sm:$0xfe] }
 0x42b   : > { %v3520_v35 = vrot.slane %v3470_v58, 1  ;;  %v3617_v62 = vld [vmem:[#allocation2 + $0x6c8] sm:$0xfc]  ;;  %v3521_v25 = vrot.slane %v2199_v30, 1  ;;  %v3668_v28 = vrot.slane %v2413_v49, 2 }
 0x42c   : > { %v3667_v20 = vrot.slane %v3617_v62, 2  ;;  %2141 = vmatmul.f32.gmra.mxu0 %v5811_v45 }
 0x42d   : > { %v3522_v29 = vsel %vm2834_vm1, %v3520_v35, %v3521_v25  ;;  %4150 = vmatmul.msk.f32.gmra.mxu2 %vm464_vm0, %v5815_v47  ;;  %4180 = vmatmul.msk.f32.gmra.mxu3 %vm464_vm0, %v5815_v47  ;;  %v2308_v27 = vpop.f32.mrf.mxu1 }
 0x42e   : > { %v3593_v57 = vadd.f32 %v3522_v29, %v6400_v53  ;;  %v3669_v5 = vsel %vm2982_vm2, %v3667_v20, %v3668_v28  ;;  %v6404_v53 = vld [vmem:[#allocation11_spill] sm:$0xff] }
 0x430   : > { %v3740_v10 = vadd.f32 %v3669_v5, %v3593_v57  ;;  %v2201_v37 = vpop.f32.mrf.mxu2  ;;  %v2415_v26 = vpop.f32.mrf.mxu3  ;;  %2355 = vmatmul.f32.gmra.mxu1 %v5811_v45  ;;  %v6405_v57 = vld [vmem:[#allocation9_spill] sm:$0xff] }
 0x431   : > { %v2202_v38 = vadd.f32 %v2201_v37, %v2094_v18  ;;  %v2416_v12 = vadd.f32 %v2415_v26, %v2308_v27  ;;  %v2097_v52 = vpop.f32.mrf.mxu0 }
 0x432   : > { %v3768_v47 = vadd.f32 %v6105_v6, %v3740_v10 }
 0x433   : > { %v3523_v21 = vrot.slane %v2202_v38, 1  ;;  %v3670_v43 = vrot.slane %v2416_v12, 2 }
 0x434   : > { %4229 = vtanh.f32 %v3768_v47  ;;  %2144 = vmatmul.f32.gmra.mxu0 %v5827_v4 }
 0x435   : > { %v3524_v46 = vsel %vm2834_vm1, %v3521_v25, %v3523_v21  ;;  %4151 = vmatmul.msk.f32.gmra.mxu2 %vm464_vm0, %v6401_v51  ;;  %4181 = vmatmul.msk.f32.gmra.mxu3 %vm464_vm0, %v6401_v51  ;;  %v2311_v45 = vpop.f32.mrf.mxu1  ;;  %v3671_v50 = vsel %vm2982_vm2, %v3668_v28, %v3670_v43 }
 0x436   : > { %v3594_v63 = vadd.f32 %v3524_v46, %v6402_v34 }
 0x438   : > { %v3741_v44 = vadd.f32 %v3671_v50, %v3594_v63  ;;  %v2204_v33 = vpop.f32.mrf.mxu2  ;;  %v2418_v14 = vpop.f32.mrf.mxu3  ;;  %2358 = vmatmul.f32.gmra.mxu1 %v5827_v4  ;;  %v6407_v63 = vld [vmem:[#allocation14_spill] sm:$0xff] }
 0x439   : > { %v2205_v36 = vadd.f32 %v2204_v33, %v2097_v52  ;;  %v2419_v54 = vadd.f32 %v2418_v14, %v2311_v45  ;;  %v2100_v0 = vpop.f32.mrf.mxu0  ;;  %v6406_v45 = vld [vmem:[#allocation13_spill] sm:$0xff]  ;;  %v6408_v50 = vld [vmem:[#allocation10_spill] sm:$0xff] }
 0x43a   : > { %v4230_v11 = vpop.eup %4229  ;;  %v3769_v7 = vadd.f32 %v6105_v6, %v3741_v44 }
 0x43b   : > { %3816 = vst [vmem:[%s6121_s30] sm:$0xff] %v4230_v11  ;;  %v3525_v40 = vrot.slane %v2205_v36, 1  ;;  %v3672_v32 = vrot.slane %v2419_v54, 2 }
 0x43c   : > { %4231 = vtanh.f32 %v3769_v7  ;;  %2147 = vmatmul.f32.gmra.mxu0 %v5843_v1 }
 0x43d   : > { %v3526_v39 = vsel %vm2834_vm1, %v3523_v21, %v3525_v40  ;;  %4152 = vmatmul.msk.f32.gmra.mxu2 %vm464_vm0, %v5847_v13  ;;  %4182 = vmatmul.msk.f32.gmra.mxu3 %vm464_vm0, %v5847_v13  ;;  %v2314_v4 = vpop.f32.mrf.mxu1  ;;  %v3673_v30 = vsel %vm2982_vm2, %v3670_v43, %v3672_v32 }
 0x43e   : > { %v3595_v22 = vadd.f32 %v3526_v39, %v6403_v55 }
 0x440   : > { %v3742_v49 = vadd.f32 %v3673_v30, %v3595_v22  ;;  %v2207_v18 = vpop.f32.mrf.mxu2  ;;  %v2421_v58 = vpop.f32.mrf.mxu3  ;;  %2361 = vmatmul.f32.gmra.mxu1 %v5843_v1  ;;  %v6409_v22 = vld [vmem:[#allocation16_spill] sm:$0xff] }
 0x441   : > { %v2208_v35 = vadd.f32 %v2207_v18, %v2100_v0  ;;  %v2422_v62 = vadd.f32 %v2421_v58, %v2314_v4  ;;  %v2103_v25 = vpop.f32.mrf.mxu0 }
 0x442   : > { %v4232_v28 = vpop.eup %4231  ;;  %v3770_v20 = vadd.f32 %v6105_v6, %v3742_v49  ;;  %v6410_v49 = vld [vmem:[#allocation12_spill] sm:$0xff] }
 0x443   : > { %3817 = vst [vmem:[%s6121_s30 + $0x8] sm:$0xff] %v4232_v28  ;;  %v3527_v29 = vrot.slane %v2208_v35, 1  ;;  %v3674_v27 = vrot.slane %v2422_v62, 2 }
 0x444   : > { %4233 = vtanh.f32 %v3770_v20  ;;  %2150 = vmatmul.f32.gmra.mxu0 %v5859_v2 }
 0x445   : > { %v3528_v13 = vsel %vm2834_vm1, %v3525_v40, %v3527_v29  ;;  %4153 = vmatmul.msk.f32.gmra.mxu2 %vm464_vm0, %v6404_v53  ;;  %4183 = vmatmul.msk.f32.gmra.mxu3 %vm464_vm0, %v6404_v53  ;;  %v2317_v1 = vpop.f32.mrf.mxu1  ;;  %v3675_v10 = vsel %vm2982_vm2, %v3672_v32, %v3674_v27 }
 0x446   : > { %v3596_v5 = vadd.f32 %v3528_v13, %v6405_v57 }
 0x448   : > { %v3743_v37 = vadd.f32 %v3675_v10, %v3596_v5  ;;  %v2210_v26 = vpop.f32.mrf.mxu2  ;;  %v2424_v38 = vpop.f32.mrf.mxu3  ;;  %2364 = vmatmul.f32.gmra.mxu1 %v5859_v2  ;;  %v6411_v10 = vld [vmem:[#allocation15_spill] sm:$0xff] }
 0x449   : > { %v2211_v12 = vadd.f32 %v2210_v26, %v2103_v25  ;;  %v2425_v52 = vadd.f32 %v2424_v38, %v2317_v1  ;;  %v2106_v47 = vpop.f32.mrf.mxu0 }
 0x44a   : > { %v4234_v21 = vpop.eup %4233  ;;  %v3771_v43 = vadd.f32 %v6105_v6, %v3743_v37 }
 0x44b   : > { %3818 = vst [vmem:[%s6121_s30 + $0x10] sm:$0xff] %v4234_v21  ;;  %v3529_v46 = vrot.slane %v2211_v12, 1  ;;  %v3676_v51 = vrot.slane %v2425_v52, 2 }
 0x44c   : > { %4235 = vtanh.f32 %v3771_v43  ;;  %2153 = vmatmul.f32.gmra.mxu0 %v6406_v45 }
 0x44d   : > { %v3530_v34 = vsel %vm2834_vm1, %v3527_v29, %v3529_v46  ;;  %4154 = vmatmul.msk.f32.gmra.mxu2 %vm464_vm0, %v6407_v63  ;;  %4184 = vmatmul.msk.f32.gmra.mxu3 %vm464_vm0, %v6407_v63  ;;  %v2320_v2 = vpop.f32.mrf.mxu1  ;;  %v3677_v33 = vsel %vm2982_vm2, %v3674_v27, %v3676_v51 }
 0x44e   : > { %v3597_v44 = vadd.f32 %v3530_v34, %v6408_v50 }
 0x450   : > { %v3744_v14 = vadd.f32 %v3677_v33, %v3597_v44  ;;  %v2213_v36 = vpop.f32.mrf.mxu2  ;;  %v2427_v54 = vpop.f32.mrf.mxu3  ;;  %2367 = vmatmul.f32.gmra.mxu1 %v6406_v45 }
 0x451   : > { %v2214_v0 = vadd.f32 %v2213_v36, %v2106_v47  ;;  %v2428_v11 = vadd.f32 %v2427_v54, %v2320_v2  ;;  %v2109_v7 = vpop.f32.mrf.mxu0  ;;  %v6412_v2 = vld [vmem:[#allocation17_spill] sm:$0xff] }
 0x452   : > { %v4236_v40 = vpop.eup %4235  ;;  %v3772_v32 = vadd.f32 %v6105_v6, %v3744_v14 }
 0x453   : > { %3819 = vst [vmem:[%s6121_s30 + $0x18] sm:$0xff] %v4236_v40  ;;  %v3531_v39 = vrot.slane %v2214_v0, 1  ;;  %v3678_v4 = vrot.slane %v2428_v11, 2 }
 0x454   : > { %4237 = vtanh.f32 %v3772_v32  ;;  %2156 = vmatmul.f32.gmra.mxu0 %v5891_v41 }
 0x455   : > { %v3532_v55 = vsel %vm2834_vm1, %v3529_v46, %v3531_v39  ;;  %4155 = vmatmul.msk.f32.gmra.mxu2 %vm464_vm0, %v6409_v22  ;;  %4185 = vmatmul.msk.f32.gmra.mxu3 %vm464_vm0, %v6409_v22  ;;  %v2323_v30 = vpop.f32.mrf.mxu1  ;;  %v3679_v58 = vsel %vm2982_vm2, %v3676_v51, %v3678_v4 }
 0x456   : > { %v3598_v18 = vadd.f32 %v3532_v55, %v6410_v49 }
 0x458   : > { %v3745_v35 = vadd.f32 %v3679_v58, %v3598_v18  ;;  %v2216_v62 = vpop.f32.mrf.mxu2  ;;  %v2430_v25 = vpop.f32.mrf.mxu3  ;;  %2370 = vmatmul.f32.gmra.mxu1 %v5891_v41 }
 0x459   : > { %v2217_v28 = vadd.f32 %v2216_v62, %v2109_v7  ;;  %v2431_v20 = vadd.f32 %v2430_v25, %v2323_v30  ;;  %v2112_v29 = vpop.f32.mrf.mxu0 }
 0x45a   : > { %v4238_v27 = vpop.eup %4237  ;;  %v3773_v13 = vadd.f32 %v6105_v6, %v3745_v35 }
 0x45b   : > { %3820 = vst [vmem:[%s6121_s30 + $0x20] sm:$0xff] %v4238_v27  ;;  %v3533_v53 = vrot.slane %v2217_v28, 1  ;;  %v3680_v1 = vrot.slane %v2431_v20, 2 }
 0x45c   : > { %4239 = vtanh.f32 %v3773_v13 }
 0x45d   : > { %v3534_v57 = vsel %vm2834_vm1, %v3531_v39, %v3533_v53  ;;  %v2326_v5 = vpop.f32.mrf.mxu1  ;;  %v3681_v26 = vsel %vm2982_vm2, %v3678_v4, %v3680_v1 }
 0x45e   : > { %v3599_v37 = vadd.f32 %v3534_v57, %v6411_v10 }
 0x460   : > { %v3746_v38 = vadd.f32 %v3681_v26, %v3599_v37  ;;  %v2219_v41 = vpop.f32.mrf.mxu2  ;;  %v2433_v12 = vpop.f32.mrf.mxu3 }
 0x461   : > { %v2220_v52 = vadd.f32 %v2219_v41, %v2112_v29  ;;  %v2434_v47 = vadd.f32 %v2433_v12, %v2326_v5  ;;  %v2115_v21 = vpop.f32.mrf.mxu0 }
 0x462   : > { %v4240_v43 = vpop.eup %4239  ;;  %v3774_v46 = vadd.f32 %v6105_v6, %v3746_v38 }
 0x463   : > { %3821 = vst [vmem:[%s6121_s30 + $0x28] sm:$0xff] %v4240_v43  ;;  %v3535_v51 = vrot.slane %v2220_v52, 1  ;;  %v3682_v45 = vrot.slane %v2434_v47, 2 }
 0x464   : > { %4241 = vtanh.f32 %v3774_v46 }
 0x465   : > { %v3536_v34 = vsel %vm2834_vm1, %v3533_v53, %v3535_v51  ;;  %v2329_v63 = vpop.f32.mrf.mxu1  ;;  %v3683_v44 = vsel %vm2982_vm2, %v3680_v1, %v3682_v45 }
 0x466   : > { %v3600_v50 = vadd.f32 %v3536_v34, %v6412_v2 }
 0x468   : > { %v3747_v33 = vadd.f32 %v3683_v44, %v3600_v50  ;;  %v2222_v14 = vpop.f32.mrf.mxu2  ;;  %v2436_v36 = vpop.f32.mrf.mxu3 }
 0x469   : > { %v2223_v54 = vadd.f32 %v2222_v14, %v2115_v21  ;;  %v2437_v0 = vadd.f32 %v2436_v36, %v2329_v63  ;;  %v2118_v11 = vpop.f32.mrf.mxu0 }
 0x46a   : > { %v4242_v7 = vpop.eup %4241  ;;  %v3775_v40 = vadd.f32 %v6105_v6, %v3747_v33 }
 0x46b   : > { %3822 = vst [vmem:[%s6121_s30 + $0x30] sm:$0xff] %v4242_v7  ;;  %v3537_v32 = vrot.slane %v2223_v54, 1  ;;  %v3684_v39 = vrot.slane %v2437_v0, 2 }
 0x46c   : > { %4243 = vtanh.f32 %v3775_v40 }
 0x46d   : > { %v3538_v4 = vsel %vm2834_vm1, %v3535_v51, %v3537_v32  ;;  %v2332_v55 = vpop.f32.mrf.mxu1  ;;  %v3685_v30 = vsel %vm2982_vm2, %v3682_v45, %v3684_v39 }
 0x46e   : > { %v3601_v22 = vadd.f32 %v3538_v4, %v5912_v24 }
 0x470   : > { %v3748_v49 = vadd.f32 %v3685_v30, %v3601_v22  ;;  %v2225_v18 = vpop.f32.mrf.mxu2  ;;  %v2439_v58 = vpop.f32.mrf.mxu3 }
 0x471   : > { %v2226_v35 = vadd.f32 %v2225_v18, %v2118_v11  ;;  %v2440_v62 = vadd.f32 %v2439_v58, %v2332_v55  ;;  %v2121_v25 = vpop.f32.mrf.mxu0 }
 0x472   : > { %v4244_v28 = vpop.eup %4243  ;;  %v3776_v20 = vadd.f32 %v6105_v6, %v3748_v49 }
 0x473   : > { %3823 = vst [vmem:[%s6121_s30 + $0x38] sm:$0xff] %v4244_v28  ;;  %v3539_v29 = vrot.slane %v2226_v35, 1  ;;  %v3686_v27 = vrot.slane %v2440_v62, 2 }
 0x474   : > { %4245 = vtanh.f32 %v3776_v20 }
 0x475   : > { %v3540_v13 = vsel %vm2834_vm1, %v3537_v32, %v3539_v29  ;;  %v2335_v53 = vpop.f32.mrf.mxu1  ;;  %v3687_v1 = vsel %vm2982_vm2, %v3684_v39, %v3686_v27 }
 0x476   : > { %v3602_v24 = vadd.f32 %v3540_v13, %v5920_v61 }
 0x478   : > { %v3749_v57 = vadd.f32 %v3687_v1, %v3602_v24  ;;  %v2228_v5 = vpop.f32.mrf.mxu2  ;;  %v2442_v10 = vpop.f32.mrf.mxu3 }
 0x479   : > { %v2229_v37 = vadd.f32 %v2228_v5, %v2121_v25  ;;  %v2443_v26 = vadd.f32 %v2442_v10, %v2335_v53  ;;  %v2124_v38 = vpop.f32.mrf.mxu0 }
 0x47a   : > { %v4246_v41 = vpop.eup %4245  ;;  %v3777_v12 = vadd.f32 %v6105_v6, %v3749_v57 }
 0x47b   : > { %3824 = vst [vmem:[%s6121_s30 + $0x40] sm:$0xff] %v4246_v41  ;;  %v3541_v52 = vrot.slane %v2229_v37, 1  ;;  %v3688_v47 = vrot.slane %v2443_v26, 2 }
 0x47c   : > { %4247 = vtanh.f32 %v3777_v12 }
 0x47d   : > { %v3542_v21 = vsel %vm2834_vm1, %v3539_v29, %v3541_v52  ;;  %v2338_v43 = vpop.f32.mrf.mxu1  ;;  %v3689_v46 = vsel %vm2982_vm2, %v3686_v27, %v3688_v47 }
 0x47e   : > { %v3603_v61 = vadd.f32 %v3542_v21, %v5928_v42 }
 0x480   : > { %v3750_v51 = vadd.f32 %v3689_v46, %v3603_v61  ;;  %v2231_v45 = vpop.f32.mrf.mxu2  ;;  %v2445_v34 = vpop.f32.mrf.mxu3 }
 0x481   : > { %v2232_v63 = vadd.f32 %v2231_v45, %v2124_v38  ;;  %v2446_v2 = vadd.f32 %v2445_v34, %v2338_v43  ;;  %v2127_v50 = vpop.f32.mrf.mxu0 }
 0x482   : > { %v4248_v44 = vpop.eup %4247  ;;  %v3778_v33 = vadd.f32 %v6105_v6, %v3750_v51 }
 0x483   : > { %3825 = vst [vmem:[%s6121_s30 + $0x48] sm:$0xff] %v4248_v44  ;;  %v3543_v14 = vrot.slane %v2232_v63, 1  ;;  %v3690_v36 = vrot.slane %v2446_v2, 2 }
 0x484   : > { %4249 = vtanh.f32 %v3778_v33 }
 0x485   : > { %v3544_v54 = vsel %vm2834_vm1, %v3541_v52, %v3543_v14  ;;  %v2341_v0 = vpop.f32.mrf.mxu1  ;;  %v3691_v11 = vsel %vm2982_vm2, %v3688_v47, %v3690_v36 }
 0x486   : > { %v3604_v42 = vadd.f32 %v3544_v54, %v5936_v48 }
 0x488   : > { %v3751_v7 = vadd.f32 %v3691_v11, %v3604_v42  ;;  %v2234_v40 = vpop.f32.mrf.mxu2  ;;  %v2448_v32 = vpop.f32.mrf.mxu3 }
 0x489   : > { %v2235_v39 = vadd.f32 %v2234_v40, %v2127_v50  ;;  %v2449_v4 = vadd.f32 %v2448_v32, %v2341_v0  ;;  %v2130_v55 = vpop.f32.mrf.mxu0 }
 0x48a   : > { %v4250_v22 = vpop.eup %4249  ;;  %v3779_v30 = vadd.f32 %v6105_v6, %v3751_v7 }
 0x48b   : > { %3826 = vst [vmem:[%s6121_s30 + $0x50] sm:$0xff] %v4250_v22  ;;  %v3545_v49 = vrot.slane %v2235_v39, 1  ;;  %v3692_v18 = vrot.slane %v2449_v4, 2 }
 0x48c   : > { %4251 = vtanh.f32 %v3779_v30 }
 0x48d   : > { %v3546_v58 = vsel %vm2834_vm1, %v3543_v14, %v3545_v49  ;;  %v2344_v35 = vpop.f32.mrf.mxu1  ;;  %v3693_v62 = vsel %vm2982_vm2, %v3690_v36, %v3692_v18 }
 0x48e   : > { %v3605_v48 = vadd.f32 %v3546_v58, %v5944_v9 }
 0x490   : > { %v3752_v25 = vadd.f32 %v3693_v62, %v3605_v48  ;;  %v2237_v28 = vpop.f32.mrf.mxu2  ;;  %v2451_v20 = vpop.f32.mrf.mxu3 }
 0x491   : > { %v2238_v29 = vadd.f32 %v2237_v28, %v2130_v55  ;;  %v2452_v27 = vadd.f32 %v2451_v20, %v2344_v35  ;;  %v2133_v13 = vpop.f32.mrf.mxu0 }
 0x492   : > { %v4252_v53 = vpop.eup %4251  ;;  %v3780_v24 = vadd.f32 %v6105_v6, %v3752_v25 }
 0x493   : > { %3827 = vst [vmem:[%s6121_s30 + $0x58] sm:$0xff] %v4252_v53  ;;  %v3547_v1 = vrot.slane %v2238_v29, 1  ;;  %v3694_v57 = vrot.slane %v2452_v27, 2 }
 0x494   : > { %4253 = vtanh.f32 %v3780_v24 }
 0x495   : > { %v3548_v5 = vsel %vm2834_vm1, %v3545_v49, %v3547_v1  ;;  %v2347_v10 = vpop.f32.mrf.mxu1  ;;  %v3695_v37 = vsel %vm2982_vm2, %v3692_v18, %v3694_v57 }
 0x496   : > { %v3606_v9 = vadd.f32 %v3548_v5, %v5952_v17 }
 0x498   : > { %v3753_v26 = vadd.f32 %v3695_v37, %v3606_v9  ;;  %v2240_v38 = vpop.f32.mrf.mxu2  ;;  %v2454_v41 = vpop.f32.mrf.mxu3 }
 0x499   : > { %v2241_v12 = vadd.f32 %v2240_v38, %v2133_v13  ;;  %v2455_v52 = vadd.f32 %v2454_v41, %v2347_v10  ;;  %v2136_v47 = vpop.f32.mrf.mxu0 }
 0x49a   : > { %v4254_v21 = vpop.eup %4253  ;;  %v3781_v43 = vadd.f32 %v6105_v6, %v3753_v26 }
 0x49b   : > { %3828 = vst [vmem:[%s6121_s30 + $0x60] sm:$0xff] %v4254_v21  ;;  %v3549_v61 = vrot.slane %v2241_v12, 1  ;;  %v3696_v46 = vrot.slane %v2455_v52, 2 }
 0x49c   : > { %4255 = vtanh.f32 %v3781_v43 }
 0x49d   : > { %v3550_v51 = vsel %vm2834_vm1, %v3547_v1, %v3549_v61  ;;  %v2350_v45 = vpop.f32.mrf.mxu1  ;;  %v3697_v34 = vsel %vm2982_vm2, %v3694_v57, %v3696_v46 }
 0x49e   : > { %v3607_v17 = vadd.f32 %v3550_v51, %v5960_v60 }
 0x4a0   : > { %v3754_v63 = vadd.f32 %v3697_v34, %v3607_v17  ;;  %v2243_v2 = vpop.f32.mrf.mxu2  ;;  %v2457_v50 = vpop.f32.mrf.mxu3 }
 0x4a1   : > { %v2244_v44 = vadd.f32 %v2243_v2, %v2136_v47  ;;  %v2458_v33 = vadd.f32 %v2457_v50, %v2350_v45  ;;  %v2139_v14 = vpop.f32.mrf.mxu0  ;;  %v4463_v50 = vmov 0.0  }
 0x4a2   : > { %v4256_v36 = vpop.eup %4255  ;;  %v3782_v54 = vadd.f32 %v6105_v6, %v3754_v63  ;;  %2758 = vst [vmem:[#allocation2 + $0x670] sm:$0xff] %v4463_v50 }
 0x4a3   : > { %3829 = vst [vmem:[%s6121_s30 + $0x68] sm:$0xff] %v4256_v36  ;;  %v3551_v0 = vrot.slane %v2244_v44, 1  ;;  %v3698_v42 = vrot.slane %v2458_v33, 2 }
 0x4a4   : > { %4257 = vtanh.f32 %v3782_v54  ;;  %2759 = vst [vmem:[#allocation2 + $0x218] sm:$0xff] %v4463_v50 }
 0x4a5   : > { %v3552_v11 = vsel %vm2834_vm1, %v3549_v61, %v3551_v0  ;;  %v2353_v7 = vpop.f32.mrf.mxu1  ;;  %v3699_v40 = vsel %vm2982_vm2, %v3696_v46, %v3698_v42 }
 0x4a6   : > { %v3608_v60 = vadd.f32 %v3552_v11, %v5968_v16 }
 0x4a8   : > { %v3755_v32 = vadd.f32 %v3699_v40, %v3608_v60  ;;  %v2246_v39 = vpop.f32.mrf.mxu2  ;;  %v2460_v4 = vpop.f32.mrf.mxu3 }
 0x4a9   : > { %v2247_v55 = vadd.f32 %v2246_v39, %v2139_v14  ;;  %v2461_v22 = vadd.f32 %v2460_v4, %v2353_v7  ;;  %v2142_v30 = vpop.f32.mrf.mxu0 }
 0x4aa   : > { %v4258_v49 = vpop.eup %4257  ;;  %v3783_v18 = vadd.f32 %v6105_v6, %v3755_v32 }
 0x4ab   : > { %3830 = vst [vmem:[%s6121_s30 + $0x70] sm:$0xff] %v4258_v49  ;;  %v3553_v58 = vrot.slane %v2247_v55, 1  ;;  %v3700_v35 = vrot.slane %v2461_v22, 2 }
 0x4ac   : > { %4259 = vtanh.f32 %v3783_v18 }
 0x4ad   : > { %v3554_v48 = vsel %vm2834_vm1, %v3551_v0, %v3553_v58  ;;  %v2356_v62 = vpop.f32.mrf.mxu1  ;;  %v3701_v25 = vsel %vm2982_vm2, %v3698_v42, %v3700_v35 }
 0x4ae   : > { %v3609_v16 = vadd.f32 %v3554_v48, %v5976_v23 }
 0x4b0   : > { %v3756_v28 = vadd.f32 %v3701_v25, %v3609_v16  ;;  %v2249_v20 = vpop.f32.mrf.mxu2  ;;  %v2463_v29 = vpop.f32.mrf.mxu3 }
 0x4b1   : > { %v2250_v27 = vadd.f32 %v2249_v20, %v2142_v30  ;;  %v2464_v13 = vadd.f32 %v2463_v29, %v2356_v62  ;;  %v2145_v53 = vpop.f32.mrf.mxu0 }
 0x4b2   : > { %v4260_v24 = vpop.eup %4259  ;;  %v3784_v1 = vadd.f32 %v6105_v6, %v3756_v28 }
 0x4b3   : > { %3831 = vst [vmem:[%s6121_s30 + $0x78] sm:$0xff] %v4260_v24  ;;  %v3555_v57 = vrot.slane %v2250_v27, 1  ;;  %v3702_v5 = vrot.slane %v2464_v13, 2 }
 0x4b4   : > { %4261 = vtanh.f32 %v3784_v1 }
 0x4b5   : > { %v3556_v10 = vsel %vm2834_vm1, %v3553_v58, %v3555_v57  ;;  %v2359_v9 = vpop.f32.mrf.mxu1  ;;  %v3703_v37 = vsel %vm2982_vm2, %v3700_v35, %v3702_v5 }
 0x4b6   : > { %v3610_v23 = vadd.f32 %v3556_v10, %v5986_v56 }
 0x4b8   : > { %v3757_v26 = vadd.f32 %v3703_v37, %v3610_v23  ;;  %v2252_v38 = vpop.f32.mrf.mxu2  ;;  %v2466_v41 = vpop.f32.mrf.mxu3 }
 0x4b9   : > { %v2253_v12 = vadd.f32 %v2252_v38, %v2145_v53  ;;  %v2467_v52 = vadd.f32 %v2466_v41, %v2359_v9  ;;  %v2148_v47 = vpop.f32.mrf.mxu0  ;;  %v3641_v9 = vld [vmem:[#allocation2 + $0x218] sm:$0x3] }
 0x4ba   : > { %v4262_v21 = vpop.eup %4261  ;;  %v3785_v43 = vadd.f32 %v6105_v6, %v3757_v26 }
 0x4bb   : > { %3832 = vst [vmem:[%s6121_s30 + $0x80] sm:$0xff] %v4262_v21  ;;  %v3557_v61 = vrot.slane %v2253_v12, 1  ;;  %v3704_v46 = vrot.slane %v2467_v52, 2 }
 0x4bc   : > { %4263 = vtanh.f32 %v3785_v43 }
 0x4bd   : > { %v3558_v51 = vsel %vm2834_vm1, %v3555_v57, %v3557_v61  ;;  %v2362_v45 = vpop.f32.mrf.mxu1  ;;  %v3705_v17 = vsel %vm2982_vm2, %v3702_v5, %v3704_v46  ;;  %v3494_v5 = vld [vmem:[#allocation2 + $0x670] sm:$0x1] }
 0x4be   : > { %v3611_v56 = vadd.f32 %v3558_v51, %v5996_v59  ;;  %v3567_v12 = vrot.slane %v3494_v5, 1 }
 0x4c0   : > { %v3758_v34 = vadd.f32 %v3705_v17, %v3611_v56  ;;  %v2255_v63 = vpop.f32.mrf.mxu2  ;;  %v2469_v2 = vpop.f32.mrf.mxu3 }
 0x4c1   : > { %v2256_v44 = vadd.f32 %v2255_v63, %v2148_v47  ;;  %v2470_v33 = vadd.f32 %v2469_v2, %v2362_v45  ;;  %v2151_v54 = vpop.f32.mrf.mxu0  ;;  %v3714_v47 = vrot.slane %v3641_v9, 2 }
 0x4c2   : > { %v4264_v14 = vpop.eup %4263  ;;  %v3786_v36 = vadd.f32 %v6105_v6, %v3758_v34 }
 0x4c3   : > { %3833 = vst [vmem:[%s6121_s30 + $0x88] sm:$0xff] %v4264_v14  ;;  %v3559_v0 = vrot.slane %v2256_v44, 1  ;;  %v3706_v42 = vrot.slane %v2470_v33, 2 }
 0x4c4   : > { %4265 = vtanh.f32 %v3786_v36 }
 0x4c5   : > { %v3560_v59 = vsel %vm2834_vm1, %v3557_v61, %v3559_v0  ;;  %v2365_v11 = vpop.f32.mrf.mxu1  ;;  %v3707_v60 = vsel %vm2982_vm2, %v3704_v46, %v3706_v42 }
 0x4c6   : > { %v3612_v7 = vadd.f32 %v3560_v59, %v6006_v15 }
 0x4c8   : > { %v3759_v40 = vadd.f32 %v3707_v60, %v3612_v7  ;;  %v2258_v32 = vpop.f32.mrf.mxu2  ;;  %v2472_v39 = vpop.f32.mrf.mxu3 }
 0x4c9   : > { %v2259_v4 = vadd.f32 %v2258_v32, %v2151_v54  ;;  %v2473_v55 = vadd.f32 %v2472_v39, %v2365_v11  ;;  %v2154_v58 = vpop.f32.mrf.mxu0 }
 0x4ca   : > { %v4266_v22 = vpop.eup %4265  ;;  %v3787_v30 = vadd.f32 %v6105_v6, %v3759_v40 }
 0x4cb   : > { %3834 = vst [vmem:[%s6121_s30 + $0x90] sm:$0xff] %v4266_v22  ;;  %v3561_v49 = vrot.slane %v2259_v4, 1  ;;  %v3708_v18 = vrot.slane %v2473_v55, 2 }
 0x4cc   : > { %4267 = vtanh.f32 %v3787_v30 }
 0x4cd   : > { %v3562_v35 = vsel %vm2834_vm1, %v3559_v0, %v3561_v49  ;;  %v2368_v48 = vpop.f32.mrf.mxu1  ;;  %v3709_v62 = vsel %vm2982_vm2, %v3706_v42, %v3708_v18 }
 0x4ce   : > { %v3613_v15 = vadd.f32 %v3562_v35, %v6016_v31 }
 0x4d0   : > { %v3760_v16 = vadd.f32 %v3709_v62, %v3613_v15  ;;  %v2261_v25 = vpop.f32.mrf.mxu2  ;;  %v2475_v28 = vpop.f32.mrf.mxu3 }
 0x4d1   : > { %v2262_v20 = vadd.f32 %v2261_v25, %v2154_v58  ;;  %v2476_v29 = vadd.f32 %v2475_v28, %v2368_v48  ;;  %v2157_v31 = vpop.f32.mrf.mxu0 }
 0x4d2   : > { %v4268_v27 = vpop.eup %4267  ;;  %v3788_v13 = vadd.f32 %v6105_v6, %v3760_v16 }
 0x4d3   : > { %3835 = vst [vmem:[%s6121_s30 + $0x98] sm:$0xff] %v4268_v27  ;;  %v3563_v53 = vrot.slane %v2262_v20, 1  ;;  %v3710_v24 = vrot.slane %v2476_v29, 2 }
 0x4d4   : > { %4269 = vtanh.f32 %v3788_v13 }
 0x4d5   : > { %v3564_v1 = vsel %vm2834_vm1, %v3561_v49, %v3563_v53  ;;  %v2371_v10 = vpop.f32.mrf.mxu1  ;;  %v3711_v23 = vsel %vm2982_vm2, %v3708_v18, %v3710_v24 }
 0x4d6   : > { %v3614_v57 = vadd.f32 %v3564_v1, %v6026_v3 }
 0x4d8   : > { %v3761_v37 = vadd.f32 %v3711_v23, %v3614_v57  ;;  %v2264_v26 = vpop.f32.mrf.mxu2  ;;  %v2478_v38 = vpop.f32.mrf.mxu3 }
 0x4d9   : > { %v2265_v41 = vadd.f32 %v2264_v26, %v2157_v31  ;;  %v2479_v52 = vadd.f32 %v2478_v38, %v2371_v10 }
 0x4da   : > { %v4270_v21 = vpop.eup %4269  ;;  %v3789_v43 = vadd.f32 %v6105_v6, %v3761_v37 }
 0x4db   : > { %3836 = vst [vmem:[%s6121_s30 + $0xa0] sm:$0xff] %v4270_v21  ;;  %v3565_v61 = vrot.slane %v2265_v41, 1  ;;  %v3712_v3 = vrot.slane %v2479_v52, 2 }
 0x4dc   : > { %4271 = vtanh.f32 %v3789_v43 }
 0x4dd   : > { %v3566_v46 = vsel %vm2834_vm1, %v3563_v53, %v3565_v61  ;;  %v3568_v51 = vsel %vm2834_vm1, %v3565_v61, %v3567_v12  ;;  %v3715_v45 = vsel %vm2982_vm2, %v3712_v3, %v3714_v47  ;;  %v3713_v34 = vsel %vm2982_vm2, %v3710_v24, %v3712_v3 }
 0x4de   : > { %v3615_v56 = vadd.f32 %v3566_v46, %v6034_v19  ;;  %v3616_v17 = vadd.f32 %v3568_v51, %v6044_v8 }
 0x4e0   : > { %v3762_v63 = vadd.f32 %v3713_v34, %v3615_v56  ;;  %v3763_v2 = vadd.f32 %v3715_v45, %v3616_v17 }
 0x4e2   : > { %v4272_v50 = vpop.eup %4271  ;;  %v3790_v44 = vadd.f32 %v6105_v6, %v3762_v63  ;;  %v3791_v33 = vadd.f32 %v6105_v6, %v3763_v2 }
 0x4e3   : > { %3837 = vst [vmem:[%s6121_s30 + $0xa8] sm:$0xff] %v4272_v50 }
 0x4e4   : > { %4273 = vtanh.f32 %v3790_v44 }
 0x4e5   : > { %4275 = vtanh.f32 %v3791_v33 }
 0x4ea   : > { %v4274_v14 = vpop.eup %4273 }
 0x4eb   : > { %v4276_v36 = vpop.eup %4275  ;;  %3838 = vst [vmem:[%s6121_s30 + $0xb0] sm:$0xff] %v4274_v14 }
 0x4ec   : > { %3839 = vst [vmem:[%s6121_s30 + $0xb8] sm:$0xff] %v4276_v36 }
 0x4ed PF: > { %s14_s12 = sadd.s32 1, %s4458_s12  }
 0x4ee   : > { %p11_p7 = scmp.ge.s32.totalorder %s14_s12, 4  }
 0x4f0   :  { %13 = sbr.rel (!%p11_p7) target bundleno = 1 (0x1), region = 67 }
 0x4f5   :  { %3861 = vsyncpa [#allocation4], 1 }
 0x4f6   :  { %3863 = vsyncpa [#allocation4 + $0x1], 1 }

</bundles_post_ra>
